<compile_context>
chip_gen: v7x
topology: tpu7x:2x2x1
jax: 0.10.0
libtpu: 0.0.40
codegen_flags: <defaults>
</compile_context>

<pallas_src>
import jax
import jax.numpy as jnp
from jax.experimental import pallas as pl
from jax.experimental.pallas import tpu as pltpu

EPS = 1e-5
LANE = 128


def _round_up(x, m):
    return (x + m - 1) // m * m


# ------------------------------ kernel bodies --------------------------------
def _conv3x3_body(x, w_ref, y_ref, stat_ref):
    """3x3 'SAME' conv of one image as 3 MXU matmuls (K = 3*Ci) + BN partial sums.

    x       : (H, W, Ci)    bf16 value (already cast / normalized by the caller)
    w_ref   : (3, 3*Ci, Co) bf16 ref, layout w[kh, kw*Ci + ci, co]
    y_ref   : (1, H, W, Co) bf16 ref  (conv output tile)
    stat_ref: (1, 2, Co)    f32 ref   (per-tile sum / sum-of-squares)
    """
    h, w, ci = x.shape
    co = w_ref.shape[-1]

    # In-kernel kw-packing on the lane axis: rows[r, j, kw*Ci + c] == x_pad[r, j+kw-1, c]
    zcol = jnp.zeros((h, 1, ci), jnp.bfloat16)
    left = jnp.concatenate([zcol, x[:, : w - 1, :]], axis=1)     # input col j-1
    right = jnp.concatenate([x[:, 1:, :], zcol], axis=1)         # input col j+1
    rows = jnp.concatenate([left, x, right], axis=-1)            # (H, W, 3*Ci)

    # In-kernel kh zero-padding: packed[p] is the kw-packed padded input row p.
    zrow = jnp.zeros((1, w, 3 * ci), jnp.bfloat16)
    packed = jnp.concatenate([zrow, rows, zrow], axis=0)         # (H+2, W, 3*Ci)

    # TODO(synk): if W is not a multiple of 8 (ResNet 14x14/7x7 stages) these
    # slice+reshape views force a VMEM relayout per kh tap; pad W for those shapes.
    acc = jnp.dot(packed[0:h].reshape(h * w, 3 * ci), w_ref[0],
                  preferred_element_type=jnp.float32)
    for kh in (1, 2):  # static unroll: 3 back-to-back MXU accumulations
        acc = acc + jnp.dot(packed[kh:kh + h].reshape(h * w, 3 * ci), w_ref[kh],
                            preferred_element_type=jnp.float32)

    y_ref[...] = acc.reshape(1, h, w, co).astype(y_ref.dtype)    # bf16 writeback
    stat_ref[0, 0:1, :] = jnp.sum(acc, axis=0, keepdims=True)    # f32 partial sum
    stat_ref[0, 1:2, :] = jnp.sum(acc * acc, axis=0, keepdims=True)


def _conv_stats_kernel(x_ref, w_ref, y_ref, stat_ref):
    """conv1: cast the f32 input tile to bf16 in VMEM, then conv + stats."""
    _conv3x3_body(x_ref[0].astype(jnp.bfloat16), w_ref, y_ref, stat_ref)


def _bnrelu_conv_stats_kernel(y1_ref, scale_ref, shift_ref, w_ref, y_ref, stat_ref):
    """Fused relu(bn1(y1)) (f32 VPU math) feeding conv2 + stats, all in VMEM."""
    out1 = jnp.maximum(
        y1_ref[0].astype(jnp.float32) * scale_ref[...] + shift_ref[...], 0.0)
    _conv3x3_body(out1.astype(jnp.bfloat16), w_ref, y_ref, stat_ref)


def _bn_add_relu_kernel(y_ref, scale_ref, shift_ref, res_ref, out_ref):
    """out = relu(bn2(y2) + residual); all elementwise math in f32."""
    v = y_ref[...].astype(jnp.float32) * scale_ref[...] + shift_ref[...] + res_ref[...]
    out_ref[...] = jnp.maximum(v, 0.0)


# ------------------------------ wrappers --------------------------------------
def _compiler_params(per_step_bytes):
    """Generation-aware VMEM limit: scale with block bytes, clamp to device VMEM."""
    try:
        cap = pltpu.get_tpu_info().vmem_capacity_bytes
    except Exception:  # best-effort query; fall back to a conservative default
        cap = 128 * 1024 * 1024
    limit = int(min(max(2 * per_step_bytes + (16 << 20), 32 << 20), cap - (16 << 20)))
    return pltpu.CompilerParams(
        dimension_semantics=("parallel",),
        vmem_limit_bytes=limit,
    )


def _conv1_with_stats(x_cp, w_packed):
    """x_cp: (N,H,W,Ci) f32 channel-padded; w_packed: (3, 3*Ci, Co) bf16."""
    n, h, w, ci = x_cp.shape
    co = w_packed.shape[-1]
    blk = (h * w * ci * 4 + 3 * 3 * ci * co * 2 + h * w * co * 2 + 2 * co * 4)
    scratch = (h + 2) * w * 3 * ci * 2 * 2 + h * w * co * 4 * 2
    return pl.pallas_call(
        _conv_stats_kernel,
        out_shape=(jax.ShapeDtypeStruct((n, h, w, co), jnp.bfloat16),
                   jax.ShapeDtypeStruct((n, 2, co), jnp.float32)),
        grid=(n,),
        in_specs=[pl.BlockSpec((1, h, w, ci), lambda i: (i, 0, 0, 0)),
                  pl.BlockSpec((3, 3 * ci, co), lambda i: (0, 0, 0))],
        out_specs=(pl.BlockSpec((1, h, w, co), lambda i: (i, 0, 0, 0)),
                   pl.BlockSpec((1, 2, co), lambda i: (i, 0, 0))),
        compiler_params=_compiler_params(blk + scratch),
    )(x_cp, w_packed)


def _bnrelu_conv2_with_stats(y1, scale1, shift1, w_packed):
    """Fused relu(bn1(y1)) + conv2 + stats.  y1 is the bf16 conv1 output."""
    n, h, w, ci = y1.shape
    co = w_packed.shape[-1]
    blk = (h * w * ci * 2 + 2 * ci * 4 + 3 * 3 * ci * co * 2
           + h * w * co * 2 + 2 * co * 4)
    scratch = h * w * ci * 4 + (h + 2) * w * 3 * ci * 2 * 2 + h * w * co * 4 * 2
    return pl.pallas_call(
        _bnrelu_conv_stats_kernel,
        out_shape=(jax.ShapeDtypeStruct((n, h, w, co), jnp.bfloat16),
                   jax.ShapeDtypeStruct((n, 2, co), jnp.float32)),
        grid=(n,),
        in_specs=[pl.BlockSpec((1, h, w, ci), lambda i: (i, 0, 0, 0)),
                  pl.BlockSpec((1, ci), lambda i: (0, 0)),
                  pl.BlockSpec((1, ci), lambda i: (0, 0)),
                  pl.BlockSpec((3, 3 * ci, co), lambda i: (0, 0, 0))],
        out_specs=(pl.BlockSpec((1, h, w, co), lambda i: (i, 0, 0, 0)),
                   pl.BlockSpec((1, 2, co), lambda i: (i, 0, 0))),
        compiler_params=_compiler_params(blk + scratch),
    )(y1, scale1, shift1, w_packed)


def _bn_add_relu(y2, scale2, shift2, residual):
    """out = relu(bn2(y2) + residual), tiled over the batch axis."""
    n, h, w, co = y2.shape
    blk = h * w * co * 2 + 2 * co * 4 + h * w * co * 4 + h * w * co * 4
    return pl.pallas_call(
        _bn_add_relu_kernel,
        out_shape=jax.ShapeDtypeStruct((n, h, w, co), jnp.float32),
        grid=(n,),
        in_specs=[pl.BlockSpec((1, h, w, co), lambda i: (i, 0, 0, 0)),
                  pl.BlockSpec((1, co), lambda i: (0, 0)),
                  pl.BlockSpec((1, co), lambda i: (0, 0)),
                  pl.BlockSpec((1, h, w, co), lambda i: (i, 0, 0, 0))],
        out_specs=pl.BlockSpec((1, h, w, co), lambda i: (i, 0, 0, 0)),
        compiler_params=_compiler_params(blk),
    )(y2, scale2, shift2, residual)


def _bn_affine(stats, count, gamma_p, beta_p):
    """Tiny XLA reduce of the per-tile partials -> per-channel scale/shift (f32)."""
    s = jnp.sum(stats, axis=0)                                # (2, Co)
    mean = s[0] / count
    var = jnp.maximum(s[1] / count - mean * mean, 0.0)        # clamp cancellation
    inv = jax.lax.rsqrt(var + EPS)
    scale = gamma_p * inv
    shift = beta_p - mean * scale
    return (scale.reshape(1, -1).astype(jnp.float32),
            shift.reshape(1, -1).astype(jnp.float32))


def _pack_weight(w_hwio, ci_p, co_p):
    """(3,3,Ci,Co) HWIO -> (3, 3*Ci_p, Co_p) bf16 with zero channel padding."""
    _, _, ci, co = w_hwio.shape
    w_pad = jnp.zeros((3, 3, ci_p, co_p), jnp.float32).at[:, :, :ci, :co].set(w_hwio)
    return w_pad.reshape(3, 3 * ci_p, co_p).astype(jnp.bfloat16)


def _pad_vec(v, c_p, fill):
    c = v.shape[0]
    return jnp.full((c_p,), fill, jnp.float32).at[:c].set(v.astype(jnp.float32))


def basic_block_forward(x_nchw, params):
    """Pallas BasicBlock.forward (stride=1, downsample=None, BN training mode)."""
    n, c_in, h, w = x_nchw.shape
    planes = params["w1"].shape[-1]
    ci_p = _round_up(c_in, LANE)
    co_p = _round_up(planes, LANE)

    # NCHW -> NHWC with lane-dense (128-multiple) channel padding, single XLA pass.
    # The f32 copy doubles as the residual operand; conv1 casts to bf16 in-kernel.
    x_nhwc = jnp.transpose(x_nchw, (0, 2, 3, 1))
    x_cp = jnp.pad(x_nhwc, ((0, 0), (0, 0), (0, 0), (0, ci_p - c_in)))

    w1 = _pack_weight(params["w1"], ci_p, co_p)
    w2 = _pack_weight(params["w2"], co_p, co_p)
    g1 = _pad_vec(params["g1"], co_p, 1.0)
    b1 = _pad_vec(params["b1"], co_p, 0.0)
    g2 = _pad_vec(params["g2"], co_p, 1.0)
    b2 = _pad_vec(params["b2"], co_p, 0.0)

    count = n * h * w

    # Pass 1: conv1 (+ BN1 batch-stat partials), bf16 intermediate.
    y1, stats1 = _conv1_with_stats(x_cp, w1)
    scale1, shift1 = _bn_affine(stats1, count, g1, b1)

    # Pass 2: fused relu(bn1(.)) + conv2 (+ BN2 batch-stat partials), bf16 out.
    y2, stats2 = _bnrelu_conv2_with_stats(y1, scale1, shift1, w2)
    scale2, shift2 = _bn_affine(stats2, count, g2, b2)

    # Pass 3: bn2 + residual add + ReLU (f32 output).
    out = _bn_add_relu(y2, scale2, shift2, x_cp)

    return jnp.transpose(out[..., :planes], (0, 3, 1, 2))  # NHWC -> NCHW


# ---------------- pure-JAX f32 reference (for correctness check) -------------
def _conv3x3_ref(x_nchw, w_oihw):
    return jax.lax.conv_general_dilated(
        x_nchw, w_oihw, window_strides=(1, 1), padding=((1, 1), (1, 1)),
        dimension_numbers=("NCHW", "OIHW", "NCHW"))


def _bn_ref(x_nchw, gamma, beta):
    mean = jnp.mean(x_nchw, axis=(0, 2, 3), keepdims=True)
    var = jnp.mean((x_nchw - mean) ** 2, axis=(0, 2, 3), keepdims=True)
    return ((x_nchw - mean) * jax.lax.rsqrt(var + EPS)
            * gamma.reshape(1, -1, 1, 1) + beta.reshape(1, -1, 1, 1))


def basic_block_ref(x_nchw, params):
    w1_oihw = jnp.transpose(params["w1"], (3, 2, 0, 1))  # HWIO -> OIHW
    w2_oihw = jnp.transpose(params["w2"], (3, 2, 0, 1))
    out = jax.nn.relu(_bn_ref(_conv3x3_ref(x_nchw, w1_oihw), params["g1"], params["b1"]))
    out = _bn_ref(_conv3x3_ref(out, w2_oihw), params["g2"], params["b2"])
    return jax.nn.relu(out + x_nchw)


if __name__ == "__main__":
    # Small shapes: inplanes = planes = 4, batch = 2, spatial = 16.
    N, C, H, W = 2, 4, 16, 16
    planes = C

    key = jax.random.PRNGKey(0)
    k_x, k_w1, k_w2 = jax.random.split(key, 3)

    x = jax.random.normal(k_x, (N, C, H, W), jnp.float32)
    params = {
        "w1": jax.random.normal(k_w1, (3, 3, C, planes), jnp.float32) * 0.1,  # HWIO
        "g1": jnp.ones((planes,), jnp.float32),
        "b1": jnp.zeros((planes,), jnp.float32),
        "w2": jax.random.normal(k_w2, (3, 3, planes, planes), jnp.float32) * 0.1,
        "g2": jnp.ones((planes,), jnp.float32),
        "b2": jnp.zeros((planes,), jnp.float32),
    }

    fwd = jax.jit(basic_block_forward)
    out = jax.block_until_ready(fwd(x, params))
    ref = jax.block_until_ready(basic_block_ref(x, params))

    assert out.shape == (N, planes, H, W), out.shape
    max_err = float(jnp.max(jnp.abs(out - ref)))
    # bf16 MXU operands + bf16 conv intermediates vs f32 reference -> relaxed tol.
    assert max_err < 1e-1, f"max abs err {max_err}"

    print("KERNEL_OK")
</pallas_src>

<mosaic_0001>
module attributes {stable_mosaic.version = 11 : i64} {
  func.func @_conv_stats_kernel(%arg0: i32, %arg1: memref<1x16x16x128xf32, #tpu.memory_space<vmem>>, %arg2: memref<3x384x128xbf16, #tpu.memory_space<vmem>>, %arg3: memref<1x16x16x128xbf16, #tpu.memory_space<vmem>>, %arg4: memref<1x2x128xf32, #tpu.memory_space<vmem>>) attributes {dimension_semantics = [#tpu.dimension_semantics<parallel>], iteration_bounds = array<i64: 2>, scalar_prefetch = 0 : i64, scratch_operands = 0 : i64, tpu.core_type = #tpu.core_type<tc>, window_params = [{transform_indices = @transform_0, window_bounds = array<i64: 1, 16, 16, 128>}, {pipeline_mode = #tpu.pipeline_mode<synchronous>, transform_indices = @transform_1, window_bounds = array<i64: 3, 384, 128>}, {transform_indices = @transform_2, window_bounds = array<i64: 1, 16, 16, 128>}, {transform_indices = @transform_3, window_bounds = array<i64: 1, 2, 128>}]} {
    %c0 = arith.constant 0 : index
    %c0_0 = arith.constant 0 : index
    %c0_1 = arith.constant 0 : index
    %c0_2 = arith.constant 0 : index
    %0 = vector.load %arg1[%c0, %c0_0, %c0_1, %c0_2] : memref<1x16x16x128xf32, #tpu.memory_space<vmem>>, vector<1x16x16x128xf32>
    %1 = vector.shape_cast %0 : vector<1x16x16x128xf32> to vector<16x16x128xf32>
    %2 = arith.truncf %1 : vector<16x16x128xf32> to vector<16x16x128xbf16>
    %cst = arith.constant 0.000000e+00 : bf16
    %3 = vector.broadcast %cst : bf16 to vector<16x1x128xbf16>
    %4 = vector.extract_strided_slice %2 {offsets = [0, 0, 0], sizes = [16, 15, 128], strides = [1, 1, 1]} : vector<16x16x128xbf16> to vector<16x15x128xbf16>
    %5 = tpu.concatenate %3, %4 in 1 : vector<16x1x128xbf16>, vector<16x15x128xbf16> -> vector<16x16x128xbf16>
    %6 = vector.extract_strided_slice %2 {offsets = [0, 1, 0], sizes = [16, 15, 128], strides = [1, 1, 1]} : vector<16x16x128xbf16> to vector<16x15x128xbf16>
    %7 = tpu.concatenate %6, %3 in 1 : vector<16x15x128xbf16>, vector<16x1x128xbf16> -> vector<16x16x128xbf16>
    %8 = tpu.concatenate %5, %2, %7 in 2 : vector<16x16x128xbf16>, vector<16x16x128xbf16>, vector<16x16x128xbf16> -> vector<16x16x384xbf16>
    %cst_3 = arith.constant 0.000000e+00 : bf16
    %9 = vector.broadcast %cst_3 : bf16 to vector<1x16x384xbf16>
    %10 = tpu.concatenate %9, %8, %9 in 0 : vector<1x16x384xbf16>, vector<16x16x384xbf16>, vector<1x16x384xbf16> -> vector<18x16x384xbf16>
    %11 = vector.extract_strided_slice %10 {offsets = [0, 0, 0], sizes = [16, 16, 384], strides = [1, 1, 1]} : vector<18x16x384xbf16> to vector<16x16x384xbf16>
    %12 = vector.shape_cast %11 : vector<16x16x384xbf16> to vector<256x384xbf16>
    %c0_4 = arith.constant 0 : index
    %c0_5 = arith.constant 0 : index
    %c0_6 = arith.constant 0 : index
    %13 = vector.load %arg2[%c0_4, %c0_5, %c0_6] : memref<3x384x128xbf16, #tpu.memory_space<vmem>>, vector<1x384x128xbf16>
    %14 = vector.shape_cast %13 : vector<1x384x128xbf16> to vector<384x128xbf16>
    %cst_7 = arith.constant dense<0.000000e+00> : vector<256x128xf32>
    %15 = tpu.matmul %12, %14, %cst_7 {dimension_numbers = #tpu.dot_dimension_numbers<[1], [0], [0], [1], [0, 0, 1, 1], [], []>} : vector<256x384xbf16>, vector<384x128xbf16>, vector<256x128xf32> -> vector<256x128xf32>
    %16 = vector.extract_strided_slice %10 {offsets = [1, 0, 0], sizes = [16, 16, 384], strides = [1, 1, 1]} : vector<18x16x384xbf16> to vector<16x16x384xbf16>
    %17 = vector.shape_cast %16 : vector<16x16x384xbf16> to vector<256x384xbf16>
    %c1 = arith.constant 1 : index
    %c0_8 = arith.constant 0 : index
    %c0_9 = arith.constant 0 : index
    %18 = vector.load %arg2[%c1, %c0_8, %c0_9] : memref<3x384x128xbf16, #tpu.memory_space<vmem>>, vector<1x384x128xbf16>
    %19 = vector.shape_cast %18 : vector<1x384x128xbf16> to vector<384x128xbf16>
    %cst_10 = arith.constant dense<0.000000e+00> : vector<256x128xf32>
    %20 = tpu.matmul %17, %19, %cst_10 {dimension_numbers = #tpu.dot_dimension_numbers<[1], [0], [0], [1], [0, 0, 1, 1], [], []>} : vector<256x384xbf16>, vector<384x128xbf16>, vector<256x128xf32> -> vector<256x128xf32>
    %21 = arith.addf %15, %20 : vector<256x128xf32>
    %22 = vector.extract_strided_slice %10 {offsets = [2, 0, 0], sizes = [16, 16, 384], strides = [1, 1, 1]} : vector<18x16x384xbf16> to vector<16x16x384xbf16>
    %23 = vector.shape_cast %22 : vector<16x16x384xbf16> to vector<256x384xbf16>
    %c2 = arith.constant 2 : index
    %c0_11 = arith.constant 0 : index
    %c0_12 = arith.constant 0 : index
    %24 = vector.load %arg2[%c2, %c0_11, %c0_12] : memref<3x384x128xbf16, #tpu.memory_space<vmem>>, vector<1x384x128xbf16>
    %25 = vector.shape_cast %24 : vector<1x384x128xbf16> to vector<384x128xbf16>
    %cst_13 = arith.constant dense<0.000000e+00> : vector<256x128xf32>
    %26 = tpu.matmul %23, %25, %cst_13 {dimension_numbers = #tpu.dot_dimension_numbers<[1], [0], [0], [1], [0, 0, 1, 1], [], []>} : vector<256x384xbf16>, vector<384x128xbf16>, vector<256x128xf32> -> vector<256x128xf32>
    %27 = arith.addf %21, %26 : vector<256x128xf32>
    %28 = vector.shape_cast %27 : vector<256x128xf32> to vector<1x16x16x128xf32>
    %29 = arith.truncf %28 : vector<1x16x16x128xf32> to vector<1x16x16x128xbf16>
    %c0_14 = arith.constant 0 : index
    %c0_15 = arith.constant 0 : index
    %c0_16 = arith.constant 0 : index
    %c0_17 = arith.constant 0 : index
    %30 = vector.load %arg3[%c0_14, %c0_15, %c0_16, %c0_17] : memref<1x16x16x128xbf16, #tpu.memory_space<vmem>>, vector<1x16x16x128xbf16>
    tpu.vector_store %arg3[%c0_14, %c0_15, %c0_16, %c0_17], %29 {strides = array<i32>} : memref<1x16x16x128xbf16, #tpu.memory_space<vmem>>, vector<1x16x16x128xbf16>,
    %cst_18 = arith.constant dense<0.000000e+00> : vector<128xf32>
    %31 = vector.multi_reduction <add>, %27, %cst_18 [0] : vector<256x128xf32> to vector<128xf32>
    %32 = vector.shape_cast %31 : vector<128xf32> to vector<1x128xf32>
    %c0_19 = arith.constant 0 : index
    %c0_20 = arith.constant 0 : index
    %c0_21 = arith.constant 0 : index
    %33 = vector.load %arg4[%c0_19, %c0_20, %c0_21] : memref<1x2x128xf32, #tpu.memory_space<vmem>>, vector<1x1x128xf32>
    %34 = vector.shape_cast %33 : vector<1x1x128xf32> to vector<1x128xf32>
    %35 = vector.shape_cast %32 : vector<1x128xf32> to vector<1x1x128xf32>
    tpu.vector_store %arg4[%c0_19, %c0_20, %c0_21], %35 {strides = array<i32>} : memref<1x2x128xf32, #tpu.memory_space<vmem>>, vector<1x1x128xf32>,
    %36 = arith.mulf %27, %27 : vector<256x128xf32>
    %cst_22 = arith.constant dense<0.000000e+00> : vector<128xf32>
    %37 = vector.multi_reduction <add>, %36, %cst_22 [0] : vector<256x128xf32> to vector<128xf32>
    %38 = vector.shape_cast %37 : vector<128xf32> to vector<1x128xf32>
    %c0_23 = arith.constant 0 : index
    %c1_24 = arith.constant 1 : index
    %c0_25 = arith.constant 0 : index
    %39 = vector.load %arg4[%c0_23, %c1_24, %c0_25] : memref<1x2x128xf32, #tpu.memory_space<vmem>>, vector<1x1x128xf32>
    %40 = vector.shape_cast %39 : vector<1x1x128xf32> to vector<1x128xf32>
    %41 = vector.shape_cast %38 : vector<1x128xf32> to vector<1x1x128xf32>
    tpu.vector_store %arg4[%c0_23, %c1_24, %c0_25], %41 {strides = array<i32>} : memref<1x2x128xf32, #tpu.memory_space<vmem>>, vector<1x1x128xf32>,
    return
  }
  func.func @transform_0(%arg0: i32) -> (i32, i32, i32, i32) {
    %c0_i32 = arith.constant 0 : i32
    %c0_i32_0 = arith.constant 0 : i32
    %c0_i32_1 = arith.constant 0 : i32
    %c0_i32_2 = arith.constant 0 : i32
    return %arg0, %c0_i32, %c0_i32_0, %c0_i32_1 : i32, i32, i32, i32
  }
  func.func @transform_1(%arg0: i32) -> (i32, i32, i32) {
    %c0_i32 = arith.constant 0 : i32
    %c0_i32_0 = arith.constant 0 : i32
    %c0_i32_1 = arith.constant 0 : i32
    %c0_i32_2 = arith.constant 0 : i32
    return %c0_i32, %c0_i32_0, %c0_i32_1 : i32, i32, i32
  }
  func.func @transform_2(%arg0: i32) -> (i32, i32, i32, i32) {
    %c0_i32 = arith.constant 0 : i32
    %c0_i32_0 = arith.constant 0 : i32
    %c0_i32_1 = arith.constant 0 : i32
    %c0_i32_2 = arith.constant 0 : i32
    return %arg0, %c0_i32, %c0_i32_0, %c0_i32_1 : i32, i32, i32, i32
  }
  func.func @transform_3(%arg0: i32) -> (i32, i32, i32) {
    %c0_i32 = arith.constant 0 : i32
    %c0_i32_0 = arith.constant 0 : i32
    %c0_i32_1 = arith.constant 0 : i32
    return %arg0, %c0_i32, %c0_i32_0 : i32, i32, i32
  }
}

module attributes {stable_mosaic.version = 11 : i64} {
  func.func @_bn_add_relu_kernel(%arg0: i32, %arg1: memref<1x16x16x128xbf16, #tpu.memory_space<vmem>>, %arg2: memref<1x128xf32, #tpu.memory_space<vmem>>, %arg3: memref<1x128xf32, #tpu.memory_space<vmem>>, %arg4: memref<1x16x16x128xf32, #tpu.memory_space<vmem>>, %arg5: memref<1x16x16x128xf32, #tpu.memory_space<vmem>>) attributes {dimension_semantics = [#tpu.dimension_semantics<parallel>], iteration_bounds = array<i64: 2>, scalar_prefetch = 0 : i64, scratch_operands = 0 : i64, tpu.core_type = #tpu.core_type<tc>, window_params = [{transform_indices = @transform_0, window_bounds = array<i64: 1, 16, 16, 128>}, {pipeline_mode = #tpu.pipeline_mode<synchronous>, transform_indices = @transform_1, window_bounds = array<i64: 1, 128>}, {pipeline_mode = #tpu.pipeline_mode<synchronous>, transform_indices = @transform_2, window_bounds = array<i64: 1, 128>}, {transform_indices = @transform_3, window_bounds = array<i64: 1, 16, 16, 128>}, {transform_indices = @transform_4, window_bounds = array<i64: 1, 16, 16, 128>}]} {
    %c0 = arith.constant 0 : index
    %c0_0 = arith.constant 0 : index
    %c0_1 = arith.constant 0 : index
    %c0_2 = arith.constant 0 : index
    %0 = vector.load %arg1[%c0, %c0_0, %c0_1, %c0_2] : memref<1x16x16x128xbf16, #tpu.memory_space<vmem>>, vector<1x16x16x128xbf16>
    %1 = arith.extf %0 : vector<1x16x16x128xbf16> to vector<1x16x16x128xf32>
    %c0_3 = arith.constant 0 : index
    %c0_4 = arith.constant 0 : index
    %2 = vector.load %arg2[%c0_3, %c0_4] : memref<1x128xf32, #tpu.memory_space<vmem>>, vector<1x128xf32>
    %3 = vector.shape_cast %2 : vector<1x128xf32> to vector<1x1x1x128xf32>
    %4 = vector.broadcast %3 : vector<1x1x1x128xf32> to vector<1x16x16x128xf32>
    %5 = arith.mulf %1, %4 : vector<1x16x16x128xf32>
    %c0_5 = arith.constant 0 : index
    %c0_6 = arith.constant 0 : index
    %6 = vector.load %arg3[%c0_5, %c0_6] : memref<1x128xf32, #tpu.memory_space<vmem>>, vector<1x128xf32>
    %7 = vector.shape_cast %6 : vector<1x128xf32> to vector<1x1x1x128xf32>
    %8 = vector.broadcast %7 : vector<1x1x1x128xf32> to vector<1x16x16x128xf32>
    %9 = arith.addf %5, %8 : vector<1x16x16x128xf32>
    %c0_7 = arith.constant 0 : index
    %c0_8 = arith.constant 0 : index
    %c0_9 = arith.constant 0 : index
    %c0_10 = arith.constant 0 : index
    %10 = vector.load %arg4[%c0_7, %c0_8, %c0_9, %c0_10] : memref<1x16x16x128xf32, #tpu.memory_space<vmem>>, vector<1x16x16x128xf32>
    %11 = arith.addf %9, %10 : vector<1x16x16x128xf32>
    %cst = arith.constant 0.000000e+00 : f32
    %12 = vector.broadcast %cst : f32 to vector<1x16x16x128xf32>
    %13 = arith.maximumf %11, %12 : vector<1x16x16x128xf32>
    %c0_11 = arith.constant 0 : index
    %c0_12 = arith.constant 0 : index
    %c0_13 = arith.constant 0 : index
    %c0_14 = arith.constant 0 : index
    %14 = vector.load %arg5[%c0_11, %c0_12, %c0_13, %c0_14] : memref<1x16x16x128xf32, #tpu.memory_space<vmem>>, vector<1x16x16x128xf32>
    tpu.vector_store %arg5[%c0_11, %c0_12, %c0_13, %c0_14], %13 {strides = array<i32>} : memref<1x16x16x128xf32, #tpu.memory_space<vmem>>, vector<1x16x16x128xf32>,
    return
  }
  func.func @transform_0(%arg0: i32) -> (i32, i32, i32, i32) {
    %c0_i32 = arith.constant 0 : i32
    %c0_i32_0 = arith.constant 0 : i32
    %c0_i32_1 = arith.constant 0 : i32
    %c0_i32_2 = arith.constant 0 : i32
    return %arg0, %c0_i32, %c0_i32_0, %c0_i32_1 : i32, i32, i32, i32
  }
  func.func @transform_1(%arg0: i32) -> (i32, i32) {
    %c0_i32 = arith.constant 0 : i32
    %c0_i32_0 = arith.constant 0 : i32
    %c0_i32_1 = arith.constant 0 : i32
    return %c0_i32, %c0_i32_0 : i32, i32
  }
  func.func @transform_2(%arg0: i32) -> (i32, i32) {
    %c0_i32 = arith.constant 0 : i32
    %c0_i32_0 = arith.constant 0 : i32
    %c0_i32_1 = arith.constant 0 : i32
    return %c0_i32, %c0_i32_0 : i32, i32
  }
  func.func @transform_3(%arg0: i32) -> (i32, i32, i32, i32) {
    %c0_i32 = arith.constant 0 : i32
    %c0_i32_0 = arith.constant 0 : i32
    %c0_i32_1 = arith.constant 0 : i32
    %c0_i32_2 = arith.constant 0 : i32
    return %arg0, %c0_i32, %c0_i32_0, %c0_i32_1 : i32, i32, i32, i32
  }
  func.func @transform_4(%arg0: i32) -> (i32, i32, i32, i32) {
    %c0_i32 = arith.constant 0 : i32
    %c0_i32_0 = arith.constant 0 : i32
    %c0_i32_1 = arith.constant 0 : i32
    %c0_i32_2 = arith.constant 0 : i32
    return %arg0, %c0_i32, %c0_i32_0, %c0_i32_1 : i32, i32, i32, i32
  }
}

module attributes {stable_mosaic.version = 11 : i64} {
  func.func @_bnrelu_conv_stats_kernel(%arg0: i32, %arg1: memref<1x16x16x128xbf16, #tpu.memory_space<vmem>>, %arg2: memref<1x128xf32, #tpu.memory_space<vmem>>, %arg3: memref<1x128xf32, #tpu.memory_space<vmem>>, %arg4: memref<3x384x128xbf16, #tpu.memory_space<vmem>>, %arg5: memref<1x16x16x128xbf16, #tpu.memory_space<vmem>>, %arg6: memref<1x2x128xf32, #tpu.memory_space<vmem>>) attributes {dimension_semantics = [#tpu.dimension_semantics<parallel>], iteration_bounds = array<i64: 2>, scalar_prefetch = 0 : i64, scratch_operands = 0 : i64, tpu.core_type = #tpu.core_type<tc>, window_params = [{transform_indices = @transform_0, window_bounds = array<i64: 1, 16, 16, 128>}, {pipeline_mode = #tpu.pipeline_mode<synchronous>, transform_indices = @transform_1, window_bounds = array<i64: 1, 128>}, {pipeline_mode = #tpu.pipeline_mode<synchronous>, transform_indices = @transform_2, window_bounds = array<i64: 1, 128>}, {pipeline_mode = #tpu.pipeline_mode<synchronous>, transform_indices = @transform_3, window_bounds = array<i64: 3, 384, 128>}, {transform_indices = @transform_4, window_bounds = array<i64: 1, 16, 16, 128>}, {transform_indices = @transform_5, window_bounds = array<i64: 1, 2, 128>}]} {
    %c0 = arith.constant 0 : index
    %c0_0 = arith.constant 0 : index
    %c0_1 = arith.constant 0 : index
    %c0_2 = arith.constant 0 : index
    %0 = vector.load %arg1[%c0, %c0_0, %c0_1, %c0_2] : memref<1x16x16x128xbf16, #tpu.memory_space<vmem>>, vector<1x16x16x128xbf16>
    %1 = vector.shape_cast %0 : vector<1x16x16x128xbf16> to vector<16x16x128xbf16>
    %2 = arith.extf %1 : vector<16x16x128xbf16> to vector<16x16x128xf32>
    %c0_3 = arith.constant 0 : index
    %c0_4 = arith.constant 0 : index
    %3 = vector.load %arg2[%c0_3, %c0_4] : memref<1x128xf32, #tpu.memory_space<vmem>>, vector<1x128xf32>
    %4 = vector.shape_cast %3 : vector<1x128xf32> to vector<1x1x128xf32>
    %5 = vector.broadcast %4 : vector<1x1x128xf32> to vector<16x16x128xf32>
    %6 = arith.mulf %2, %5 : vector<16x16x128xf32>
    %c0_5 = arith.constant 0 : index
    %c0_6 = arith.constant 0 : index
    %7 = vector.load %arg3[%c0_5, %c0_6] : memref<1x128xf32, #tpu.memory_space<vmem>>, vector<1x128xf32>
    %8 = vector.shape_cast %7 : vector<1x128xf32> to vector<1x1x128xf32>
    %9 = vector.broadcast %8 : vector<1x1x128xf32> to vector<16x16x128xf32>
    %10 = arith.addf %6, %9 : vector<16x16x128xf32>
    %cst = arith.constant 0.000000e+00 : f32
    %11 = vector.broadcast %cst : f32 to vector<16x16x128xf32>
    %12 = arith.maximumf %10, %11 : vector<16x16x128xf32>
    %13 = arith.truncf %12 : vector<16x16x128xf32> to vector<16x16x128xbf16>
    %cst_7 = arith.constant 0.000000e+00 : bf16
    %14 = vector.broadcast %cst_7 : bf16 to vector<16x1x128xbf16>
    %15 = vector.extract_strided_slice %13 {offsets = [0, 0, 0], sizes = [16, 15, 128], strides = [1, 1, 1]} : vector<16x16x128xbf16> to vector<16x15x128xbf16>
    %16 = tpu.concatenate %14, %15 in 1 : vector<16x1x128xbf16>, vector<16x15x128xbf16> -> vector<16x16x128xbf16>
    %17 = vector.extract_strided_slice %13 {offsets = [0, 1, 0], sizes = [16, 15, 128], strides = [1, 1, 1]} : vector<16x16x128xbf16> to vector<16x15x128xbf16>
    %18 = tpu.concatenate %17, %14 in 1 : vector<16x15x128xbf16>, vector<16x1x128xbf16> -> vector<16x16x128xbf16>
    %19 = tpu.concatenate %16, %13, %18 in 2 : vector<16x16x128xbf16>, vector<16x16x128xbf16>, vector<16x16x128xbf16> -> vector<16x16x384xbf16>
    %cst_8 = arith.constant 0.000000e+00 : bf16
    %20 = vector.broadcast %cst_8 : bf16 to vector<1x16x384xbf16>
    %21 = tpu.concatenate %20, %19, %20 in 0 : vector<1x16x384xbf16>, vector<16x16x384xbf16>, vector<1x16x384xbf16> -> vector<18x16x384xbf16>
    %22 = vector.extract_strided_slice %21 {offsets = [0, 0, 0], sizes = [16, 16, 384], strides = [1, 1, 1]} : vector<18x16x384xbf16> to vector<16x16x384xbf16>
    %23 = vector.shape_cast %22 : vector<16x16x384xbf16> to vector<256x384xbf16>
    %c0_9 = arith.constant 0 : index
    %c0_10 = arith.constant 0 : index
    %c0_11 = arith.constant 0 : index
    %24 = vector.load %arg4[%c0_9, %c0_10, %c0_11] : memref<3x384x128xbf16, #tpu.memory_space<vmem>>, vector<1x384x128xbf16>
    %25 = vector.shape_cast %24 : vector<1x384x128xbf16> to vector<384x128xbf16>
    %cst_12 = arith.constant dense<0.000000e+00> : vector<256x128xf32>
    %26 = tpu.matmul %23, %25, %cst_12 {dimension_numbers = #tpu.dot_dimension_numbers<[1], [0], [0], [1], [0, 0, 1, 1], [], []>} : vector<256x384xbf16>, vector<384x128xbf16>, vector<256x128xf32> -> vector<256x128xf32>
    %27 = vector.extract_strided_slice %21 {offsets = [1, 0, 0], sizes = [16, 16, 384], strides = [1, 1, 1]} : vector<18x16x384xbf16> to vector<16x16x384xbf16>
    %28 = vector.shape_cast %27 : vector<16x16x384xbf16> to vector<256x384xbf16>
    %c1 = arith.constant 1 : index
    %c0_13 = arith.constant 0 : index
    %c0_14 = arith.constant 0 : index
    %29 = vector.load %arg4[%c1, %c0_13, %c0_14] : memref<3x384x128xbf16, #tpu.memory_space<vmem>>, vector<1x384x128xbf16>
    %30 = vector.shape_cast %29 : vector<1x384x128xbf16> to vector<384x128xbf16>
    %cst_15 = arith.constant dense<0.000000e+00> : vector<256x128xf32>
    %31 = tpu.matmul %28, %30, %cst_15 {dimension_numbers = #tpu.dot_dimension_numbers<[1], [0], [0], [1], [0, 0, 1, 1], [], []>} : vector<256x384xbf16>, vector<384x128xbf16>, vector<256x128xf32> -> vector<256x128xf32>
    %32 = arith.addf %26, %31 : vector<256x128xf32>
    %33 = vector.extract_strided_slice %21 {offsets = [2, 0, 0], sizes = [16, 16, 384], strides = [1, 1, 1]} : vector<18x16x384xbf16> to vector<16x16x384xbf16>
    %34 = vector.shape_cast %33 : vector<16x16x384xbf16> to vector<256x384xbf16>
    %c2 = arith.constant 2 : index
    %c0_16 = arith.constant 0 : index
    %c0_17 = arith.constant 0 : index
    %35 = vector.load %arg4[%c2, %c0_16, %c0_17] : memref<3x384x128xbf16, #tpu.memory_space<vmem>>, vector<1x384x128xbf16>
    %36 = vector.shape_cast %35 : vector<1x384x128xbf16> to vector<384x128xbf16>
    %cst_18 = arith.constant dense<0.000000e+00> : vector<256x128xf32>
    %37 = tpu.matmul %34, %36, %cst_18 {dimension_numbers = #tpu.dot_dimension_numbers<[1], [0], [0], [1], [0, 0, 1, 1], [], []>} : vector<256x384xbf16>, vector<384x128xbf16>, vector<256x128xf32> -> vector<256x128xf32>
    %38 = arith.addf %32, %37 : vector<256x128xf32>
    %39 = vector.shape_cast %38 : vector<256x128xf32> to vector<1x16x16x128xf32>
    %40 = arith.truncf %39 : vector<1x16x16x128xf32> to vector<1x16x16x128xbf16>
    %c0_19 = arith.constant 0 : index
    %c0_20 = arith.constant 0 : index
    %c0_21 = arith.constant 0 : index
    %c0_22 = arith.constant 0 : index
    %41 = vector.load %arg5[%c0_19, %c0_20, %c0_21, %c0_22] : memref<1x16x16x128xbf16, #tpu.memory_space<vmem>>, vector<1x16x16x128xbf16>
    tpu.vector_store %arg5[%c0_19, %c0_20, %c0_21, %c0_22], %40 {strides = array<i32>} : memref<1x16x16x128xbf16, #tpu.memory_space<vmem>>, vector<1x16x16x128xbf16>,
    %cst_23 = arith.constant dense<0.000000e+00> : vector<128xf32>
    %42 = vector.multi_reduction <add>, %38, %cst_23 [0] : vector<256x128xf32> to vector<128xf32>
    %43 = vector.shape_cast %42 : vector<128xf32> to vector<1x128xf32>
    %c0_24 = arith.constant 0 : index
    %c0_25 = arith.constant 0 : index
    %c0_26 = arith.constant 0 : index
    %44 = vector.load %arg6[%c0_24, %c0_25, %c0_26] : memref<1x2x128xf32, #tpu.memory_space<vmem>>, vector<1x1x128xf32>
    %45 = vector.shape_cast %44 : vector<1x1x128xf32> to vector<1x128xf32>
    %46 = vector.shape_cast %43 : vector<1x128xf32> to vector<1x1x128xf32>
    tpu.vector_store %arg6[%c0_24, %c0_25, %c0_26], %46 {strides = array<i32>} : memref<1x2x128xf32, #tpu.memory_space<vmem>>, vector<1x1x128xf32>,
    %47 = arith.mulf %38, %38 : vector<256x128xf32>
    %cst_27 = arith.constant dense<0.000000e+00> : vector<128xf32>
    %48 = vector.multi_reduction <add>, %47, %cst_27 [0] : vector<256x128xf32> to vector<128xf32>
    %49 = vector.shape_cast %48 : vector<128xf32> to vector<1x128xf32>
    %c0_28 = arith.constant 0 : index
    %c1_29 = arith.constant 1 : index
    %c0_30 = arith.constant 0 : index
    %50 = vector.load %arg6[%c0_28, %c1_29, %c0_30] : memref<1x2x128xf32, #tpu.memory_space<vmem>>, vector<1x1x128xf32>
    %51 = vector.shape_cast %50 : vector<1x1x128xf32> to vector<1x128xf32>
    %52 = vector.shape_cast %49 : vector<1x128xf32> to vector<1x1x128xf32>
    tpu.vector_store %arg6[%c0_28, %c1_29, %c0_30], %52 {strides = array<i32>} : memref<1x2x128xf32, #tpu.memory_space<vmem>>, vector<1x1x128xf32>,
    return
  }
  func.func @transform_0(%arg0: i32) -> (i32, i32, i32, i32) {
    %c0_i32 = arith.constant 0 : i32
    %c0_i32_0 = arith.constant 0 : i32
    %c0_i32_1 = arith.constant 0 : i32
    %c0_i32_2 = arith.constant 0 : i32
    return %arg0, %c0_i32, %c0_i32_0, %c0_i32_1 : i32, i32, i32, i32
  }
  func.func @transform_1(%arg0: i32) -> (i32, i32) {
    %c0_i32 = arith.constant 0 : i32
    %c0_i32_0 = arith.constant 0 : i32
    %c0_i32_1 = arith.constant 0 : i32
    return %c0_i32, %c0_i32_0 : i32, i32
  }
  func.func @transform_2(%arg0: i32) -> (i32, i32) {
    %c0_i32 = arith.constant 0 : i32
    %c0_i32_0 = arith.constant 0 : i32
    %c0_i32_1 = arith.constant 0 : i32
    return %c0_i32, %c0_i32_0 : i32, i32
  }
  func.func @transform_3(%arg0: i32) -> (i32, i32, i32) {
    %c0_i32 = arith.constant 0 : i32
    %c0_i32_0 = arith.constant 0 : i32
    %c0_i32_1 = arith.constant 0 : i32
    %c0_i32_2 = arith.constant 0 : i32
    return %c0_i32, %c0_i32_0, %c0_i32_1 : i32, i32, i32
  }
  func.func @transform_4(%arg0: i32) -> (i32, i32, i32, i32) {
    %c0_i32 = arith.constant 0 : i32
    %c0_i32_0 = arith.constant 0 : i32
    %c0_i32_1 = arith.constant 0 : i32
    %c0_i32_2 = arith.constant 0 : i32
    return %arg0, %c0_i32, %c0_i32_0, %c0_i32_1 : i32, i32, i32, i32
  }
  func.func @transform_5(%arg0: i32) -> (i32, i32, i32) {
    %c0_i32 = arith.constant 0 : i32
    %c0_i32_0 = arith.constant 0 : i32
    %c0_i32_1 = arith.constant 0 : i32
    return %arg0, %c0_i32, %c0_i32_0 : i32, i32, i32
  }
}

</mosaic_0001>

<bundles_post_ra>
// kernel: basic_block_forward.5
= control target key start
LH: loop header
LB: loop body
LE: loop exit
PB: predicated region body
PF: predicated region fallthrough
CT: control target
= control target key end

     0   :  { %s693_s15 = smov 0   ;;  %s881_s0 = inlined_call_operand.vmem [shape: bf16[2,16,16,128], index: 0, kind: input, shape index: {}]   ;;  %s882_s1 = inlined_call_operand.vmem [shape: f32[1,128], index: 1, kind: input, shape index: {}]   ;;  %s883_s2 = inlined_call_operand.vmem [shape: f32[1,128], index: 2, kind: input, shape index: {}]   ;;  %s884_s3 = inlined_call_operand.vmem [shape: f32[2,16,16,128], index: 3, kind: input, shape index: {}]   ;;  %s885_s4 = inlined_call_operand.vmem [shape: f32[2,16,16,128], index: 4, kind: output, shape index: {}]  }
   0x1 LB: > { %s555_s16 = sadd.s32 4294967295, %s666_s15   ;;  %p559_p0 = scmp.ge.s32.totalorder %s666_s15, 1  ;;  %s666_s15 = sphi %s693_s15, %s14_s15  }
   0x2   : > { %p172_p1 = scmp.lt.s32.totalorder %s666_s15, 3 }
   0x4   : > { %p173_p2 = pnand %p559_p0, %p172_p1 }
   0x5   : > { %p203_p3 = scmp.lt.s32.totalorder (!%p173_p2), %s555_s16, 1  ;;  %v714_v1 = vld [vmem:[%s882_s1] ss:$0 sm:$0xff] (!%p173_p2) }
   0x6   : > { %176 = sbr.rel (%p173_p2) target bundleno = 60 (0x3c), region = 36  ;;  %v727_v5 = vld [vmem:[%s883_s2] ss:$0 sm:$0xff] (!%p173_p2) }
   0xd   : > { %s887_s16 = smov (!%p203_p3, %s555_s16), 1 }
   0xe   : > { %s570_s17 = sshll.u32 %s887_s16, 7  ;;  %s571_s18 = sshll.u32 %s887_s16, 8 }
   0xf   : > { %s708_s21 = scalar_lea.vmem %s881_s0, %s570_s17  ;;  %s721_s26 = scalar_lea.vmem %s884_s3, %s571_s18 }
  0x10   : > { %v574_v0 = vld [vmem:[%s708_s21] sm:$0xff]   ;;  %v637_v4 = vld [vmem:[%s708_s21 + $0x8] sm:$0xff]   ;;  %v638_v8 = vld [vmem:[%s708_s21 + $0x10] sm:$0xff]   ;;  %s758_s5 = scalar_lea.vmem %s885_s4, %s571_s18 }
  0x11   : > { %v575_v2 = vunpack.c.l.bf16 %v574_v0  ;;  %v576_v3 = vunpack.c.h.bf16 %v574_v0  ;;  %v579_v6 = vunpack.c.l.bf16 %v637_v4  ;;  %v580_v7 = vunpack.c.h.bf16 %v637_v4  ;;  %v639_v13 = vld [vmem:[%s708_s21 + $0x18] sm:$0xff]   ;;  %v360_v14 = vld [vmem:[%s721_s26] sm:$0xff]  ;;  %v361_v15 = vld [vmem:[%s721_s26 + $0x8] sm:$0xff] }
  0x12   : > { %v583_v11 = vunpack.c.l.bf16 %v638_v8  ;;  %v584_v12 = vunpack.c.h.bf16 %v638_v8  ;;  %v587_v18 = vunpack.c.l.bf16 %v639_v13  ;;  %v588_v19 = vunpack.c.h.bf16 %v639_v13  ;;  %v362_v22 = vld [vmem:[%s721_s26 + $0x10] sm:$0xff]  ;;  %v363_v23 = vld [vmem:[%s721_s26 + $0x18] sm:$0xff]  ;;  %v364_v28 = vld [vmem:[%s721_s26 + $0x20] sm:$0xff] }
  0x13   : > { %v289_v9 = vmul.f32 %v575_v2, %v714_v1  ;;  %v290_v10 = vmul.f32 %v576_v3, %v714_v1  ;;  %v291_v16 = vmul.f32 %v579_v6, %v714_v1  ;;  %v292_v17 = vmul.f32 %v580_v7, %v714_v1  ;;  %v365_v29 = vld [vmem:[%s721_s26 + $0x28] sm:$0xff]  ;;  %v366_v36 = vld [vmem:[%s721_s26 + $0x30] sm:$0xff]  ;;  %v367_v37 = vld [vmem:[%s721_s26 + $0x38] sm:$0xff] }
  0x14   : > { %v293_v24 = vmul.f32 %v583_v11, %v714_v1  ;;  %v294_v25 = vmul.f32 %v584_v12, %v714_v1  ;;  %v295_v30 = vmul.f32 %v587_v18, %v714_v1  ;;  %v296_v31 = vmul.f32 %v588_v19, %v714_v1  ;;  %v640_v42 = vld [vmem:[%s708_s21 + $0x20] sm:$0xff]   ;;  %v641_v47 = vld [vmem:[%s708_s21 + $0x28] sm:$0xff]   ;;  %v642_v52 = vld [vmem:[%s708_s21 + $0x30] sm:$0xff]  }
  0x15   : > { %v328_v20 = vadd.f32 %v727_v5, %v289_v9  ;;  %v329_v21 = vadd.f32 %v727_v5, %v290_v10  ;;  %v330_v26 = vadd.f32 %v727_v5, %v291_v16  ;;  %v331_v27 = vadd.f32 %v727_v5, %v292_v17  ;;  %v643_v57 = vld [vmem:[%s708_s21 + $0x38] sm:$0xff]   ;;  %v368_v3 = vld [vmem:[%s721_s26 + $0x40] sm:$0xff]  ;;  %v369_v4 = vld [vmem:[%s721_s26 + $0x48] sm:$0xff] }
  0x16   : > { %v332_v34 = vadd.f32 %v727_v5, %v293_v24  ;;  %v333_v35 = vadd.f32 %v727_v5, %v294_v25  ;;  %v334_v40 = vadd.f32 %v727_v5, %v295_v30  ;;  %v335_v41 = vadd.f32 %v727_v5, %v296_v31  ;;  %v370_v12 = vld [vmem:[%s721_s26 + $0x50] sm:$0xff]  ;;  %v371_v13 = vld [vmem:[%s721_s26 + $0x58] sm:$0xff]  ;;  %v372_v18 = vld [vmem:[%s721_s26 + $0x60] sm:$0xff] }
  0x17   : > { %v392_v32 = vadd.f32 %v360_v14, %v328_v20  ;;  %v393_v33 = vadd.f32 %v361_v15, %v329_v21  ;;  %v394_v38 = vadd.f32 %v362_v22, %v330_v26  ;;  %v395_v39 = vadd.f32 %v363_v23, %v331_v27  ;;  %v373_v19 = vld [vmem:[%s721_s26 + $0x68] sm:$0xff]  ;;  %v374_v26 = vld [vmem:[%s721_s26 + $0x70] sm:$0xff]  ;;  %v375_v27 = vld [vmem:[%s721_s26 + $0x78] sm:$0xff] }
  0x18   : > { %v396_v45 = vadd.f32 %v364_v28, %v332_v34  ;;  %v397_v46 = vadd.f32 %v365_v29, %v333_v35  ;;  %v398_v50 = vadd.f32 %v366_v36, %v334_v40  ;;  %v399_v51 = vadd.f32 %v367_v37, %v335_v41  ;;  %v645_v37 = vld [vmem:[%s708_s21 + $0x48] sm:$0xff]  }
  0x19   : > { %v424_v43 = vmax.f32 %v392_v32, 0.0  ;;  %v425_v44 = vmax.f32 %v393_v33, 0.0  ;;  %v426_v48 = vmax.f32 %v394_v38, 0.0  ;;  %v427_v49 = vmax.f32 %v395_v39, 0.0  ;;  %v644_v32 = vld [vmem:[%s708_s21 + $0x40] sm:$0xff]  }
  0x1a   : > { %v428_v53 = vmax.f32 %v396_v45, 0.0  ;;  %v429_v54 = vmax.f32 %v397_v46, 0.0  ;;  %v591_v55 = vunpack.c.l.bf16 %v640_v42  ;;  %v592_v56 = vunpack.c.h.bf16 %v640_v42  ;;  %v646_v42 = vld [vmem:[%s708_s21 + $0x50] sm:$0xff]  }
  0x1b   : > { %456 = vst [vmem:[%s758_s5] sm:$0xff] %v424_v43  ;;  %457 = vst [vmem:[%s758_s5 + $0x8] sm:$0xff] %v425_v44  ;;  %v430_v58 = vmax.f32 %v398_v50, 0.0  ;;  %v431_v59 = vmax.f32 %v399_v51, 0.0  ;;  %v595_v60 = vunpack.c.l.bf16 %v641_v47  ;;  %v596_v61 = vunpack.c.h.bf16 %v641_v47  ;;  %v647_v47 = vld [vmem:[%s708_s21 + $0x58] sm:$0xff]  }
  0x1c   : > { %458 = vst [vmem:[%s758_s5 + $0x10] sm:$0xff] %v426_v48  ;;  %459 = vst [vmem:[%s758_s5 + $0x18] sm:$0xff] %v427_v49  ;;  %v297_v62 = vmul.f32 %v591_v55, %v714_v1  ;;  %v298_v63 = vmul.f32 %v592_v56, %v714_v1  ;;  %v599_v0 = vunpack.c.l.bf16 %v642_v52  ;;  %v600_v2 = vunpack.c.h.bf16 %v642_v52  ;;  %v376_v56 = vld [vmem:[%s721_s26 + $0x80] sm:$0xff] }
  0x1d   : > { %460 = vst [vmem:[%s758_s5 + $0x20] sm:$0xff] %v428_v53  ;;  %461 = vst [vmem:[%s758_s5 + $0x28] sm:$0xff] %v429_v54  ;;  %v299_v6 = vmul.f32 %v595_v60, %v714_v1  ;;  %v300_v7 = vmul.f32 %v596_v61, %v714_v1  ;;  %v603_v8 = vunpack.c.l.bf16 %v643_v57  ;;  %v604_v9 = vunpack.c.h.bf16 %v643_v57  ;;  %v377_v57 = vld [vmem:[%s721_s26 + $0x88] sm:$0xff] }
  0x1e   : > { %462 = vst [vmem:[%s758_s5 + $0x30] sm:$0xff] %v430_v58  ;;  %463 = vst [vmem:[%s758_s5 + $0x38] sm:$0xff] %v431_v59  ;;  %v336_v10 = vadd.f32 %v727_v5, %v297_v62  ;;  %v337_v11 = vadd.f32 %v727_v5, %v298_v63  ;;  %v301_v14 = vmul.f32 %v599_v0, %v714_v1  ;;  %v607_v45 = vunpack.c.l.bf16 %v644_v32  ;;  %v378_v0 = vld [vmem:[%s721_s26 + $0x90] sm:$0xff] }
  0x1f   : > { %v302_v15 = vmul.f32 %v600_v2, %v714_v1  ;;  %v338_v16 = vadd.f32 %v727_v5, %v299_v6  ;;  %v339_v17 = vadd.f32 %v727_v5, %v300_v7  ;;  %v303_v20 = vmul.f32 %v603_v8, %v714_v1  ;;  %v379_v2 = vld [vmem:[%s721_s26 + $0x98] sm:$0xff]  ;;  %v380_v8 = vld [vmem:[%s721_s26 + $0xa0] sm:$0xff] }
  0x20   : > { %v304_v21 = vmul.f32 %v604_v9, %v714_v1  ;;  %v400_v22 = vadd.f32 %v368_v3, %v336_v10  ;;  %v401_v23 = vadd.f32 %v369_v4, %v337_v11  ;;  %v340_v24 = vadd.f32 %v727_v5, %v301_v14  ;;  %v381_v9 = vld [vmem:[%s721_s26 + $0xa8] sm:$0xff] }
  0x21   : > { %v341_v25 = vadd.f32 %v727_v5, %v302_v15  ;;  %v402_v28 = vadd.f32 %v370_v12, %v338_v16  ;;  %v403_v29 = vadd.f32 %v371_v13, %v339_v17  ;;  %v342_v30 = vadd.f32 %v727_v5, %v303_v20  ;;  %v382_v16 = vld [vmem:[%s721_s26 + $0xb0] sm:$0xff]  ;;  %v383_v17 = vld [vmem:[%s721_s26 + $0xb8] sm:$0xff] }
  0x22   : > { %v343_v31 = vadd.f32 %v727_v5, %v304_v21  ;;  %v432_v33 = vmax.f32 %v400_v22, 0.0  ;;  %v433_v34 = vmax.f32 %v401_v23, 0.0  ;;  %v404_v35 = vadd.f32 %v372_v18, %v340_v24  ;;  %v648_v22 = vld [vmem:[%s708_s21 + $0x60] sm:$0xff]  }
  0x23   : > { %v405_v36 = vadd.f32 %v373_v19, %v341_v25  ;;  %v434_v38 = vmax.f32 %v402_v28, 0.0  ;;  %v435_v39 = vmax.f32 %v403_v29, 0.0  ;;  %v406_v40 = vadd.f32 %v374_v26, %v342_v30 }
  0x24   : > { %v407_v41 = vadd.f32 %v375_v27, %v343_v31  ;;  %464 = vst [vmem:[%s758_s5 + $0x40] sm:$0xff] %v432_v33  ;;  %465 = vst [vmem:[%s758_s5 + $0x48] sm:$0xff] %v433_v34  ;;  %v436_v43 = vmax.f32 %v404_v35, 0.0  ;;  %v608_v46 = vunpack.c.h.bf16 %v644_v32  ;;  %v611_v50 = vunpack.c.l.bf16 %v645_v37  ;;  %v649_v27 = vld [vmem:[%s708_s21 + $0x68] sm:$0xff]   ;;  %v650_v32 = vld [vmem:[%s708_s21 + $0x70] sm:$0xff]  }
  0x25   : > { %v437_v44 = vmax.f32 %v405_v36, 0.0  ;;  %466 = vst [vmem:[%s758_s5 + $0x50] sm:$0xff] %v434_v38  ;;  %467 = vst [vmem:[%s758_s5 + $0x58] sm:$0xff] %v435_v39  ;;  %v438_v48 = vmax.f32 %v406_v40, 0.0  ;;  %v612_v51 = vunpack.c.h.bf16 %v645_v37  ;;  %v305_v52 = vmul.f32 %v607_v45, %v714_v1  ;;  %v651_v37 = vld [vmem:[%s708_s21 + $0x78] sm:$0xff]  }
  0x26   : > { %v439_v49 = vmax.f32 %v407_v41, 0.0  ;;  %468 = vst [vmem:[%s758_s5 + $0x60] sm:$0xff] %v436_v43  ;;  %v306_v53 = vmul.f32 %v608_v46, %v714_v1  ;;  %v615_v54 = vunpack.c.l.bf16 %v646_v42  ;;  %v616_v55 = vunpack.c.h.bf16 %v646_v42  ;;  %v384_v46 = vld [vmem:[%s721_s26 + $0xc0] sm:$0xff] }
  0x27   : > { %469 = vst [vmem:[%s758_s5 + $0x68] sm:$0xff] %v437_v44  ;;  %470 = vst [vmem:[%s758_s5 + $0x70] sm:$0xff] %v438_v48  ;;  %v307_v58 = vmul.f32 %v611_v50, %v714_v1  ;;  %v308_v59 = vmul.f32 %v612_v51, %v714_v1  ;;  %v619_v60 = vunpack.c.l.bf16 %v647_v47  ;;  %v620_v61 = vunpack.c.h.bf16 %v647_v47  ;;  %v385_v47 = vld [vmem:[%s721_s26 + $0xc8] sm:$0xff] }
  0x28   : > { %471 = vst [vmem:[%s758_s5 + $0x78] sm:$0xff] %v439_v49  ;;  %v344_v62 = vadd.f32 %v727_v5, %v305_v52  ;;  %v345_v63 = vadd.f32 %v727_v5, %v306_v53  ;;  %v309_v3 = vmul.f32 %v615_v54, %v714_v1  ;;  %v310_v4 = vmul.f32 %v616_v55, %v714_v1  ;;  %v386_v54 = vld [vmem:[%s721_s26 + $0xd0] sm:$0xff]  ;;  %v387_v55 = vld [vmem:[%s721_s26 + $0xd8] sm:$0xff] }
  0x29   : > { %v346_v6 = vadd.f32 %v727_v5, %v307_v58  ;;  %v347_v7 = vadd.f32 %v727_v5, %v308_v59  ;;  %v311_v10 = vmul.f32 %v619_v60, %v714_v1  ;;  %v312_v11 = vmul.f32 %v620_v61, %v714_v1  ;;  %v388_v60 = vld [vmem:[%s721_s26 + $0xe0] sm:$0xff]  ;;  %v389_v61 = vld [vmem:[%s721_s26 + $0xe8] sm:$0xff] }
  0x2a   : > { %v408_v12 = vadd.f32 %v376_v56, %v344_v62  ;;  %v409_v13 = vadd.f32 %v377_v57, %v345_v63  ;;  %v348_v14 = vadd.f32 %v727_v5, %v309_v3  ;;  %v349_v15 = vadd.f32 %v727_v5, %v310_v4 }
  0x2b   : > { %v410_v18 = vadd.f32 %v378_v0, %v346_v6  ;;  %v411_v19 = vadd.f32 %v379_v2, %v347_v7  ;;  %v350_v20 = vadd.f32 %v727_v5, %v311_v10  ;;  %v351_v21 = vadd.f32 %v727_v5, %v312_v11  ;;  %v390_v6 = vld [vmem:[%s721_s26 + $0xf0] sm:$0xff]  ;;  %v391_v7 = vld [vmem:[%s721_s26 + $0xf8] sm:$0xff] }
  0x2c   : > { %v440_v23 = vmax.f32 %v408_v12, 0.0  ;;  %v441_v24 = vmax.f32 %v409_v13, 0.0  ;;  %v412_v25 = vadd.f32 %v380_v8, %v348_v14  ;;  %v413_v26 = vadd.f32 %v381_v9, %v349_v15 }
  0x2d   : > { %v442_v28 = vmax.f32 %v410_v18, 0.0  ;;  %v443_v29 = vmax.f32 %v411_v19, 0.0  ;;  %v414_v30 = vadd.f32 %v382_v16, %v350_v20  ;;  %v415_v31 = vadd.f32 %v383_v17, %v351_v21 }
  0x2e   : > { %472 = vst [vmem:[%s758_s5 + $0x80] sm:$0xff] %v440_v23  ;;  %473 = vst [vmem:[%s758_s5 + $0x88] sm:$0xff] %v441_v24  ;;  %v444_v33 = vmax.f32 %v412_v25, 0.0  ;;  %v445_v34 = vmax.f32 %v413_v26, 0.0  ;;  %v623_v35 = vunpack.c.l.bf16 %v648_v22  ;;  %v624_v36 = vunpack.c.h.bf16 %v648_v22 }
  0x2f   : > { %474 = vst [vmem:[%s758_s5 + $0x90] sm:$0xff] %v442_v28  ;;  %475 = vst [vmem:[%s758_s5 + $0x98] sm:$0xff] %v443_v29  ;;  %v446_v38 = vmax.f32 %v414_v30, 0.0  ;;  %v447_v39 = vmax.f32 %v415_v31, 0.0  ;;  %v627_v40 = vunpack.c.l.bf16 %v649_v27  ;;  %v628_v41 = vunpack.c.h.bf16 %v649_v27 }
  0x30   : > { %476 = vst [vmem:[%s758_s5 + $0xa0] sm:$0xff] %v444_v33  ;;  %477 = vst [vmem:[%s758_s5 + $0xa8] sm:$0xff] %v445_v34  ;;  %v313_v42 = vmul.f32 %v623_v35, %v714_v1  ;;  %v314_v43 = vmul.f32 %v624_v36, %v714_v1  ;;  %v631_v44 = vunpack.c.l.bf16 %v650_v32  ;;  %v632_v45 = vunpack.c.h.bf16 %v650_v32 }
  0x31   : > { %478 = vst [vmem:[%s758_s5 + $0xb0] sm:$0xff] %v446_v38  ;;  %479 = vst [vmem:[%s758_s5 + $0xb8] sm:$0xff] %v447_v39  ;;  %v315_v48 = vmul.f32 %v627_v40, %v714_v1  ;;  %v316_v49 = vmul.f32 %v628_v41, %v714_v1  ;;  %v635_v50 = vunpack.c.l.bf16 %v651_v37  ;;  %v636_v51 = vunpack.c.h.bf16 %v651_v37 }
  0x32   : > { %v352_v52 = vadd.f32 %v727_v5, %v313_v42  ;;  %v353_v53 = vadd.f32 %v727_v5, %v314_v43  ;;  %v317_v56 = vmul.f32 %v631_v44, %v714_v1  ;;  %v318_v57 = vmul.f32 %v632_v45, %v714_v1 }
  0x33   : > { %v354_v58 = vadd.f32 %v727_v5, %v315_v48  ;;  %v355_v59 = vadd.f32 %v727_v5, %v316_v49  ;;  %v319_v62 = vmul.f32 %v635_v50, %v714_v1  ;;  %v320_v63 = vmul.f32 %v636_v51, %v714_v1 }
  0x34   : > { %v416_v0 = vadd.f32 %v384_v46, %v352_v52  ;;  %v417_v2 = vadd.f32 %v385_v47, %v353_v53  ;;  %v356_v3 = vadd.f32 %v727_v5, %v317_v56  ;;  %v357_v4 = vadd.f32 %v727_v5, %v318_v57 }
  0x35   : > { %v418_v8 = vadd.f32 %v386_v54, %v354_v58  ;;  %v419_v9 = vadd.f32 %v387_v55, %v355_v59  ;;  %v358_v10 = vadd.f32 %v727_v5, %v319_v62  ;;  %v359_v11 = vadd.f32 %v727_v5, %v320_v63 }
  0x36   : > { %v448_v12 = vmax.f32 %v416_v0, 0.0  ;;  %v449_v1 = vmax.f32 %v417_v2, 0.0  ;;  %v420_v13 = vadd.f32 %v388_v60, %v356_v3  ;;  %v421_v14 = vadd.f32 %v389_v61, %v357_v4 }
  0x37   : > { %v450_v15 = vmax.f32 %v418_v8, 0.0  ;;  %v451_v16 = vmax.f32 %v419_v9, 0.0  ;;  %v422_v17 = vadd.f32 %v390_v6, %v358_v10  ;;  %v423_v18 = vadd.f32 %v391_v7, %v359_v11 }
  0x38   : > { %480 = vst [vmem:[%s758_s5 + $0xc0] sm:$0xff] %v448_v12  ;;  %481 = vst [vmem:[%s758_s5 + $0xc8] sm:$0xff] %v449_v1  ;;  %v452_v19 = vmax.f32 %v420_v13, 0.0  ;;  %v453_v20 = vmax.f32 %v421_v14, 0.0 }
  0x39   : > { %482 = vst [vmem:[%s758_s5 + $0xd0] sm:$0xff] %v450_v15  ;;  %483 = vst [vmem:[%s758_s5 + $0xd8] sm:$0xff] %v451_v16  ;;  %v454_v21 = vmax.f32 %v422_v17, 0.0  ;;  %v455_v5 = vmax.f32 %v423_v18, 0.0 }
  0x3a   : > { %484 = vst [vmem:[%s758_s5 + $0xe0] sm:$0xff] %v452_v19  ;;  %485 = vst [vmem:[%s758_s5 + $0xe8] sm:$0xff] %v453_v20 }
  0x3b   : > { %486 = vst [vmem:[%s758_s5 + $0xf0] sm:$0xff] %v454_v21  ;;  %487 = vst [vmem:[%s758_s5 + $0xf8] sm:$0xff] %v455_v5 }
  0x3c PF: > { %s14_s15 = sadd.s32 1, %s666_s15  }
  0x3d   : > { %p11_p4 = scmp.ge.s32.totalorder %s14_s15, 4  }
  0x3f   :  { %13 = sbr.rel (!%p11_p4) target bundleno = 1 (0x1), region = 69 }

// kernel: basic_block_forward.4
= control target key start
LH: loop header
LB: loop body
LE: loop exit
PB: predicated region body
PF: predicated region fallthrough
CT: control target
= control target key end

     0   :  { %s3841_s18 = smov 0   ;;  %s5003_s0 = inlined_call_operand.vmem [shape: bf16[2,16,16,128], index: 0, kind: input, shape index: {}]   ;;  %s5004_s1 = inlined_call_operand.vmem [shape: f32[1,128], index: 1, kind: input, shape index: {}]   ;;  %s5005_s2 = inlined_call_operand.vmem [shape: f32[1,128], index: 2, kind: input, shape index: {}]   ;;  %s5006_s3 = inlined_call_operand.vmem [shape: bf16[3,384,128], index: 3, kind: input, shape index: {}]   ;;  %s5007_s4 = inlined_call_operand.vmem [shape: bf16[2,16,16,128], index: 4, kind: output, shape index: {0}]   ;;  %s5008_s5 = inlined_call_operand.vmem [shape: f32[2,2,128], index: 5, kind: output, shape index: {1}]  }
   0x1 LB: > { %s2571_s19 = sadd.s32 4294967295, %s3808_s18   ;;  %p2575_p0 = scmp.ge.s32.totalorder %s3808_s18, 1  ;;  %s3808_s18 = sphi %s3841_s18, %s16_s18  }
   0x2   : > { %p190_p1 = scmp.lt.s32.totalorder %s3808_s18, 3 }
   0x4   : > { %p191_p2 = pnand %p2575_p0, %p190_p1 }
   0x5   : > { %v3730_v0 = vld [vmem:[%s5006_s3 + $0x100] sm:$0xff] (!%p191_p2)   ;;  %v3733_v3 = vld [vmem:[%s5006_s3 + $0x108] sm:$0xff] (!%p191_p2)   ;;  %v3736_v6 = vld [vmem:[%s5006_s3 + $0x110] sm:$0xff] (!%p191_p2)   ;;  %p222_p3 = scmp.lt.s32.totalorder (!%p191_p2), %s2571_s19, 1  ;;  %vm555_vm0 = vcmask (!%p191_p2), 1040384   ;;  %vm622_vm1 = vcmask (!%p191_p2), 1047552  }
   0x6   : > { %194 = sbr.rel (%p191_p2) target bundleno = 566 (0x236), region = 36  ;;  %v3855_v1 = vld [vmem:[%s5006_s3 + $0x140] sm:$0xff] (!%p191_p2)   ;;  %2993 = vmatprep.subr.bf16.mxu0 (!%p191_p2), %v3730_v0  ;;  %v3868_v4 = vld [vmem:[%s5006_s3 + $0x148] sm:$0xff] (!%p191_p2)   ;;  %v3880_v7 = vld [vmem:[%s5006_s3 + $0x150] sm:$0xff] (!%p191_p2)   ;;  %vm623_vm2 = vsmask.f32 (!%p191_p2), 7424 }
   0x7   : > { %v3732_v2 = vld [vmem:[%s5006_s3 + $0xc0] sm:$0xff] (!%p191_p2)   ;;  %3545 = vmatprep.subr.bf16.mxu1 (!%p191_p2), %v3855_v1  ;;  %v3735_v5 = vld [vmem:[%s5006_s3 + $0xc8] sm:$0xff] (!%p191_p2)   ;;  %v3738_v8 = vld [vmem:[%s5006_s3 + $0xd0] sm:$0xff] (!%p191_p2)   ;;  %vm556_vm3 = vsmask.f32 (!%p191_p2), 256 }
   0x8   : > { %2994 = vmatpush3.bf16.msra.mxu0 (!%p191_p2), %v3732_v2  ;;  %3553 = vmatpush3.bf16.msra.mxu1 (!%p191_p2), %v3855_v1  ;;  %v3739_v9 = vld [vmem:[%s5006_s3 + $0x118] sm:$0xff] (!%p191_p2)   ;;  %v3742_v12 = vld [vmem:[%s5006_s3 + $0x120] sm:$0xff] (!%p191_p2)   ;;  %v3745_v15 = vld [vmem:[%s5006_s3 + $0x128] sm:$0xff] (!%p191_p2)  }
   0x9   : > { %2995 = vmatprep.subr.bf16.mxu0 (!%p191_p2), %v3733_v3  ;;  %3546 = vmatprep.subr.bf16.mxu1 (!%p191_p2), %v3868_v4  ;;  %v3893_v10 = vld [vmem:[%s5006_s3 + $0x158] sm:$0xff] (!%p191_p2)   ;;  %v3908_v13 = vld [vmem:[%s5006_s3 + $0x160] sm:$0xff] (!%p191_p2)   ;;  %v3925_v16 = vld [vmem:[%s5006_s3 + $0x168] sm:$0xff] (!%p191_p2)  }
   0xa   : > { %v3741_v11 = vld [vmem:[%s5006_s3 + $0xd8] sm:$0xff] (!%p191_p2)   ;;  %v3744_v14 = vld [vmem:[%s5006_s3 + $0xe0] sm:$0xff] (!%p191_p2)   ;;  %v3747_v17 = vld [vmem:[%s5006_s3 + $0xe8] sm:$0xff] (!%p191_p2)  }
   0xb   : > { %v3748_v18 = vld [vmem:[%s5006_s3 + $0x130] sm:$0xff] (!%p191_p2)   ;;  %v3751_v21 = vld [vmem:[%s5006_s3 + $0x138] sm:$0xff] (!%p191_p2)   ;;  %v3959_v23 = vld [vmem:[%s5004_s1] ss:$0 sm:$0xff] (!%p191_p2) }
   0xc   : > { %2996 = vmatpush3.bf16.msra.mxu0 (!%p191_p2), %v3735_v5  ;;  %3554 = vmatpush3.bf16.msra.mxu1 (!%p191_p2), %v3868_v4  ;;  %v3939_v19 = vld [vmem:[%s5006_s3 + $0x170] sm:$0xff] (!%p191_p2)   ;;  %v3965_v24 = vld [vmem:[%s5006_s3 + $0x178] sm:$0xff] (!%p191_p2)   ;;  %v3972_v29 = vld [vmem:[%s5005_s2] ss:$0 sm:$0xff] (!%p191_p2) }
   0xd   : > { %2997 = vmatprep.subr.bf16.mxu0 %v3736_v6  ;;  %3547 = vmatprep.subr.bf16.mxu1 %v3880_v7  ;;  %s5030_s19 = smov (!%p222_p3, %s2571_s19), 1  ;;  %v3750_v20 = vld [vmem:[%s5006_s3 + $0xf0] sm:$0xff]   ;;  %v3753_v34 = vld [vmem:[%s5006_s3 + $0xf8] sm:$0xff]   ;;  %v3754_v43 = vld [vmem:[%s5006_s3 + $0x40] sm:$0xff]  }
   0xe   : > { %s2785_s6 = sshll.u32 %s5030_s19, 7  ;;  %vm4023_vm4 = vmand %vm555_vm0, %vm556_vm3 }
   0xf   : > { %s3946_s15 = scalar_lea.vmem %s5003_s0, %s2785_s6  ;;  %vm4031_vm5 = vmand %vm622_vm1, %vm623_vm2  ;;  %s4928_s20 = scalar_lea.vmem %s5007_s4, %s2785_s6 }
  0x10   : > { %2998 = vmatpush3.bf16.msra.mxu0 %v3738_v8  ;;  %3555 = vmatpush3.bf16.msra.mxu1 %v3880_v7  ;;  %v2820_v22 = vld [vmem:[%s3946_s15] sm:$0xff]   ;;  %v2971_v28 = vld [vmem:[%s3946_s15 + $0x48] sm:$0xff]   ;;  %v2972_v52 = vld [vmem:[%s3946_s15 + $0x50] sm:$0xff]   ;;  %s2580_s6 = sshll.u32 %s5030_s19, 1 }
  0x11   : > { %2999 = vmatprep.subr.bf16.mxu0 %v3739_v9  ;;  %3548 = vmatprep.subr.bf16.mxu1 %v3893_v10  ;;  %v2821_v25 = vunpack.c.l.bf16 %v2820_v22  ;;  %v2822_v26 = vunpack.c.h.bf16 %v2820_v22  ;;  %v2970_v27 = vld [vmem:[%s3946_s15 + $0x40] sm:$0xff]   ;;  %v2857_v32 = vunpack.c.l.bf16 %v2971_v28  ;;  %v2858_v33 = vunpack.c.h.bf16 %v2971_v28  ;;  %v2963_v47 = vld [vmem:[%s3946_s15 + $0x8] sm:$0xff]   ;;  %v2973_v53 = vld [vmem:[%s3946_s15 + $0x58] sm:$0xff]   ;;  %s235_s22 = scalar_lea.vmem %s5008_s5, %s2580_s6 }
  0x12   : > { %v2853_v30 = vunpack.c.l.bf16 %v2970_v27  ;;  %v2854_v31 = vunpack.c.h.bf16 %v2970_v27  ;;  %v2825_v51 = vunpack.c.l.bf16 %v2963_v47  ;;  %v2826_v57 = vunpack.c.h.bf16 %v2963_v47  ;;  %v4505_v22 = vld [vmem:[%s5006_s3 + $0x200] sm:$0xff]  }
  0x13   : > { %v308_v35 = vmul.f32 %v2821_v25, %v3959_v23  ;;  %v309_v36 = vmul.f32 %v2822_v26, %v3959_v23  ;;  %v326_v39 = vmul.f32 %v2857_v32, %v3959_v23  ;;  %v327_v42 = vmul.f32 %v2858_v33, %v3959_v23 }
  0x14   : > { %3000 = vmatpush3.bf16.msra.mxu0 %v3741_v11  ;;  %3556 = vmatpush3.bf16.msra.mxu1 %v3893_v10  ;;  %v324_v37 = vmul.f32 %v2853_v30, %v3959_v23  ;;  %v325_v38 = vmul.f32 %v2854_v31, %v3959_v23  ;;  %v310_v60 = vmul.f32 %v2825_v51, %v3959_v23  ;;  %v2861_v61 = vunpack.c.l.bf16 %v2972_v52 }
  0x15   : > { %3001 = vmatprep.subr.bf16.mxu0 %v3742_v12  ;;  %3549 = vmatprep.subr.bf16.mxu1 %v3908_v13  ;;  %v347_v40 = vadd.f32 %v3972_v29, %v308_v35  ;;  %v348_v41 = vadd.f32 %v3972_v29, %v309_v36  ;;  %v365_v46 = vadd.f32 %v3972_v29, %v326_v39  ;;  %v2862_v0 = vunpack.c.h.bf16 %v2972_v52 }
  0x16   : > { %v363_v44 = vadd.f32 %v3972_v29, %v324_v37  ;;  %v364_v45 = vadd.f32 %v3972_v29, %v325_v38  ;;  %v366_v50 = vadd.f32 %v3972_v29, %v327_v42  ;;  %v311_v63 = vmul.f32 %v2826_v57, %v3959_v23  ;;  %v2964_v38 = vld [vmem:[%s3946_s15 + $0x10] sm:$0xff]  }
  0x17   : > { %v379_v48 = vmax.f32 %v347_v40, 0.0  ;;  %v380_v49 = vmax.f32 %v348_v41, 0.0  ;;  %v397_v56 = vmax.f32 %v365_v46, 0.0  ;;  %v2865_v2 = vunpack.c.l.bf16 %v2973_v53  ;;  %v3755_v41 = vld [vmem:[%s5006_s3] sm:$0xff]  }
  0x18   : > { %3002 = vmatpush3.bf16.msra.mxu0 %v3744_v14  ;;  %3557 = vmatpush3.bf16.msra.mxu1 %v3908_v13  ;;  %v395_v54 = vmax.f32 %v363_v44, 0.0  ;;  %v396_v55 = vmax.f32 %v364_v45, 0.0  ;;  %v398_v59 = vmax.f32 %v366_v50, 0.0  ;;  %v349_v8 = vadd.f32 %v3972_v29, %v310_v60  ;;  %v3756_v45 = vld [vmem:[%s5006_s3 + $0x48] sm:$0xff]  }
  0x19   : > { %3003 = vmatprep.subr.bf16.mxu0 %v3745_v15  ;;  %3550 = vmatprep.subr.bf16.mxu1 %v3925_v16  ;;  %v3998_v58 = vpack.c.bf16 %v380_v49, %v379_v48  ;;  %v350_v12 = vadd.f32 %v3972_v29, %v311_v63  ;;  %v328_v14 = vmul.f32 %v2861_v61, %v3959_v23  ;;  %v2866_v32 = vunpack.c.h.bf16 %v2973_v53  ;;  %v2974_v49 = vld [vmem:[%s3946_s15 + $0x60] sm:$0xff]   ;;  %v2975_v63 = vld [vmem:[%s3946_s15 + $0x68] sm:$0xff]  }
  0x1a   : > { %v4002_v62 = vpack.c.bf16 %v396_v55, %v395_v54  ;;  %v4008_v6 = vpack.c.bf16 %v398_v59, %v397_v56  ;;  %v329_v26 = vmul.f32 %v2862_v0, %v3959_v23  ;;  %v330_v33 = vmul.f32 %v2865_v2, %v3959_v23  ;;  %v3757_v54 = vld [vmem:[%s5006_s3 + $0x8] sm:$0xff]  }
  0x1b   : > { %914 = vmatprep.mubr.bf16.mxu0 %v3998_v58  ;;  %v5011_v3 = vshrl.u32 %v3998_v58, 16  ;;  %v5015_v5 = vshll.u32 %v3998_v58, 16  ;;  %v382_v25 = vmax.f32 %v350_v12, 0.0  ;;  %v367_v27 = vadd.f32 %v3972_v29, %v328_v14  ;;  %v3758_v12 = vld [vmem:[%s5006_s3 + $0x50] sm:$0xff]  }
  0x1c   : > { %3004 = vmatpush3.bf16.msra.mxu0 %v3747_v17  ;;  %3558 = vmatpush3.bf16.msra.mxu1 %v3925_v16  ;;  %v484_v9 = vshrl.u32 %v4002_v62, 16  ;;  %v487_v11 = vshll.u32 %v4002_v62, 16  ;;  %v491_v17 = vshrl.u32 %v4008_v6, 16  ;;  %v368_v36 = vadd.f32 %v3972_v29, %v329_v26  ;;  %v2965_v26 = vld [vmem:[%s3946_s15 + $0x18] sm:$0xff]  }
  0x1d   : > { %3005 = vmatprep.subr.bf16.mxu0 %v3748_v18  ;;  %3551 = vmatprep.subr.bf16.mxu1 %v3939_v19  ;;  %v430_v15 = vrot.slane %v5011_v3, 7  ;;  %v494_v18 = vshll.u32 %v4008_v6, 16  ;;  %v399_v37 = vmax.f32 %v367_v27, 0.0  ;;  %v331_v42 = vmul.f32 %v2866_v32, %v3959_v23 }
  0x1e   : > { %v400_v46 = vmax.f32 %v368_v36, 0.0  ;;  %v2829_v53 = vunpack.c.l.bf16 %v2964_v38  ;;  %v2830_v57 = vunpack.c.h.bf16 %v2964_v38  ;;  %v2869_v60 = vunpack.c.l.bf16 %v2974_v49 }
  0x1f   : > { %v433_v30 = vor.u32 %v5015_v5, %v430_v15  ;;  %v592_v31 = vrot.slane %v494_v18, 1  ;;  %v370_v51 = vadd.f32 %v3972_v29, %v331_v42  ;;  %v2870_v61 = vunpack.c.h.bf16 %v2974_v49 }
  0x20   : > { %3006 = vmatpush3.bf16.msra.mxu0 %v3750_v20  ;;  %3559 = vmatpush3.bf16.msra.mxu1 %v3939_v19  ;;  %v381_v20 = vmax.f32 %v349_v8, 0.0  ;;  %v4080_v55 = vpack.c.bf16 %v400_v46, %v399_v37  ;;  %v312_v59 = vmul.f32 %v2829_v53, %v3959_v23  ;;  %v313_v14 = vmul.f32 %v2830_v57, %v3959_v23  ;;  %v3761_v46 = vld [vmem:[%s5006_s3 + $0x18] sm:$0xff]  }
  0x21   : > { %3007 = vmatprep.subr.bf16.mxu0 %v3751_v21  ;;  %3552 = vmatprep.subr.bf16.mxu1 %v3965_v24  ;;  %v590_v21 = vrot.slane %v487_v11, 1  ;;  %v4048_v39 = vsel %vm4023_vm4, 0, %v433_v30  ;;  %v593_v40 = vor.u32 %v592_v31, %v491_v17  ;;  %v2873_v32 = vunpack.c.l.bf16 %v2975_v63 }
  0x22   : > { %v4042_v35 = vpack.c.bf16 %v382_v25, %v381_v20  ;;  %v498_v0 = vshrl.u32 %v4080_v55, 16  ;;  %v501_v2 = vshll.u32 %v4080_v55, 16  ;;  %v351_v20 = vadd.f32 %v3972_v29, %v312_v59  ;;  %v3762_v59 = vld [vmem:[%s5006_s3 + $0x60] sm:$0xff]  }
  0x23   : > { %v4071_v50 = vsel %vm4031_vm5, %v593_v40, 0  ;;  %v333_v25 = vmul.f32 %v2870_v61, %v3959_v23  ;;  %v352_v31 = vadd.f32 %v3972_v29, %v313_v14  ;;  %v3760_v40 = vld [vmem:[%s5006_s3 + $0x58] sm:$0xff]  }
  0x24   : > { %3008 = vmatpush3.bf16.msra.mxu0 %v3753_v34  ;;  %3560 = vmatpush3.bf16.msra.mxu1 %v3965_v24  ;;  %v591_v34 = vor.u32 %v590_v21, %v484_v9  ;;  %v5014_v47 = vshrl.u32 %v4042_v35, 16  ;;  %v438_v48 = vshll.u32 %v4042_v35, 16  ;;  %v332_v21 = vmul.f32 %v2869_v60, %v3959_v23 }
  0x25   : > { %3401 = vmatprep.subr.bf16.mxu0 %v3855_v1  ;;  %3129 = vmatprep.subr.bf16.mxu1 %v3754_v43  ;;  %v369_v43 = vadd.f32 %v3972_v29, %v330_v33  ;;  %v594_v27 = vrot.slane %v501_v2, 1  ;;  %v383_v36 = vmax.f32 %v351_v20, 0.0  ;;  %v372_v42 = vadd.f32 %v3972_v29, %v333_v25  ;;  %v2976_v20 = vld [vmem:[%s3946_s15 + $0x70] sm:$0xff]  }
  0x26   : > { %v4059_v44 = vsel %vm4031_vm5, %v591_v34, 0  ;;  %v437_v56 = vrot.slane %v5014_v47, 7  ;;  %v371_v37 = vadd.f32 %v3972_v29, %v332_v21  ;;  %v2834_v60 = vunpack.c.h.bf16 %v2965_v26  ;;  %v2977_v21 = vld [vmem:[%s3946_s15 + $0x78] sm:$0xff]  }
  0x27   : > { %915 = vmatmul.mubr.bf16.vlgmr.msra.gmra.mrb[0].mxu0 %v4048_v39  ;;  %3433 = vmatprep.mubr.bf16.mxu1 %v4059_v44  ;;  %v401_v52 = vmax.f32 %v369_v43, 0.0  ;;  %v595_v38 = vor.u32 %v594_v27, %v498_v0  ;;  %v2874_v43 = vunpack.c.h.bf16 %v2975_v63  ;;  %v3763_v27 = vld [vmem:[%s5006_s3 + $0x20] sm:$0xff]  }
  0x28   : > { %3402 = vmatpush3.bf16.msra.mxu0 %v3855_v1  ;;  %3434 = vmatmul.mubr.bf16.vlgmr.msra.gmra.mrb[0].mxu1 %v4071_v50  ;;  %v402_v1 = vmax.f32 %v370_v51, 0.0  ;;  %v440_v8 = vor.u32 %v438_v48, %v437_v56  ;;  %v403_v49 = vmax.f32 %v371_v37, 0.0  ;;  %v334_v51 = vmul.f32 %v2873_v32, %v3959_v23 }
  0x29   : > { %922 = vmatprep.mubr.bf16.mxu0 %v4042_v35  ;;  %3130 = vmatpush3.bf16.msra.mxu1 %v3755_v41  ;;  %v384_v41 = vmax.f32 %v352_v31, 0.0  ;;  %v4132_v53 = vsel %vm4031_vm5, %v595_v38, 0  ;;  %v404_v56 = vmax.f32 %v372_v42, 0.0  ;;  %v335_v57 = vmul.f32 %v2874_v43, %v3959_v23 }
  0x2a   : > { %3403 = vmatprep.subr.bf16.mxu0 %v3868_v4  ;;  %3131 = vmatprep.subr.bf16.mxu1 %v3756_v45  ;;  %v4095_v15 = vpack.c.bf16 %v402_v1, %v401_v52  ;;  %v4106_v30 = vsel %vm4023_vm4, 0, %v440_v8  ;;  %v2833_v52 = vunpack.c.l.bf16 %v2965_v26  ;;  %v315_v31 = vmul.f32 %v2834_v60, %v3959_v23 }
  0x2b   : > { %3437 = vmatprep.mubr.bf16.mxu1 %v4132_v53  ;;  %v4147_v63 = vpack.c.bf16 %v404_v56, %v403_v49  ;;  %v374_v14 = vadd.f32 %v3972_v29, %v335_v57  ;;  %v2877_v42 = vunpack.c.l.bf16 %v2976_v20  ;;  %v2878_v43 = vunpack.c.h.bf16 %v2976_v20  ;;  %v3765_v56 = vld [vmem:[%s5006_s3 + $0x28] sm:$0xff]  }
  0x2c   : > { %3404 = vmatpush3.bf16.msra.mxu0 %v3868_v4  ;;  %v505_v33 = vshrl.u32 %v4095_v15, 16  ;;  %v508_v34 = vshll.u32 %v4095_v15, 16  ;;  %v3759_v4 = vld [vmem:[%s5006_s3 + $0x10] sm:$0xff]   ;;  %v314_v61 = vmul.f32 %v2833_v52, %v3959_v23  ;;  %v2881_v52 = vunpack.c.l.bf16 %v2977_v21 }
  0x2d   : > { %3405 = vmatprep.subr.bf16.mxu0 %v3880_v7  ;;  %3132 = vmatpush3.bf16.msra.mxu1 %v3757_v54  ;;  %v4134_v54 = vpack.c.bf16 %v384_v41, %v383_v36  ;;  %v515_v36 = vshll.u32 %v4147_v63, 16  ;;  %v406_v38 = vmax.f32 %v374_v14, 0.0  ;;  %v2882_v60 = vunpack.c.h.bf16 %v2977_v21 }
  0x2e   : > { %3133 = vmatprep.subr.bf16.mxu1 %v3758_v12  ;;  %v596_v45 = vrot.slane %v508_v34, 1  ;;  %v353_v32 = vadd.f32 %v3972_v29, %v314_v61 }
  0x2f   : > { %923 = vmatmul.mubr.bf16.gmra.mrb[4].mxu0 %v4106_v30  ;;  %v5010_v8 = vshrl.u32 %v4134_v54, 16  ;;  %v5013_v12 = vshll.u32 %v4134_v54, 16 }
  0x30   : > { %3406 = vmatpush3.bf16.msra.mxu0 %v3880_v7  ;;  %v597_v1 = vor.u32 %v596_v45, %v505_v33  ;;  %v373_v7 = vadd.f32 %v3972_v29, %v334_v51  ;;  %930 = vmatprep.mubr.bf16.mxu0 %v4134_v54  ;;  %v385_v41 = vmax.f32 %v353_v32, 0.0  ;;  %v598_v45 = vrot.slane %v515_v36, 1 }
  0x31   : > { %3407 = vmatprep.subr.bf16.mxu0 %v3893_v10  ;;  %3134 = vmatpush3.bf16.msra.mxu1 %v3759_v4  ;;  %v512_v4 = vshrl.u32 %v4147_v63, 16  ;;  %v444_v37 = vrot.slane %v5010_v8, 7  ;;  %v2969_v8 = vld [vmem:[%s3946_s15 + $0x38] sm:$0xff]  }
  0x32   : > { %3135 = vmatprep.subr.bf16.mxu1 %v3760_v40  ;;  %v4156_v25 = vsel %vm4031_vm5, %v597_v1, 0  ;;  %v405_v26 = vmax.f32 %v373_v7, 0.0  ;;  %v3764_v40 = vld [vmem:[%s5006_s3 + $0x68] sm:$0xff]   ;;  %v336_v1 = vmul.f32 %v2877_v42, %v3959_v23  ;;  %v337_v7 = vmul.f32 %v2878_v43, %v3959_v23 }
  0x33   : > { %3438 = vmatmul.mubr.bf16.gmra.mrb[4].mxu1 %v4156_v25  ;;  %v447_v49 = vor.u32 %v5013_v12, %v444_v37  ;;  %v599_v61 = vor.u32 %v598_v45, %v512_v4  ;;  %v2967_v37 = vld [vmem:[%s3946_s15 + $0x28] sm:$0xff]   ;;  %v338_v42 = vmul.f32 %v2881_v52, %v3959_v23 }
  0x34   : > { %3408 = vmatpush3.bf16.msra.mxu0 %v3893_v10  ;;  %v354_v10 = vadd.f32 %v3972_v29, %v315_v31  ;;  %v4178_v51 = vpack.c.bf16 %v406_v38, %v405_v26  ;;  %v3766_v26 = vld [vmem:[%s5006_s3 + $0x70] sm:$0xff]   ;;  %v375_v21 = vadd.f32 %v3972_v29, %v336_v1  ;;  %v376_v31 = vadd.f32 %v3972_v29, %v337_v7 }
  0x35   : > { %3409 = vmatprep.subr.bf16.mxu0 %v3908_v13  ;;  %3136 = vmatpush3.bf16.msra.mxu1 %v3761_v46  ;;  %v2966_v46 = vld [vmem:[%s3946_s15 + $0x20] sm:$0xff]   ;;  %v4207_v38 = vsel %vm4031_vm5, %v599_v61, 0  ;;  %v377_v52 = vadd.f32 %v3972_v29, %v338_v42 }
  0x36   : > { %3137 = vmatprep.subr.bf16.mxu1 %v3762_v59  ;;  %v386_v57 = vmax.f32 %v354_v10, 0.0  ;;  %v4191_v59 = vsel %vm4023_vm4, 0, %v447_v49  ;;  %v519_v14 = vshrl.u32 %v4178_v51, 16  ;;  %v522_v20 = vshll.u32 %v4178_v51, 16  ;;  %3441 = vmatprep.mubr.bf16.mxu1 %v4207_v38 }
  0x37   : > { %931 = vmatmul.mubr.bf16.gmra.mrb[8].mxu0 %v4191_v59  ;;  %v2837_v32 = vunpack.c.l.bf16 %v2966_v46  ;;  %v408_v43 = vmax.f32 %v376_v31, 0.0  ;;  %v2838_v7 = vunpack.c.h.bf16 %v2966_v46 }
  0x38   : > { %3410 = vmatpush3.bf16.msra.mxu0 %v3908_v13  ;;  %v4200_v13 = vpack.c.bf16 %v386_v57, %v385_v41  ;;  %v600_v10 = vrot.slane %v522_v20, 1  ;;  %v407_v41 = vmax.f32 %v375_v21, 0.0  ;;  %v3767_v57 = vld [vmem:[%s5006_s3 + $0x30] sm:$0xff]   ;;  %v3768_v21 = vld [vmem:[%s5006_s3 + $0x78] sm:$0xff]  }
  0x39   : > { %3411 = vmatprep.subr.bf16.mxu0 %v3925_v16  ;;  %3138 = vmatpush3.bf16.msra.mxu1 %v3763_v27  ;;  %v339_v27 = vmul.f32 %v2882_v60, %v3959_v23  ;;  %v316_v31 = vmul.f32 %v2837_v32, %v3959_v23  ;;  %v317_v42 = vmul.f32 %v2838_v7, %v3959_v23  ;;  %v2842_v7 = vunpack.c.h.bf16 %v2967_v37 }
  0x3a   : > { %3139 = vmatprep.subr.bf16.mxu1 %v3764_v40  ;;  %938 = vmatprep.mubr.bf16.mxu0 %v4200_v13  ;;  %v5009_v45 = vshrl.u32 %v4200_v13, 16  ;;  %v5012_v49 = vshll.u32 %v4200_v13, 16  ;;  %v601_v40 = vor.u32 %v600_v10, %v519_v14  ;;  %v4225_v60 = vpack.c.bf16 %v408_v43, %v407_v41 }
  0x3b   : > { %v378_v1 = vadd.f32 %v3972_v29, %v339_v27  ;;  %v2841_v10 = vunpack.c.l.bf16 %v2967_v37  ;;  %v2968_v27 = vld [vmem:[%s3946_s15 + $0x30] sm:$0xff]   ;;  %v3777_v37 = vld [vmem:[%s5006_s3 + $0x1c0] sm:$0xff]  }
  0x3c   : > { %3412 = vmatpush3.bf16.msra.mxu0 %v3925_v16  ;;  %v451_v61 = vrot.slane %v5009_v45, 7  ;;  %v4236_v46 = vsel %vm4031_vm5, %v601_v40, 0  ;;  %v409_v16 = vmax.f32 %v377_v52, 0.0  ;;  %v526_v41 = vshrl.u32 %v4225_v60, 16  ;;  %v3769_v40 = vld [vmem:[%s5006_s3 + $0x38] sm:$0xff]  }
  0x3d   : > { %3140 = vmatpush3.bf16.msra.mxu1 %v3765_v56  ;;  %3413 = vmatprep.subr.bf16.mxu0 %v3939_v19  ;;  %v410_v56 = vmax.f32 %v378_v1, 0.0  ;;  %v529_v32 = vshll.u32 %v4225_v60, 16  ;;  %v355_v52 = vadd.f32 %v3972_v29, %v316_v31  ;;  %v318_v45 = vmul.f32 %v2841_v10, %v3959_v23 }
  0x3e   : > { %3141 = vmatprep.subr.bf16.mxu1 %v3766_v26  ;;  %3442 = vmatmul.mubr.bf16.gmra.mrb[8].mxu1 %v4236_v46  ;;  %v454_v43 = vor.u32 %v5012_v49, %v451_v61  ;;  %v356_v26 = vadd.f32 %v3972_v29, %v317_v42  ;;  %v2845_v31 = vunpack.c.l.bf16 %v2968_v27  ;;  %v4274_v42 = vld [vmem:[%s5006_s3 + $0x80] sm:$0xff]  }
  0x3f   : > { %v4249_v1 = vpack.c.bf16 %v410_v56, %v409_v16  ;;  %v602_v3 = vrot.slane %v529_v32, 1  ;;  %v387_v49 = vmax.f32 %v355_v52, 0.0  ;;  %v319_v56 = vmul.f32 %v2842_v7, %v3959_v23 }
  0x40   : > { %3414 = vmatpush3.bf16.msra.mxu0 %v3939_v19  ;;  %v4259_v61 = vsel %vm4023_vm4, 0, %v454_v43  ;;  %v388_v16 = vmax.f32 %v356_v26, 0.0  ;;  %v357_v43 = vadd.f32 %v3972_v29, %v318_v45  ;;  %v2846_v52 = vunpack.c.h.bf16 %v2968_v27 }
  0x41   : > { %3142 = vmatpush3.bf16.msra.mxu1 %v3767_v57  ;;  %3415 = vmatprep.subr.bf16.mxu0 %v3965_v24  ;;  %v533_v19 = vshrl.u32 %v4249_v1, 16  ;;  %v536_v10 = vshll.u32 %v4249_v1, 16  ;;  %v603_v57 = vor.u32 %v602_v3, %v526_v41  ;;  %v320_v12 = vmul.f32 %v2845_v31, %v3959_v23 }
  0x42   : > { %939 = vmatmul.mubr.bf16.gmra.mrb[12].mxu0 %v4259_v61  ;;  %3143 = vmatprep.subr.bf16.mxu1 %v3768_v21  ;;  %v4280_v21 = vpack.c.bf16 %v388_v16, %v387_v49  ;;  %v358_v26 = vadd.f32 %v3972_v29, %v319_v56  ;;  %v2849_v7 = vunpack.c.l.bf16 %v2969_v8  ;;  %v389_v5 = vmax.f32 %v357_v43, 0.0 }
  0x43   : > { %v604_v47 = vrot.slane %v536_v10, 1  ;;  %v4286_v3 = vsel %vm4031_vm5, %v603_v57, 0  ;;  %v321_v45 = vmul.f32 %v2846_v52, %v3959_v23  ;;  %v359_v27 = vadd.f32 %v3972_v29, %v320_v12 }
  0x44   : > { %3416 = vmatpush3.bf16.msra.mxu0 %v3965_v24  ;;  %3445 = vmatprep.mubr.bf16.mxu1 %v4286_v3  ;;  %v5016_v24 = vshrl.u32 %v4280_v21, 16  ;;  %v459_v31 = vshll.u32 %v4280_v21, 16  ;;  %v390_v16 = vmax.f32 %v358_v26, 0.0  ;;  %v2850_v57 = vunpack.c.h.bf16 %v2969_v8 }
  0x45   : > { %3144 = vmatpush3.bf16.msra.mxu1 %v3769_v40  ;;  %3265 = vmatprep.subr.bf16.mxu0 %v3777_v37  ;;  %v605_v49 = vor.u32 %v604_v47, %v533_v19  ;;  %v360_v40 = vadd.f32 %v3972_v29, %v321_v45  ;;  %v391_v56 = vmax.f32 %v359_v27, 0.0  ;;  %v322_v12 = vmul.f32 %v2849_v7, %v3959_v23 }
  0x46   : > { %946 = vmatprep.mubr.bf16.mxu0 %v4280_v21  ;;  %3449 = vmatprep.subr.bf16.mxu1 %v4274_v42  ;;  %v458_v47 = vrot.slane %v5016_v24, 7  ;;  %v4305_v43 = vpack.c.bf16 %v390_v16, %v389_v5  ;;  %v486_v52 = vrot.slane %v484_v9, 7  ;;  %v323_v45 = vmul.f32 %v2850_v57, %v3959_v23 }
  0x47   : > { %v4301_v37 = vsel %vm4031_vm5, %v605_v49, 0  ;;  %v392_v26 = vmax.f32 %v360_v40, 0.0  ;;  %v361_v8 = vadd.f32 %v3972_v29, %v322_v12  ;;  %v493_v7 = vrot.slane %v491_v17, 7 }
  0x48   : > { %3446 = vmatmul.mubr.bf16.gmra.mrb[12].mxu1 %v4301_v37  ;;  %v3810_v27 = vmov 0   ;;  %v461_v5 = vor.u32 %v459_v31, %v458_v47  ;;  %v463_v49 = vshrl.u32 %v4305_v43, 16  ;;  %v466_v9 = vshll.u32 %v4305_v43, 16 }
  0x49   : > { %1380 = vmatprep.mubr.bf16.mxu1 %v3810_v27  ;;  %v489_v16 = vor.u32 %v487_v11, %v486_v52  ;;  %v4321_v40 = vpack.c.bf16 %v392_v26, %v391_v56  ;;  %v362_v23 = vadd.f32 %v3972_v29, %v323_v45  ;;  %v393_v57 = vmax.f32 %v361_v8, 0.0 }
  0x4a   : > { %v496_v17 = vor.u32 %v494_v18, %v493_v7  ;;  %v4328_v12 = vsel %vm4023_vm4, 0, %v461_v5  ;;  %v465_v47 = vrot.slane %v463_v49, 7  ;;  %v500_v11 = vrot.slane %v498_v0, 7  ;;  %v3771_v5 = vld [vmem:[%s5006_s3 + $0x88] sm:$0xff]  }
  0x4b   : > { %v4334_v24 = vsel %vm4023_vm4, 0, %v489_v16  ;;  %947 = vmatmul.mubr.bf16.gmra.mrb[16].mxu0 %v4328_v12  ;;  %v470_v29 = vshrl.u32 %v4321_v40, 16  ;;  %v473_v18 = vshll.u32 %v4321_v40, 16  ;;  %v394_v56 = vmax.f32 %v362_v23, 0.0 }
  0x4c   : > { %v4343_v52 = vsel %vm4023_vm4, 0, %v496_v17  ;;  %954 = vmatprep.mubr.bf16.mxu0 %v4305_v43  ;;  %v468_v26 = vor.u32 %v466_v9, %v465_v47  ;;  %v503_v45 = vor.u32 %v501_v2, %v500_v11  ;;  %v507_v0 = vrot.slane %v505_v33, 7 }
  0x4d   : > { %v514_v8 = vrot.slane %v512_v4, 7  ;;  %v472_v7 = vrot.slane %v470_v29, 7  ;;  %v4357_v16 = vpack.c.bf16 %v394_v56, %v393_v57  ;;  %v521_v23 = vrot.slane %v519_v14, 7 }
  0x4e   : > { %v528_v2 = vrot.slane %v526_v41, 7  ;;  %v576_v33 = vrot.slane %v438_v48, 1  ;;  %v4367_v4 = vsel %vm4023_vm4, 0, %v503_v45  ;;  %v510_v17 = vor.u32 %v508_v34, %v507_v0 }
  0x4f   : > { %v517_v57 = vor.u32 %v515_v36, %v514_v8  ;;  %v4376_v14 = vsel %vm4023_vm4, 0, %v468_v26  ;;  %v524_v41 = vor.u32 %v522_v20, %v521_v23  ;;  %v535_v47 = vrot.slane %v533_v19, 7 }
  0x50   : > { %1381 = vmatmul.mubr.bf16.vlgmr.msra.gmra.mrb[16].mxu1 %v3810_v27  ;;  %v4384_v48 = vsel %vm4023_vm4, 0, %v510_v17  ;;  %v531_v36 = vor.u32 %v529_v32, %v528_v2  ;;  %v475_v11 = vor.u32 %v473_v18, %v472_v7  ;;  %v477_v20 = vshrl.u32 %v4357_v16, 16 }
  0x51   : > { %3450 = vmatpush3.bf16.msra.mxu1 %v4274_v42  ;;  %1388 = vmatprep.mubr.bf16.mxu1 %v3998_v58  ;;  %v4388_v34 = vsel %vm4023_vm4, 0, %v517_v57  ;;  %v3772_v42 = vld [vmem:[%s5006_s3 + $0x90] sm:$0xff]   ;;  %v4400_v56 = vsel %vm4023_vm4, 0, %v524_v41  ;;  %v5021_v26 = vshll.u32 %v3998_v58, 16  ;;  %v538_v19 = vor.u32 %v536_v10, %v535_v47 }
  0x52   : > { %3451 = vmatprep.subr.bf16.mxu1 %v3771_v5  ;;  %v4406_v32 = vsel %vm4023_vm4, 0, %v531_v36  ;;  %v5022_v0 = vshrl.u32 %v4042_v35, 16  ;;  %v5023_v7 = vshll.u32 %v4134_v54, 16  ;;  %v480_v2 = vshll.u32 %v4357_v16, 16 }
  0x53   : > { %v574_v45 = vrot.slane %v5021_v26, 1  ;;  %955 = vmatmul.mubr.bf16.gmra.mrb[20].mxu0 %v4376_v14  ;;  %v5024_v17 = vshrl.u32 %v3998_v58, 16  ;;  %v5025_v41 = vshll.u32 %v4200_v13, 16  ;;  %v582_v26 = vrot.slane %v459_v31, 1  ;;  %v3773_v31 = vld [vmem:[%s5006_s3 + $0x98] sm:$0xff]  }
  0x54   : > { %v577_v8 = vor.u32 %v576_v33, %v5022_v0  ;;  %v578_v23 = vrot.slane %v5023_v7, 1  ;;  %962 = vmatprep.mubr.bf16.mxu0 %v4321_v40  ;;  %v4425_v10 = vsel %vm4023_vm4, 0, %v538_v19  ;;  %v5026_v58 = vshrl.u32 %v4134_v54, 16 }
  0x55   : > { %v575_v57 = vor.u32 %v574_v45, %v5024_v17  ;;  %v580_v36 = vrot.slane %v5025_v41, 1  ;;  %3452 = vmatpush3.bf16.msra.mxu1 %v3771_v5  ;;  %v584_v45 = vrot.slane %v466_v9, 1  ;;  %v5027_v19 = vshrl.u32 %v4200_v13, 16 }
  0x56   : > { %v4429_v33 = vsel %vm4031_vm5, %v577_v8, 0  ;;  %v579_v47 = vor.u32 %v578_v23, %v5026_v58  ;;  %3453 = vmatprep.subr.bf16.mxu1 %v3772_v42  ;;  %v5028_v7 = vshrl.u32 %v4280_v21, 16  ;;  %v586_v23 = vrot.slane %v473_v18, 1 }
  0x57   : > { %v4438_v5 = vsel %vm4031_vm5, %v575_v57, 0  ;;  %v581_v0 = vor.u32 %v580_v36, %v5027_v19  ;;  %v585_v9 = vor.u32 %v584_v45, %v463_v49  ;;  %v588_v41 = vrot.slane %v480_v2, 1  ;;  %v3779_v19 = vld [vmem:[%s5006_s3 + $0x1c8] sm:$0xff]  }
  0x58   : > { %v583_v8 = vor.u32 %v582_v26, %v5028_v7  ;;  %v4446_v17 = vsel %vm4031_vm5, %v579_v47, 0  ;;  %1389 = vmatmul.mubr.bf16.gmra.mrb[20].mxu1 %v4048_v39  ;;  %v4453_v57 = vsel %vm4023_vm4, 0, %v475_v11  ;;  %v479_v58 = vrot.slane %v477_v20, 7  ;;  %v3774_v11 = vld [vmem:[%s5006_s3 + $0xa0] sm:$0xff]   ;;  %v3781_v7 = vld [vmem:[%s5006_s3 + $0x1d0] sm:$0xff]  }
  0x59   : > { %v4457_v36 = vsel %vm4031_vm5, %v581_v0, 0  ;;  %1396 = vmatprep.mubr.bf16.mxu1 %v4042_v35  ;;  %3454 = vmatpush3.bf16.msra.mxu1 %v3772_v42  ;;  %v4466_v49 = vsel %vm4031_vm5, %v585_v9, 0  ;;  %v587_v39 = vor.u32 %v586_v23, %v470_v29  ;;  %v589_v18 = vor.u32 %v588_v41, %v477_v20  ;;  %v3775_v29 = vld [vmem:[%s5006_s3 + $0xa8] sm:$0xff]   ;;  %v3776_v20 = vld [vmem:[%s5006_s3 + $0xb0] sm:$0xff]   ;;  %v3783_v9 = vld [vmem:[%s5006_s3 + $0x1d8] sm:$0xff]  }
  0x5a   : > { %v4461_v26 = vsel %vm4031_vm5, %v583_v8, 0  ;;  %3455 = vmatprep.subr.bf16.mxu1 %v3773_v31  ;;  %v482_v45 = vor.u32 %v480_v2, %v479_v58  ;;  %v3785_v2 = vld [vmem:[%s5006_s3 + $0xb8] sm:$0xff]   ;;  %v3780_v0 = vld [vmem:[%s5006_s3 + $0x188] sm:$0xff]   ;;  %v3782_v8 = vld [vmem:[%s5006_s3 + $0x190] sm:$0xff]  }
  0x5b   : > { %v4475_v47 = vsel %vm4031_vm5, %v587_v39, 0  ;;  %v4479_v42 = vsel %vm4031_vm5, %v589_v18, 0  ;;  %963 = vmatmul.mubr.bf16.gmra.mrb[24].mxu0 %v4453_v57  ;;  %v3784_v23 = vld [vmem:[%s5006_s3 + $0x198] sm:$0xff]   ;;  %v3786_v41 = vld [vmem:[%s5006_s3 + $0x1e0] sm:$0xff]   ;;  %v3788_v39 = vld [vmem:[%s5006_s3 + $0x1e8] sm:$0xff]  }
  0x5c   : > { %970 = vmatprep.mubr.bf16.mxu0 %v4357_v16  ;;  %v4490_v28 = vsel %vm4023_vm4, 0, %v482_v45  ;;  %v3787_v58 = vld [vmem:[%s5006_s3 + $0x1a0] sm:$0xff]   ;;  %v3789_v18 = vld [vmem:[%s5006_s3 + $0x1a8] sm:$0xff]   ;;  %v3791_v45 = vld [vmem:[%s5006_s3 + $0x1b0] sm:$0xff]  }
  0x5d   : > { %3456 = vmatpush3.bf16.msra.mxu1 %v3773_v31  ;;  %v3778_v31 = vld [vmem:[%s5006_s3 + $0x180] sm:$0xff]  }
  0x5e   : > { %3457 = vmatprep.subr.bf16.mxu1 %v3774_v11 }
  0x60   : > { %1397 = vmatmul.mubr.bf16.gmra.mrb[24].mxu1 %v4106_v30 }
  0x61   : > { %1404 = vmatprep.mubr.bf16.mxu1 %v4134_v54  ;;  %3458 = vmatpush3.bf16.msra.mxu1 %v3774_v11  ;;  %v3790_v11 = vld [vmem:[%s5006_s3 + $0x1f0] sm:$0xff]  }
  0x62   : > { %3459 = vmatprep.subr.bf16.mxu1 %v3775_v29 }
  0x63   : > { %971 = vmatmul.mubr.bf16.gmra.mrb[28].mxu0 %v4490_v28 }
  0x64   : > { %978 = vmatprep.mubr.bf16.mxu0 %v4002_v62 }
  0x65   : > { %3460 = vmatpush3.bf16.msra.mxu1 %v3775_v29  ;;  %v3792_v29 = vld [vmem:[%s5006_s3 + $0x1f8] sm:$0xff]  }
  0x66   : > { %3461 = vmatprep.subr.bf16.mxu1 %v3776_v20 }
  0x68   : > { %1405 = vmatmul.mubr.bf16.gmra.mrb[28].mxu1 %v4191_v59 }
  0x69   : > { %1412 = vmatprep.mubr.bf16.mxu1 %v4200_v13  ;;  %3462 = vmatpush3.bf16.msra.mxu1 %v3776_v20  ;;  %v3793_v20 = vld [vmem:[%s5006_s3 + $0x1b8] sm:$0xff]  }
  0x6a   : > { %3463 = vmatprep.subr.bf16.mxu1 %v3785_v2 }
  0x6b   : > { %979 = vmatmul.mubr.bf16.gmra.mrb[32].mxu0 %v4334_v24 }
  0x6c   : > { %986 = vmatprep.mubr.bf16.mxu0 %v4008_v6 }
  0x6d   : > { %3464 = vmatpush3.bf16.msra.mxu1 %v3785_v2  ;;  %v3795_v2 = vld [vmem:[%s5006_s3 + $0x208] sm:$0xff]  }
  0x6e   : > { %3497 = vmatprep.subr.bf16.mxu1 %v4505_v22 }
  0x70   : > { %1413 = vmatmul.mubr.bf16.gmra.mrb[32].mxu1 %v4259_v61 }
  0x71   : > { %1420 = vmatprep.mubr.bf16.mxu1 %v4280_v21 }
  0x73   : > { %987 = vmatmul.mubr.bf16.gmra.mrb[36].mxu0 %v4343_v52 }
  0x74   : > { %994 = vmatprep.mubr.bf16.mxu0 %v4080_v55 }
  0x78   : > { %1421 = vmatmul.mubr.bf16.gmra.mrb[36].mxu1 %v4328_v12 }
  0x79   : > { %1428 = vmatprep.mubr.bf16.mxu1 %v4305_v43 }
  0x7b   : > { %995 = vmatmul.mubr.bf16.gmra.mrb[40].mxu0 %v4367_v4 }
  0x7c   : > { %1002 = vmatprep.mubr.bf16.mxu0 %v4095_v15 }
  0x80   : > { %1429 = vmatmul.mubr.bf16.gmra.mrb[40].mxu1 %v4376_v14 }
  0x81   : > { %1436 = vmatprep.mubr.bf16.mxu1 %v4321_v40 }
  0x83   : > { %1003 = vmatmul.mubr.bf16.gmra.mrb[44].mxu0 %v4384_v48 }
  0x84   : > { %1010 = vmatprep.mubr.bf16.mxu0 %v4147_v63 }
  0x88   : > { %1437 = vmatmul.mubr.bf16.gmra.mrb[44].mxu1 %v4453_v57 }
  0x89   : > { %1444 = vmatprep.mubr.bf16.mxu1 %v4357_v16 }
  0x8b   : > { %1011 = vmatmul.mubr.bf16.gmra.mrb[48].mxu0 %v4388_v34 }
  0x8c   : > { %1018 = vmatprep.mubr.bf16.mxu0 %v4178_v51 }
  0x90   : > { %1445 = vmatmul.mubr.bf16.gmra.mrb[48].mxu1 %v4490_v28 }
  0x91   : > { %1452 = vmatprep.mubr.bf16.mxu1 %v4002_v62 }
  0x93   : > { %1019 = vmatmul.mubr.bf16.gmra.mrb[52].mxu0 %v4400_v56 }
  0x94   : > { %1026 = vmatprep.mubr.bf16.mxu0 %v4225_v60 }
  0x98   : > { %1453 = vmatmul.mubr.bf16.gmra.mrb[52].mxu1 %v4334_v24 }
  0x99   : > { %1460 = vmatprep.mubr.bf16.mxu1 %v4008_v6 }
  0x9b   : > { %1027 = vmatmul.mubr.bf16.gmra.mrb[56].mxu0 %v4406_v32 }
  0x9c   : > { %1034 = vmatprep.mubr.bf16.mxu0 %v4249_v1 }
  0xa0   : > { %1461 = vmatmul.mubr.bf16.gmra.mrb[56].mxu1 %v4343_v52 }
  0xa1   : > { %1468 = vmatprep.mubr.bf16.mxu1 %v4080_v55 }
  0xa3   : > { %1035 = vmatmul.mubr.bf16.gmra.mrb[60].mxu0 %v4425_v10 }
  0xa4   : > { %3417 = vmatprep.mubr.bf16.mxu0 %v4438_v5 }
  0xa8   : > { %1469 = vmatmul.mubr.bf16.gmra.mrb[60].mxu1 %v4367_v4 }
  0xa9   : > { %1476 = vmatprep.mubr.bf16.mxu1 %v4095_v15 }
  0xab   : > { %3418 = vmatmul.mubr.bf16.vlgmr.msra.gmra.mrb[64].mxu0 %v4429_v33 }
  0xac   : > { %3266 = vmatpush3.bf16.msra.mxu0 %v3778_v31  ;;  %3421 = vmatprep.mubr.bf16.mxu0 %v4446_v17 }
  0xad   : > { %3267 = vmatprep.subr.bf16.mxu0 %v3779_v19 }
  0xb0   : > { %1477 = vmatmul.mubr.bf16.gmra.mrb[64].mxu1 %v4384_v48  ;;  %3268 = vmatpush3.bf16.msra.mxu0 %v3780_v0 }
  0xb1   : > { %1484 = vmatprep.mubr.bf16.mxu1 %v4147_v63  ;;  %3269 = vmatprep.subr.bf16.mxu0 %v3781_v7 }
  0xb3   : > { %3422 = vmatmul.mubr.bf16.gmra.mrb[68].mxu0 %v4457_v36 }
  0xb4   : > { %3270 = vmatpush3.bf16.msra.mxu0 %v3782_v8  ;;  %3425 = vmatprep.mubr.bf16.mxu0 %v4461_v26 }
  0xb5   : > { %3271 = vmatprep.subr.bf16.mxu0 %v3783_v9 }
  0xb8   : > { %1485 = vmatmul.mubr.bf16.gmra.mrb[68].mxu1 %v4388_v34  ;;  %3272 = vmatpush3.bf16.msra.mxu0 %v3784_v23 }
  0xb9   : > { %1492 = vmatprep.mubr.bf16.mxu1 %v4178_v51  ;;  %3273 = vmatprep.subr.bf16.mxu0 %v3786_v41 }
  0xbb   : > { %3426 = vmatmul.mubr.bf16.gmra.mrb[72].mxu0 %v4466_v49 }
  0xbc   : > { %3274 = vmatpush3.bf16.msra.mxu0 %v3787_v58  ;;  %3429 = vmatprep.mubr.bf16.mxu0 %v4475_v47 }
  0xbd   : > { %3275 = vmatprep.subr.bf16.mxu0 %v3788_v39 }
  0xc0   : > { %1493 = vmatmul.mubr.bf16.gmra.mrb[72].mxu1 %v4400_v56  ;;  %3276 = vmatpush3.bf16.msra.mxu0 %v3789_v18 }
  0xc1   : > { %1500 = vmatprep.mubr.bf16.mxu1 %v4225_v60  ;;  %3277 = vmatprep.subr.bf16.mxu0 %v3790_v11 }
  0xc3   : > { %3430 = vmatmul.mubr.bf16.gmra.mrb[76].mxu0 %v4479_v42 }
  0xc4   : > { %3278 = vmatpush3.bf16.msra.mxu0 %v3791_v45  ;;  %1895 = vmatprep.mubr.bf16.mxu0 %v4042_v35  ;;  %v3796_v35 = vld [vmem:[%s5006_s3 + $0x210] sm:$0xff]  }
  0xc5   : > { %3279 = vmatprep.subr.bf16.mxu0 %v3792_v29 }
  0xc8   : > { %1501 = vmatmul.mubr.bf16.gmra.mrb[76].mxu1 %v4406_v32  ;;  %3280 = vmatpush3.bf16.msra.mxu0 %v3793_v20 }
  0xc9   : > { %3465 = vmatprep.mubr.bf16.mxu1 %v3810_v27 }
  0xcb   : > { %1896 = vmatmul.mubr.bf16.vlgmr.msra.gmra.mrb[80].mxu0 %v4106_v30  ;;  %v3797_v30 = vld [vmem:[%s5006_s3 + $0x218] sm:$0xff]  }
  0xcc   : > { %1903 = vmatprep.mubr.bf16.mxu0 %v4134_v54  ;;  %v3798_v54 = vld [vmem:[%s5006_s3 + $0x220] sm:$0xff]  }
  0xd0   : > { %3466 = vmatmul.mubr.bf16.vlgmr.msra.gmra.mrb[80].mxu1 %v4438_v5 }
  0xd1   : > { %3498 = vmatpush3.bf16.msra.mxu1 %v4505_v22  ;;  %3469 = vmatprep.mubr.bf16.mxu1 %v4429_v33 }
  0xd2   : > { %3499 = vmatprep.subr.bf16.mxu1 %v3795_v2 }
  0xd3   : > { %1904 = vmatmul.mubr.bf16.gmra.mrb[84].mxu0 %v4191_v59  ;;  %v3799_v59 = vld [vmem:[%s5006_s3 + $0x228] sm:$0xff]  }
  0xd4   : > { %1911 = vmatprep.mubr.bf16.mxu0 %v4200_v13  ;;  %v3800_v13 = vld [vmem:[%s5006_s3 + $0x230] sm:$0xff]  }
  0xd5   : > { %3500 = vmatpush3.bf16.msra.mxu1 %v3795_v2 }
  0xd6   : > { %3501 = vmatprep.subr.bf16.mxu1 %v3796_v35 }
  0xd8   : > { %3470 = vmatmul.mubr.bf16.gmra.mrb[84].mxu1 %v4446_v17 }
  0xd9   : > { %3473 = vmatprep.mubr.bf16.mxu1 %v4457_v36  ;;  %3502 = vmatpush3.bf16.msra.mxu1 %v3796_v35 }
  0xda   : > { %3503 = vmatprep.subr.bf16.mxu1 %v3797_v30 }
  0xdb   : > { %1912 = vmatmul.mubr.bf16.gmra.mrb[88].mxu0 %v4259_v61  ;;  %v3801_v61 = vld [vmem:[%s5006_s3 + $0x238] sm:$0xff]  }
  0xdc   : > { %1919 = vmatprep.mubr.bf16.mxu0 %v4280_v21 }
  0xdd   : > { %3504 = vmatpush3.bf16.msra.mxu1 %v3797_v30 }
  0xde   : > { %3505 = vmatprep.subr.bf16.mxu1 %v3798_v54 }
  0xe0   : > { %3474 = vmatmul.mubr.bf16.gmra.mrb[88].mxu1 %v4461_v26 }
  0xe1   : > { %3477 = vmatprep.mubr.bf16.mxu1 %v4466_v49  ;;  %3506 = vmatpush3.bf16.msra.mxu1 %v3798_v54 }
  0xe2   : > { %3507 = vmatprep.subr.bf16.mxu1 %v3799_v59 }
  0xe3   : > { %1920 = vmatmul.mubr.bf16.gmra.mrb[92].mxu0 %v4328_v12 }
  0xe4   : > { %1927 = vmatprep.mubr.bf16.mxu0 %v4305_v43 }
  0xe5   : > { %3508 = vmatpush3.bf16.msra.mxu1 %v3799_v59 }
  0xe6   : > { %3509 = vmatprep.subr.bf16.mxu1 %v3800_v13 }
  0xe8   : > { %3478 = vmatmul.mubr.bf16.gmra.mrb[92].mxu1 %v4475_v47 }
  0xe9   : > { %3481 = vmatprep.mubr.bf16.mxu1 %v4479_v42  ;;  %3510 = vmatpush3.bf16.msra.mxu1 %v3800_v13 }
  0xea   : > { %3511 = vmatprep.subr.bf16.mxu1 %v3801_v61 }
  0xeb   : > { %1928 = vmatmul.mubr.bf16.gmra.mrb[96].mxu0 %v4376_v14 }
  0xec   : > { %1935 = vmatprep.mubr.bf16.mxu0 %v4321_v40 }
  0xed   : > { %3512 = vmatpush3.bf16.msra.mxu1 %v3801_v61 }
  0xf0   : > { %3482 = vmatmul.mubr.bf16.gmra.mrb[0].mxu1 %v4059_v44 }
  0xf1   : > { %3485 = vmatprep.mubr.bf16.mxu1 %v4071_v50 }
  0xf3   : > { %1936 = vmatmul.mubr.bf16.gmra.mrb[100].mxu0 %v4453_v57 }
  0xf4   : > { %1943 = vmatprep.mubr.bf16.mxu0 %v4357_v16 }
  0xf8   : > { %3486 = vmatmul.mubr.bf16.gmra.mrb[4].mxu1 %v4132_v53 }
  0xf9   : > { %3489 = vmatprep.mubr.bf16.mxu1 %v4156_v25 }
  0xfa   : > { %v3009_v21 = vpop.f32.mrb[0].mxu0 }
  0xfb   : > { %v3010_v43 = vpop.f32.mrb[1].mxu0  ;;  %1944 = vmatmul.mubr.bf16.gmra.mrb[104].mxu0 %v4490_v28 }
  0xfc   : > { %v4647_v12 = vadd.f32 %v3010_v43, %v3009_v21  ;;  %v3012_v14 = vpop.f32.mrb[2].mxu0  ;;  %1951 = vmatprep.mubr.bf16.mxu0 %v4002_v62 }
  0xfd   : > { %v3013_v5 = vpop.f32.mrb[3].mxu0 }
  0xfe   : > { %v4650_v40 = vadd.f32 %v3013_v5, %v3012_v14 }
 0x100   : > { %3490 = vmatmul.mubr.bf16.gmra.mrb[8].mxu1 %v4207_v38 }
 0x101   : > { %3493 = vmatprep.mubr.bf16.mxu1 %v4236_v46 }
 0x102   : > { %v3015_v57 = vpop.f32.mrb[4].mxu0 }
 0x103   : > { %v3016_v16 = vpop.f32.mrb[5].mxu0  ;;  %1952 = vmatmul.mubr.bf16.gmra.mrb[108].mxu0 %v4334_v24 }
 0x104   : > { %v4655_v22 = vadd.f32 %v3016_v16, %v3015_v57  ;;  %v3018_v31 = vpop.f32.mrb[6].mxu0  ;;  %1959 = vmatprep.mubr.bf16.mxu0 %v4008_v6 }
 0x105   : > { %v3019_v19 = vpop.f32.mrb[7].mxu0 }
 0x106   : > { %v4658_v0 = vadd.f32 %v3019_v19, %v3018_v31 }
 0x108   : > { %3494 = vmatmul.mubr.bf16.gmra.mrb[12].mxu1 %v4286_v3 }
 0x109   : > { %3513 = vmatprep.mubr.bf16.mxu1 %v4429_v33 }
 0x10a   : > { %v3021_v62 = vpop.f32.mrb[8].mxu0 }
 0x10b   : > { %1960 = vmatmul.mubr.bf16.gmra.mrb[112].mxu0 %v4343_v52  ;;  %v3022_v28 = vpop.f32.mrb[9].mxu0 }
 0x10c   : > { %v4664_v7 = vadd.f32 %v3022_v28, %v3021_v62  ;;  %v3024_v8 = vpop.f32.mrb[10].mxu0  ;;  %1967 = vmatprep.mubr.bf16.mxu0 %v4080_v55 }
 0x10d   : > { %v3025_v9 = vpop.f32.mrb[11].mxu0 }
 0x10e   : > { %v4667_v23 = vadd.f32 %v3025_v9, %v3024_v8 }
 0x110   : > { %3514 = vmatmul.mubr.bf16.vlgmr.msra.gmra.mrb[80].mxu1 %v4446_v17 }
 0x111   : > { %3517 = vmatprep.mubr.bf16.mxu1 %v4457_v36 }
 0x113   : > { %1968 = vmatmul.mubr.bf16.gmra.mrb[116].mxu0 %v4367_v4 }
 0x114   : > { %1975 = vmatprep.mubr.bf16.mxu0 %v4095_v15 }
 0x115   : > { %v3027_v6 = vpop.f32.mrb[12].mxu0 }
 0x116   : > { %v3028_v24 = vpop.f32.mrb[13].mxu0 }
 0x117   : > { %v4673_v52 = vadd.f32 %v3028_v24, %v3027_v6  ;;  %v3030_v33 = vpop.f32.mrb[14].mxu0 }
 0x118   : > { %v3031_v41 = vpop.f32.mrb[15].mxu0  ;;  %3518 = vmatmul.mubr.bf16.gmra.mrb[84].mxu1 %v4461_v26 }
 0x119   : > { %v4676_v55 = vadd.f32 %v3031_v41, %v3030_v33  ;;  %3521 = vmatprep.mubr.bf16.mxu1 %v4466_v49 }
 0x11b   : > { %1976 = vmatmul.mubr.bf16.gmra.mrb[120].mxu0 %v4384_v48 }
 0x11c   : > { %1983 = vmatprep.mubr.bf16.mxu0 %v4147_v63 }
 0x11e   : > { %v3033_v17 = vpop.f32.mrb[16].mxu0 }
 0x11f   : > { %v3034_v4 = vpop.f32.mrb[17].mxu0 }
 0x120   : > { %3522 = vmatmul.mubr.bf16.gmra.mrb[88].mxu1 %v4475_v47  ;;  %v4682_v36 = vadd.f32 %v3034_v4, %v3033_v17  ;;  %v3036_v15 = vpop.f32.mrb[18].mxu0 }
 0x121   : > { %3525 = vmatprep.mubr.bf16.mxu1 %v4479_v42  ;;  %v3037_v58 = vpop.f32.mrb[19].mxu0 }
 0x122   : > { %v4685_v26 = vadd.f32 %v3037_v58, %v3036_v15 }
 0x123   : > { %v3145_v39 = vpop.f32.mrb[16].mxu1  ;;  %1984 = vmatmul.mubr.bf16.gmra.mrb[124].mxu0 %v4388_v34 }
 0x124   : > { %v3146_v18 = vpop.f32.mrb[17].mxu1  ;;  %1991 = vmatprep.mubr.bf16.mxu0 %v4178_v51 }
 0x125   : > { %v4688_v49 = vadd.f32 %v3146_v18, %v3145_v39  ;;  %v3148_v48 = vpop.f32.mrb[18].mxu1 }
 0x126   : > { %v3149_v63 = vpop.f32.mrb[19].mxu1  ;;  %v3039_v11 = vpop.f32.mrb[20].mxu0 }
 0x127   : > { %v4691_v47 = vadd.f32 %v3149_v63, %v3148_v48  ;;  %v3040_v45 = vpop.f32.mrb[21].mxu0 }
 0x128   : > { %3526 = vmatmul.mubr.bf16.gmra.mrb[92].mxu1 %v4059_v44  ;;  %v4694_v42 = vadd.f32 %v3040_v45, %v3039_v11  ;;  %v3042_v29 = vpop.f32.mrb[22].mxu0 }
 0x129   : > { %3529 = vmatprep.mubr.bf16.mxu1 %v4071_v50  ;;  %v3043_v20 = vpop.f32.mrb[23].mxu0 }
 0x12a   : > { %v4697_v34 = vadd.f32 %v3043_v20, %v3042_v29 }
 0x12b   : > { %v3151_v2 = vpop.f32.mrb[20].mxu1  ;;  %1992 = vmatmul.mubr.bf16.gmra.mrb[128].mxu0 %v4400_v56 }
 0x12c   : > { %v3152_v35 = vpop.f32.mrb[21].mxu1  ;;  %1999 = vmatprep.mubr.bf16.mxu0 %v4225_v60 }
 0x12d   : > { %v4700_v51 = vadd.f32 %v3152_v35, %v3151_v2  ;;  %v3154_v30 = vpop.f32.mrb[22].mxu1 }
 0x12e   : > { %v3155_v54 = vpop.f32.mrb[23].mxu1  ;;  %v3045_v59 = vpop.f32.mrb[24].mxu0 }
 0x12f   : > { %v4703_v44 = vadd.f32 %v3155_v54, %v3154_v30  ;;  %v3046_v13 = vpop.f32.mrb[25].mxu0 }
 0x130   : > { %3530 = vmatmul.mubr.bf16.gmra.mrb[0].mxu1 %v4132_v53  ;;  %v4706_v50 = vadd.f32 %v3046_v13, %v3045_v59  ;;  %v3048_v61 = vpop.f32.mrb[26].mxu0 }
 0x131   : > { %3533 = vmatprep.mubr.bf16.mxu1 %v4156_v25  ;;  %v3049_v21 = vpop.f32.mrb[27].mxu0 }
 0x132   : > { %v4709_v56 = vadd.f32 %v3049_v21, %v3048_v61 }
 0x133   : > { %v3157_v43 = vpop.f32.mrb[24].mxu1  ;;  %2000 = vmatmul.mubr.bf16.gmra.mrb[132].mxu0 %v4406_v32 }
 0x134   : > { %v3158_v14 = vpop.f32.mrb[25].mxu1  ;;  %2007 = vmatprep.mubr.bf16.mxu0 %v4249_v1 }
 0x135   : > { %v4712_v60 = vadd.f32 %v3158_v14, %v3157_v43  ;;  %v3160_v5 = vpop.f32.mrb[26].mxu1 }
 0x136   : > { %v3161_v57 = vpop.f32.mrb[27].mxu1  ;;  %v3051_v16 = vpop.f32.mrb[28].mxu0 }
 0x137   : > { %v4715_v53 = vadd.f32 %v3161_v57, %v3160_v5  ;;  %v3052_v31 = vpop.f32.mrb[29].mxu0 }
 0x138   : > { %3534 = vmatmul.mubr.bf16.gmra.mrb[4].mxu1 %v4207_v38  ;;  %v4718_v25 = vadd.f32 %v3052_v31, %v3051_v16  ;;  %v3054_v19 = vpop.f32.mrb[30].mxu0 }
 0x139   : > { %3537 = vmatprep.mubr.bf16.mxu1 %v4236_v46  ;;  %v3055_v62 = vpop.f32.mrb[31].mxu0 }
 0x13a   : > { %v4721_v32 = vadd.f32 %v3055_v62, %v3054_v19 }
 0x13b   : > { %v3163_v28 = vpop.f32.mrb[28].mxu1  ;;  %2008 = vmatmul.mubr.bf16.gmra.mrb[136].mxu0 %v4425_v10 }
 0x13c   : > { %v3164_v8 = vpop.f32.mrb[29].mxu1  ;;  %2015 = vmatprep.mubr.bf16.mxu0 %v3810_v27 }
 0x13d   : > { %v4724_v1 = vadd.f32 %v3164_v8, %v3163_v28  ;;  %v3166_v9 = vpop.f32.mrb[30].mxu1 }
 0x13e   : > { %v3167_v6 = vpop.f32.mrb[31].mxu1  ;;  %v3057_v24 = vpop.f32.mrb[32].mxu0 }
 0x13f   : > { %v4727_v38 = vadd.f32 %v3167_v6, %v3166_v9  ;;  %v3058_v33 = vpop.f32.mrb[33].mxu0 }
 0x140   : > { %3538 = vmatmul.mubr.bf16.gmra.mrb[8].mxu1 %v4286_v3  ;;  %v3059_v46 = vadd.f32 %v3058_v33, %v3057_v24  ;;  %v3060_v41 = vpop.f32.mrb[34].mxu0 }
 0x141   : > { %3541 = vmatprep.mubr.bf16.mxu1 %v4301_v37  ;;  %v3061_v17 = vpop.f32.mrb[35].mxu0 }
 0x142   : > { %v3062_v15 = vadd.f32 %v3061_v17, %v3060_v41 }
 0x143   : > { %v3169_v4 = vpop.f32.mrb[32].mxu1  ;;  %2016 = vmatmul.mubr.bf16.gmra.mrb[140].mxu0 %v3810_v27 }
 0x144   : > { %v3170_v10 = vpop.f32.mrb[33].mxu1 }
 0x145   : > { %v4732_v58 = vadd.f32 %v3170_v10, %v3169_v4  ;;  %v3172_v39 = vpop.f32.mrb[34].mxu1 }
 0x146   : > { %v3173_v18 = vpop.f32.mrb[35].mxu1  ;;  %v3063_v63 = vpop.f32.mrb[36].mxu0 }
 0x147   : > { %v4734_v48 = vadd.f32 %v3173_v18, %v3172_v39  ;;  %v3064_v3 = vpop.f32.mrb[37].mxu0 }
 0x148   : > { %3542 = vmatmul.mubr.bf16.gmra.mrb[12].mxu1 %v3810_v27  ;;  %v3065_v11 = vadd.f32 %v3064_v3, %v3063_v63  ;;  %v3066_v45 = vpop.f32.mrb[38].mxu0 }
 0x149   : > { %v3067_v29 = vpop.f32.mrb[39].mxu0 }
 0x14a   : > { %v3068_v20 = vadd.f32 %v3067_v29, %v3066_v45 }
 0x14b   : > { %v3175_v37 = vpop.f32.mrb[36].mxu1 }
 0x14c   : > { %v3176_v2 = vpop.f32.mrb[37].mxu1 }
 0x14d   : > { %v4737_v35 = vadd.f32 %v3176_v2, %v3175_v37  ;;  %v3178_v30 = vpop.f32.mrb[38].mxu1 }
 0x14e   : > { %v3179_v54 = vpop.f32.mrb[39].mxu1  ;;  %v3069_v13 = vpop.f32.mrb[40].mxu0 }
 0x14f   : > { %v4739_v59 = vadd.f32 %v3179_v54, %v3178_v30  ;;  %v3070_v61 = vpop.f32.mrb[41].mxu0 }
 0x150   : > { %v3071_v21 = vadd.f32 %v3070_v61, %v3069_v13  ;;  %v3072_v43 = vpop.f32.mrb[42].mxu0 }
 0x151   : > { %v3073_v14 = vpop.f32.mrb[43].mxu0 }
 0x152   : > { %v3074_v27 = vadd.f32 %v3073_v14, %v3072_v43 }
 0x153   : > { %v3181_v5 = vpop.f32.mrb[40].mxu1 }
 0x154   : > { %v3182_v57 = vpop.f32.mrb[41].mxu1 }
 0x155   : > { %v4741_v16 = vadd.f32 %v3182_v57, %v3181_v5  ;;  %v3184_v31 = vpop.f32.mrb[42].mxu1 }
 0x156   : > { %v3185_v19 = vpop.f32.mrb[43].mxu1  ;;  %v3075_v28 = vpop.f32.mrb[44].mxu0 }
 0x157   : > { %v4743_v62 = vadd.f32 %v3185_v19, %v3184_v31  ;;  %v3076_v8 = vpop.f32.mrb[45].mxu0 }
 0x158   : > { %v4745_v9 = vadd.f32 %v3076_v8, %v3075_v28  ;;  %v3078_v6 = vpop.f32.mrb[46].mxu0 }
 0x159   : > { %v3079_v24 = vpop.f32.mrb[47].mxu0 }
 0x15a   : > { %v4747_v41 = vadd.f32 %v3079_v24, %v3078_v6 }
 0x15b   : > { %v3187_v33 = vpop.f32.mrb[44].mxu1 }
 0x15c   : > { %v3188_v17 = vpop.f32.mrb[45].mxu1 }
 0x15d   : > { %v4749_v4 = vadd.f32 %v3188_v17, %v3187_v33  ;;  %v3190_v10 = vpop.f32.mrb[46].mxu1 }
 0x15e   : > { %v3191_v39 = vpop.f32.mrb[47].mxu1  ;;  %v3081_v63 = vpop.f32.mrb[48].mxu0 }
 0x15f   : > { %v4751_v18 = vadd.f32 %v3191_v39, %v3190_v10  ;;  %v3082_v3 = vpop.f32.mrb[49].mxu0 }
 0x160   : > { %v4753_v45 = vadd.f32 %v3082_v3, %v3081_v63  ;;  %v3084_v29 = vpop.f32.mrb[50].mxu0 }
 0x161   : > { %v3085_v37 = vpop.f32.mrb[51].mxu0 }
 0x162   : > { %v4755_v30 = vadd.f32 %v3085_v37, %v3084_v29 }
 0x163   : > { %v3193_v2 = vpop.f32.mrb[48].mxu1 }
 0x164   : > { %v3194_v54 = vpop.f32.mrb[49].mxu1 }
 0x165   : > { %v3195_v13 = vadd.f32 %v3194_v54, %v3193_v2  ;;  %v3196_v61 = vpop.f32.mrb[50].mxu1 }
 0x166   : > { %v3197_v43 = vpop.f32.mrb[51].mxu1  ;;  %v3087_v57 = vpop.f32.mrb[52].mxu0 }
 0x167   : > { %v4757_v14 = vadd.f32 %v3195_v13, %v3059_v46  ;;  %v3198_v5 = vadd.f32 %v3197_v43, %v3196_v61  ;;  %v3088_v31 = vpop.f32.mrb[53].mxu0 }
 0x168   : > { %v4761_v28 = vadd.f32 %v3088_v31, %v3087_v57  ;;  %v3090_v8 = vpop.f32.mrb[54].mxu0 }
 0x169   : > { %v4759_v19 = vadd.f32 %v3198_v5, %v3062_v15  ;;  %v3091_v6 = vpop.f32.mrb[55].mxu0 }
 0x16a   : > { %v4763_v33 = vadd.f32 %v3091_v6, %v3090_v8 }
 0x16b   : > { %v3199_v24 = vpop.f32.mrb[52].mxu1 }
 0x16c   : > { %v3200_v17 = vpop.f32.mrb[53].mxu1 }
 0x16d   : > { %v3201_v10 = vadd.f32 %v3200_v17, %v3199_v24  ;;  %v3202_v39 = vpop.f32.mrb[54].mxu1 }
 0x16e   : > { %v3203_v63 = vpop.f32.mrb[55].mxu1  ;;  %v3093_v29 = vpop.f32.mrb[56].mxu0 }
 0x16f   : > { %v4765_v3 = vadd.f32 %v3201_v10, %v3065_v11  ;;  %v3204_v46 = vadd.f32 %v3203_v63, %v3202_v39  ;;  %v3094_v37 = vpop.f32.mrb[57].mxu0 }
 0x170   : > { %v4769_v15 = vadd.f32 %v3094_v37, %v3093_v29  ;;  %v3096_v54 = vpop.f32.mrb[58].mxu0 }
 0x171   : > { %v4767_v2 = vadd.f32 %v3204_v46, %v3068_v20  ;;  %v3097_v13 = vpop.f32.mrb[59].mxu0 }
 0x172   : > { %v4771_v43 = vadd.f32 %v3097_v13, %v3096_v54 }
 0x173   : > { %v3205_v61 = vpop.f32.mrb[56].mxu1 }
 0x174   : > { %v3206_v5 = vpop.f32.mrb[57].mxu1 }
 0x175   : > { %v3207_v57 = vadd.f32 %v3206_v5, %v3205_v61  ;;  %v3208_v31 = vpop.f32.mrb[58].mxu1 }
 0x176   : > { %v3209_v8 = vpop.f32.mrb[59].mxu1  ;;  %v3099_v24 = vpop.f32.mrb[60].mxu0 }
 0x177   : > { %v4773_v6 = vadd.f32 %v3207_v57, %v3071_v21  ;;  %v3210_v11 = vadd.f32 %v3209_v8, %v3208_v31  ;;  %v3100_v17 = vpop.f32.mrb[61].mxu0 }
 0x178   : > { %v4777_v20 = vadd.f32 %v3100_v17, %v3099_v24  ;;  %v3102_v39 = vpop.f32.mrb[62].mxu0 }
 0x179   : > { %v4775_v10 = vadd.f32 %v3210_v11, %v3074_v27  ;;  %v3103_v63 = vpop.f32.mrb[63].mxu0 }
 0x17a   : > { %v4779_v29 = vadd.f32 %v3103_v63, %v3102_v39 }
 0x17b   : > { %v3211_v46 = vpop.f32.mrb[60].mxu1 }
 0x17c   : > { %v3212_v37 = vpop.f32.mrb[61].mxu1 }
 0x17d   : > { %v3213_v54 = vadd.f32 %v3212_v37, %v3211_v46  ;;  %v3214_v13 = vpop.f32.mrb[62].mxu1 }
 0x17e   : > { %v3215_v61 = vpop.f32.mrb[63].mxu1  ;;  %v3419_v57 = vpop.f32.mrb[64].mxu0 }
 0x17f   : > { %v4782_v5 = vadd.f32 %v3213_v54, %v4745_v9  ;;  %v3216_v21 = vadd.f32 %v3215_v61, %v3214_v13  ;;  %v1086_v31 = vadd.f32 %v3419_v57, %v4655_v22  ;;  %v1077_v27 = vpop.f32.mrb[65].mxu0 }
 0x180   : > { %v1078_v11 = vadd.f32 %v4647_v12, %v1077_v27  ;;  %v3420_v24 = vpop.f32.mrb[66].mxu0 }
 0x181   : > { %v4786_v8 = vadd.f32 %v3216_v21, %v4747_v41  ;;  %v4790_v17 = vadd.f32 %v4700_v51, %v1086_v31  ;;  %v1089_v39 = vadd.f32 %v3420_v24, %v4658_v0  ;;  %v1080_v63 = vpop.f32.mrb[67].mxu0 }
 0x182   : > { %v4794_v9 = vadd.f32 %v4688_v49, %v1078_v11  ;;  %v1081_v37 = vadd.f32 %v4650_v40, %v1080_v63 }
 0x183   : > { %v3217_v46 = vpop.f32.mrb[64].mxu1  ;;  %v4798_v54 = vadd.f32 %v4703_v44, %v1089_v39 }
 0x184   : > { %v3218_v22 = vpop.f32.mrb[65].mxu1  ;;  %v4801_v12 = vadd.f32 %v4691_v47, %v1081_v37 }
 0x185   : > { %v3219_v41 = vadd.f32 %v3218_v22, %v3217_v46  ;;  %v3220_v13 = vpop.f32.mrb[66].mxu1 }
 0x186   : > { %v3221_v51 = vpop.f32.mrb[67].mxu1  ;;  %v3423_v21 = vpop.f32.mrb[68].mxu0 }
 0x187   : > { %v4804_v61 = vadd.f32 %v3219_v41, %v4753_v45  ;;  %v3222_v0 = vadd.f32 %v3221_v51, %v3220_v13  ;;  %v1102_v49 = vadd.f32 %v3423_v21, %v4673_v52  ;;  %v1093_v57 = vpop.f32.mrb[69].mxu0 }
 0x188   : > { %v1094_v44 = vadd.f32 %v4664_v7, %v1093_v57  ;;  %v3424_v31 = vpop.f32.mrb[70].mxu0 }
 0x189   : > { %v4808_v40 = vadd.f32 %v3222_v0, %v4755_v30  ;;  %v4812_v27 = vadd.f32 %v4724_v1, %v1102_v49  ;;  %v1105_v47 = vadd.f32 %v3424_v31, %v4676_v55  ;;  %v1096_v11 = vpop.f32.mrb[71].mxu0 }
 0x18a   : > { %v4816_v45 = vadd.f32 %v4712_v60, %v1094_v44  ;;  %v1097_v39 = vadd.f32 %v4667_v23, %v1096_v11 }
 0x18b   : > { %v3223_v24 = vpop.f32.mrb[68].mxu1  ;;  %v4820_v63 = vadd.f32 %v4727_v38, %v1105_v47 }
 0x18c   : > { %v3224_v52 = vpop.f32.mrb[69].mxu1  ;;  %v4823_v7 = vadd.f32 %v4715_v53, %v1097_v39 }
 0x18d   : > { %v3225_v30 = vadd.f32 %v3224_v52, %v3223_v24  ;;  %v3226_v46 = vpop.f32.mrb[70].mxu1 }
 0x18e   : > { %v3227_v1 = vpop.f32.mrb[71].mxu1  ;;  %v3427_v22 = vpop.f32.mrb[72].mxu0 }
 0x18f   : > { %v4826_v37 = vadd.f32 %v3225_v30, %v4761_v28  ;;  %v3228_v55 = vadd.f32 %v3227_v1, %v3226_v46  ;;  %v1118_v60 = vadd.f32 %v3427_v22, %v4694_v42  ;;  %v1109_v41 = vpop.f32.mrb[73].mxu0 }
 0x190   : > { %v1110_v38 = vadd.f32 %v4682_v36, %v1109_v41  ;;  %v3428_v13 = vpop.f32.mrb[74].mxu0 }
 0x191   : > { %v4830_v23 = vadd.f32 %v3228_v55, %v4763_v33  ;;  %v4834_v51 = vadd.f32 %v4737_v35, %v1118_v60  ;;  %v1121_v53 = vadd.f32 %v3428_v13, %v4697_v34  ;;  %v1112_v0 = vpop.f32.mrb[75].mxu0 }
 0x192   : > { %v4838_v28 = vadd.f32 %v4732_v58, %v1110_v38  ;;  %v1113_v49 = vadd.f32 %v4685_v26, %v1112_v0 }
 0x193   : > { %v3229_v21 = vpop.f32.mrb[72].mxu1  ;;  %v4842_v57 = vadd.f32 %v4739_v59, %v1121_v53 }
 0x194   : > { %v3230_v42 = vpop.f32.mrb[73].mxu1  ;;  %v4845_v36 = vadd.f32 %v4734_v48, %v1113_v49 }
 0x195   : > { %v3231_v33 = vadd.f32 %v3230_v42, %v3229_v21  ;;  %v3232_v44 = vpop.f32.mrb[74].mxu1 }
 0x196   : > { %v3233_v35 = vpop.f32.mrb[75].mxu1  ;;  %v3431_v47 = vpop.f32.mrb[76].mxu0 }
 0x197   : > { %v4848_v31 = vadd.f32 %v3231_v33, %v4769_v15  ;;  %v3234_v34 = vadd.f32 %v3233_v35, %v3232_v44  ;;  %v1134_v58 = vadd.f32 %v3431_v47, %v4718_v25  ;;  %v1125_v11 = vpop.f32.mrb[77].mxu0 }
 0x198   : > { %v1126_v59 = vadd.f32 %v4706_v50, %v1125_v11  ;;  %v3432_v24 = vpop.f32.mrb[78].mxu0 }
 0x199   : > { %v4852_v26 = vadd.f32 %v3234_v34, %v4771_v43  ;;  %v4856_v39 = vadd.f32 %v4749_v4, %v1134_v58  ;;  %v1137_v48 = vadd.f32 %v3432_v24, %v4721_v32  ;;  %v1128_v52 = vpop.f32.mrb[79].mxu0 }
 0x19a   : > { %v4860_v15 = vadd.f32 %v4741_v16, %v1126_v59  ;;  %v1129_v46 = vadd.f32 %v4709_v56, %v1128_v52 }
 0x19b   : > { %v3235_v30 = vpop.f32.mrb[76].mxu1  ;;  %v4864_v1 = vadd.f32 %v4751_v18, %v1137_v48 }
 0x19c   : > { %v3236_v25 = vpop.f32.mrb[77].mxu1  ;;  %v1434_v50 = vadd.f32 %v4743_v62, %v1129_v46 }
 0x19d   : > { %v3237_v43 = vadd.f32 %v3236_v25, %v3235_v30  ;;  %v3238_v55 = vpop.f32.mrb[78].mxu1 }
 0x19e   : > { %v3239_v22 = vpop.f32.mrb[79].mxu1  ;;  %v3281_v60 = vpop.f32.mrb[80].mxu0 }
 0x19f   : > { %v4868_v4 = vadd.f32 %v3237_v43, %v4777_v20  ;;  %v3240_v32 = vadd.f32 %v3239_v22, %v3238_v55  ;;  %v3282_v41 = vpop.f32.mrb[81].mxu0 }
 0x1a0   : > { %v3283_v38 = vadd.f32 %v3282_v41, %v3281_v60  ;;  %v3284_v56 = vpop.f32.mrb[82].mxu0 }
 0x1a1   : > { %v4871_v16 = vadd.f32 %v3240_v32, %v4779_v29  ;;  %v3285_v13 = vpop.f32.mrb[83].mxu0 }
 0x1a2   : > { %v3286_v53 = vadd.f32 %v3285_v13, %v3284_v56  ;;  %v4874_v18 = vadd.f32 %v3283_v38, %v4794_v9 }
 0x1a4   : > { %v4877_v0 = vadd.f32 %v3286_v53, %v4801_v12 }
 0x1a6   : > { %v3287_v62 = vpop.f32.mrb[84].mxu0 }
 0x1a7   : > { %v3288_v21 = vpop.f32.mrb[85].mxu0 }
 0x1a8   : > { %v3289_v20 = vadd.f32 %v3288_v21, %v3287_v62  ;;  %v3290_v49 = vpop.f32.mrb[86].mxu0 }
 0x1a9   : > { %v3291_v42 = vpop.f32.mrb[87].mxu0 }
 0x1aa   : > { %v3292_v33 = vadd.f32 %v3291_v42, %v3290_v49  ;;  %v3563_v44 = vadd.f32 %v3289_v20, %v4790_v17 }
 0x1ac   : > { %v3571_v29 = vadd.f32 %v3292_v33, %v4798_v54 }
 0x1ae   : > { %v3293_v35 = vpop.f32.mrb[88].mxu0 }
 0x1af   : > { %v3294_v34 = vpop.f32.mrb[89].mxu0 }
 0x1b0   : > { %v3295_v47 = vadd.f32 %v3294_v34, %v3293_v35  ;;  %v3296_v58 = vpop.f32.mrb[90].mxu0 }
 0x1b1   : > { %v3297_v11 = vpop.f32.mrb[91].mxu0 }
 0x1b2   : > { %v3298_v9 = vadd.f32 %v3297_v11, %v3296_v58  ;;  %v4882_v59 = vadd.f32 %v3295_v47, %v4816_v45 }
 0x1b4   : > { %v4885_v12 = vadd.f32 %v3298_v9, %v4823_v7 }
 0x1b6   : > { %v3299_v24 = vpop.f32.mrb[92].mxu0 }
 0x1b7   : > { %v3300_v48 = vpop.f32.mrb[93].mxu0 }
 0x1b8   : > { %v3301_v52 = vadd.f32 %v3300_v48, %v3299_v24  ;;  %v3302_v30 = vpop.f32.mrb[94].mxu0 }
 0x1b9   : > { %v3303_v46 = vpop.f32.mrb[95].mxu0 }
 0x1ba   : > { %v3304_v17 = vadd.f32 %v3303_v46, %v3302_v30  ;;  %v4888_v54 = vadd.f32 %v3301_v52, %v4812_v27 }
 0x1bc   : > { %v4891_v25 = vadd.f32 %v3304_v17, %v4820_v63 }
 0x1be   : > { %v3305_v43 = vpop.f32.mrb[96].mxu0 }
 0x1bf   : > { %v3306_v55 = vpop.f32.mrb[97].mxu0 }
 0x1c0   : > { %v3307_v22 = vadd.f32 %v3306_v55, %v3305_v43  ;;  %v3308_v45 = vpop.f32.mrb[98].mxu0 }
 0x1c1   : > { %v3309_v32 = vpop.f32.mrb[99].mxu0 }
 0x1c2   : > { %v3310_v60 = vadd.f32 %v3309_v32, %v3308_v45  ;;  %v4894_v7 = vadd.f32 %v3307_v22, %v4838_v28 }
 0x1c4   : > { %v4897_v41 = vadd.f32 %v3310_v60, %v4845_v36 }
 0x1c6   : > { %v3311_v38 = vpop.f32.mrb[100].mxu0 }
 0x1c7   : > { %v3312_v56 = vpop.f32.mrb[101].mxu0 }
 0x1c8   : > { %v3313_v13 = vadd.f32 %v3312_v56, %v3311_v38  ;;  %v3314_v27 = vpop.f32.mrb[102].mxu0 }
 0x1c9   : > { %v3315_v53 = vpop.f32.mrb[103].mxu0 }
 0x1ca   : > { %v3316_v62 = vadd.f32 %v3315_v53, %v3314_v27  ;;  %v4900_v63 = vadd.f32 %v3313_v13, %v4834_v51 }
 0x1cc   : > { %v4903_v21 = vadd.f32 %v3316_v62, %v4842_v57 }
 0x1ce   : > { %v3317_v20 = vpop.f32.mrb[104].mxu0 }
 0x1cf   : > { %v3318_v49 = vpop.f32.mrb[105].mxu0 }
 0x1d0   : > { %v3319_v42 = vadd.f32 %v3318_v49, %v3317_v20  ;;  %v3320_v28 = vpop.f32.mrb[106].mxu0 }
 0x1d1   : > { %v3321_v33 = vpop.f32.mrb[107].mxu0 }
 0x1d2   : > { %v3322_v35 = vadd.f32 %v3321_v33, %v3320_v28  ;;  %v4906_v36 = vadd.f32 %v3319_v42, %v4860_v15 }
 0x1d4   : > { %v4908_v34 = vadd.f32 %v3322_v35, %v1434_v50 }
 0x1d6   : > { %v3323_v47 = vpop.f32.mrb[108].mxu0 }
 0x1d7   : > { %v3324_v58 = vpop.f32.mrb[109].mxu0 }
 0x1d8   : > { %v3325_v11 = vadd.f32 %v3324_v58, %v3323_v47  ;;  %v3326_v9 = vpop.f32.mrb[110].mxu0 }
 0x1d9   : > { %v3327_v51 = vpop.f32.mrb[111].mxu0 }
 0x1da   : > { %v3328_v24 = vadd.f32 %v3327_v51, %v3326_v9  ;;  %v4911_v57 = vadd.f32 %v3325_v11, %v4856_v39 }
 0x1dc   : > { %v4914_v48 = vadd.f32 %v3328_v24, %v4864_v1 }
 0x1de   : > { %v3329_v52 = vpop.f32.mrb[112].mxu0 }
 0x1df   : > { %v3330_v30 = vpop.f32.mrb[113].mxu0 }
 0x1e0   : > { %v3331_v46 = vadd.f32 %v3330_v30, %v3329_v52  ;;  %v3332_v15 = vpop.f32.mrb[114].mxu0 }
 0x1e1   : > { %v3333_v17 = vpop.f32.mrb[115].mxu0 }
 0x1e2   : > { %v3334_v43 = vadd.f32 %v3333_v17, %v3332_v15  ;;  %v4917_v55 = vadd.f32 %v4757_v14, %v3331_v46 }
 0x1e3   : > { %v3515_v50 = vpop.f32.mrb[80].mxu1 }
 0x1e4   : > { %v3564_v22 = vadd.f32 %v3563_v44, %v3515_v50  ;;  %v2058_v45 = vpop.f32.mrb[81].mxu1  ;;  %v4921_v60 = vadd.f32 %v4759_v19, %v3334_v43 }
 0x1e5   : > { %v3568_v32 = vadd.f32 %v4874_v18, %v2058_v45  ;;  %v3516_v39 = vpop.f32.mrb[82].mxu1 }
 0x1e6   : > { %v3572_v1 = vadd.f32 %v3571_v29, %v3516_v39  ;;  %v2061_v38 = vpop.f32.mrb[83].mxu1  ;;  %v3335_v44 = vpop.f32.mrb[116].mxu0  ;;  %v2417_v20 = vmul.f32 %v3564_v22, %v3564_v22 }
 0x1e7   : > { %v3576_v14 = vadd.f32 %v4877_v0, %v2061_v38  ;;  %v2415_v56 = vmul.f32 %v3568_v32, %v3568_v32  ;;  %v3336_v18 = vpop.f32.mrb[117].mxu0 }
 0x1e8   : > { %v2891_v13 = vpack.c.bf16 %v3572_v1, %v3564_v22  ;;  %v3337_v62 = vadd.f32 %v3336_v18, %v3335_v44  ;;  %v3338_v29 = vpop.f32.mrb[118].mxu0  ;;  %v2418_v0 = vmul.f32 %v3572_v1, %v3572_v1 }
 0x1e9   : > { %v2886_v27 = vpack.c.bf16 %v3576_v14, %v3568_v32  ;;  %v2377_v53 = vadd.f32 %v3576_v14, %v3568_v32  ;;  %v2416_v19 = vmul.f32 %v3576_v14, %v3576_v14  ;;  %v3339_v49 = vpop.f32.mrb[119].mxu0 }
 0x1ea   : > { %2978 = vst [vmem:[%s4928_s20 + $0x8] sm:$0xff] %v2891_v13   ;;  %v3340_v35 = vadd.f32 %v3339_v49, %v3338_v29  ;;  %v4934_v47 = vadd.f32 %v4765_v3, %v3337_v62 }
 0x1eb   : > { %2887 = vst [vmem:[%s4928_s20] sm:$0xff] %v2886_v27   ;;  %v2378_v42 = vadd.f32 %v3564_v22, %v2377_v53  ;;  %v2447_v28 = vadd.f32 %v2416_v19, %v2415_v56  ;;  %v3519_v33 = vpop.f32.mrb[84].mxu1 }
 0x1ec   : > { %v3580_v58 = vadd.f32 %v4888_v54, %v3519_v33  ;;  %v2074_v11 = vpop.f32.mrb[85].mxu1  ;;  %v4939_v30 = vadd.f32 %v4767_v2, %v3340_v35 }
 0x1ed   : > { %v2448_v9 = vadd.f32 %v2447_v28, %v2417_v20  ;;  %v3584_v51 = vadd.f32 %v4882_v59, %v2074_v11  ;;  %v2379_v24 = vadd.f32 %v3572_v1, %v2378_v42  ;;  %v3520_v52 = vpop.f32.mrb[86].mxu1 }
 0x1ee   : > { %v3588_v46 = vadd.f32 %v4891_v25, %v3520_v52  ;;  %v2077_v15 = vpop.f32.mrb[87].mxu1  ;;  %v3341_v54 = vpop.f32.mrb[120].mxu0  ;;  %v2421_v44 = vmul.f32 %v3580_v58, %v3580_v58 }
 0x1ef   : > { %v2380_v17 = vadd.f32 %v3584_v51, %v2379_v24  ;;  %v2419_v3 = vmul.f32 %v3584_v51, %v3584_v51  ;;  %v2449_v50 = vadd.f32 %v2448_v9, %v2418_v0  ;;  %v3592_v43 = vadd.f32 %v4885_v12, %v2077_v15  ;;  %v3342_v45 = vpop.f32.mrb[121].mxu0 }
 0x1f0   : > { %v2901_v22 = vpack.c.bf16 %v3588_v46, %v3580_v58  ;;  %v3344_v38 = vpop.f32.mrb[122].mxu0  ;;  %v3343_v2 = vadd.f32 %v3342_v45, %v3341_v54  ;;  %v2422_v27 = vmul.f32 %v3588_v46, %v3588_v46 }
 0x1f1   : > { %v2450_v32 = vadd.f32 %v2449_v50, %v2419_v3  ;;  %v2896_v59 = vpack.c.bf16 %v3592_v43, %v3584_v51  ;;  %v2381_v39 = vadd.f32 %v3592_v43, %v2380_v17  ;;  %v2420_v1 = vmul.f32 %v3592_v43, %v3592_v43  ;;  %v3345_v14 = vpop.f32.mrb[123].mxu0 }
 0x1f2   : > { %2980 = vst [vmem:[%s4928_s20 + $0x18] sm:$0xff] %v2901_v22   ;;  %v3346_v18 = vadd.f32 %v3345_v14, %v3344_v38  ;;  %v4947_v19 = vadd.f32 %v4773_v6, %v3343_v2 }
 0x1f3   : > { %2979 = vst [vmem:[%s4928_s20 + $0x10] sm:$0xff] %v2896_v59   ;;  %v2382_v25 = vadd.f32 %v3580_v58, %v2381_v39  ;;  %v2451_v56 = vadd.f32 %v2450_v32, %v2420_v1  ;;  %v3523_v13 = vpop.f32.mrb[88].mxu1 }
 0x1f4   : > { %v3596_v12 = vadd.f32 %v4900_v63, %v3523_v13  ;;  %v2090_v53 = vpop.f32.mrb[89].mxu1  ;;  %v4951_v42 = vadd.f32 %v4775_v10, %v3346_v18 }
 0x1f5   : > { %v2452_v62 = vadd.f32 %v2451_v56, %v2421_v44  ;;  %v3600_v29 = vadd.f32 %v4894_v7, %v2090_v53  ;;  %v2383_v20 = vadd.f32 %v3588_v46, %v2382_v25  ;;  %v3524_v49 = vpop.f32.mrb[90].mxu1 }
 0x1f6   : > { %v3604_v28 = vadd.f32 %v4903_v21, %v3524_v49  ;;  %v2093_v33 = vpop.f32.mrb[91].mxu1  ;;  %v3347_v6 = vpop.f32.mrb[124].mxu0  ;;  %v2425_v17 = vmul.f32 %v3596_v12, %v3596_v12 }
 0x1f7   : > { %v2384_v35 = vadd.f32 %v3600_v29, %v2383_v20  ;;  %v2423_v0 = vmul.f32 %v3600_v29, %v3600_v29  ;;  %v2453_v63 = vadd.f32 %v2452_v62, %v2422_v27  ;;  %v3608_v58 = vadd.f32 %v4897_v41, %v2093_v33  ;;  %v3348_v9 = vpop.f32.mrb[125].mxu0 }
 0x1f8   : > { %v2911_v11 = vpack.c.bf16 %v3604_v28, %v3596_v12  ;;  %v3350_v46 = vpop.f32.mrb[126].mxu0  ;;  %v3349_v10 = vadd.f32 %v3348_v9, %v3347_v6  ;;  %v2426_v54 = vmul.f32 %v3604_v28, %v3604_v28 }
 0x1f9   : > { %v2454_v51 = vadd.f32 %v2453_v63, %v2423_v0  ;;  %v2906_v7 = vpack.c.bf16 %v3608_v58, %v3600_v29  ;;  %v2385_v24 = vadd.f32 %v3608_v58, %v2384_v35  ;;  %v2424_v52 = vmul.f32 %v3608_v58, %v3608_v58  ;;  %v3351_v15 = vpop.f32.mrb[127].mxu0 }
 0x1fa   : > { %2982 = vst [vmem:[%s4928_s20 + $0x28] sm:$0xff] %v2911_v11   ;;  %v3352_v43 = vadd.f32 %v3351_v15, %v3350_v46  ;;  %v3638_v45 = vadd.f32 %v4782_v5, %v3349_v10 }
 0x1fb   : > { %2981 = vst [vmem:[%s4928_s20 + $0x20] sm:$0xff] %v2906_v7   ;;  %v2386_v21 = vadd.f32 %v3596_v12, %v2385_v24  ;;  %v2455_v3 = vadd.f32 %v2454_v51, %v2424_v52  ;;  %v3527_v50 = vpop.f32.mrb[92].mxu1 }
 0x1fc   : > { %v3612_v41 = vadd.f32 %v4911_v57, %v3527_v50  ;;  %v2106_v22 = vpop.f32.mrb[93].mxu1  ;;  %v4961_v38 = vadd.f32 %v4786_v8, %v3352_v43 }
 0x1fd   : > { %v2456_v32 = vadd.f32 %v2455_v3, %v2425_v17  ;;  %v3616_v59 = vadd.f32 %v4906_v36, %v2106_v22  ;;  %v2387_v39 = vadd.f32 %v3604_v28, %v2386_v21  ;;  %v3528_v1 = vpop.f32.mrb[94].mxu1 }
 0x1fe   : > { %v3620_v2 = vadd.f32 %v4914_v48, %v3528_v1  ;;  %v2109_v14 = vpop.f32.mrb[95].mxu1  ;;  %v3353_v13 = vpop.f32.mrb[128].mxu0  ;;  %v2429_v20 = vmul.f32 %v3612_v41, %v3612_v41 }
 0x1ff   : > { %v2388_v44 = vadd.f32 %v3616_v59, %v2387_v39  ;;  %v2427_v25 = vmul.f32 %v3616_v59, %v3616_v59  ;;  %v2457_v56 = vadd.f32 %v2456_v32, %v2426_v54  ;;  %v3624_v57 = vadd.f32 %v4908_v34, %v2109_v14  ;;  %v3354_v18 = vpop.f32.mrb[129].mxu0 }
 0x200   : > { %v2921_v5 = vpack.c.bf16 %v3620_v2, %v3612_v41  ;;  %v3356_v62 = vpop.f32.mrb[130].mxu0  ;;  %v3355_v8 = vadd.f32 %v3354_v18, %v3353_v13  ;;  %v2430_v35 = vmul.f32 %v3620_v2, %v3620_v2 }
 0x201   : > { %v2458_v27 = vadd.f32 %v2457_v56, %v2427_v25  ;;  %v2916_v36 = vpack.c.bf16 %v3624_v57, %v3616_v59  ;;  %v2389_v12 = vadd.f32 %v3624_v57, %v2388_v44  ;;  %v2428_v53 = vmul.f32 %v3624_v57, %v3624_v57  ;;  %v3357_v29 = vpop.f32.mrb[131].mxu0 }
 0x202   : > { %2984 = vst [vmem:[%s4928_s20 + $0x38] sm:$0xff] %v2921_v5   ;;  %v3358_v33 = vadd.f32 %v3357_v29, %v3356_v62  ;;  %v4969_v63 = vadd.f32 %v4804_v61, %v3355_v8 }
 0x203   : > { %2983 = vst [vmem:[%s4928_s20 + $0x30] sm:$0xff] %v2916_v36   ;;  %v2390_v48 = vadd.f32 %v3612_v41, %v2389_v12  ;;  %v2459_v49 = vadd.f32 %v2458_v27, %v2428_v53  ;;  %v3531_v28 = vpop.f32.mrb[0].mxu1 }
 0x204   : > { %v3627_v34 = vadd.f32 %v4934_v47, %v3531_v28  ;;  %v2122_v0 = vpop.f32.mrb[1].mxu1  ;;  %v4973_v51 = vadd.f32 %v4808_v40, %v3358_v33 }
 0x205   : > { %v2460_v58 = vadd.f32 %v2459_v49, %v2429_v20  ;;  %v3630_v6 = vadd.f32 %v4917_v55, %v2122_v0  ;;  %v2391_v11 = vadd.f32 %v3620_v2, %v2390_v48  ;;  %v3532_v9 = vpop.f32.mrb[2].mxu1 }
 0x206   : > { %v3633_v7 = vadd.f32 %v4939_v30, %v3532_v9  ;;  %v2125_v24 = vpop.f32.mrb[3].mxu1  ;;  %v3359_v61 = vpop.f32.mrb[132].mxu0  ;;  %v2433_v41 = vmul.f32 %v3627_v34, %v3627_v34 }
 0x207   : > { %v2392_v52 = vadd.f32 %v3630_v6, %v2391_v11  ;;  %v2431_v46 = vmul.f32 %v3630_v6, %v3630_v6  ;;  %v2461_v47 = vadd.f32 %v2460_v58, %v2430_v35  ;;  %v3636_v10 = vadd.f32 %v4921_v60, %v2125_v24  ;;  %v3360_v17 = vpop.f32.mrb[133].mxu0 }
 0x208   : > { %v2931_v15 = vpack.c.bf16 %v3633_v7, %v3627_v34  ;;  %v3362_v43 = vpop.f32.mrb[134].mxu0  ;;  %v3361_v40 = vadd.f32 %v3360_v17, %v3359_v61  ;;  %v2434_v39 = vmul.f32 %v3633_v7, %v3633_v7 }
 0x209   : > { %v2462_v21 = vadd.f32 %v2461_v47, %v2431_v46  ;;  %v2926_v55 = vpack.c.bf16 %v3636_v10, %v3630_v6  ;;  %v2393_v3 = vadd.f32 %v3636_v10, %v2392_v52  ;;  %v2432_v50 = vmul.f32 %v3636_v10, %v3636_v10  ;;  %v3363_v54 = vpop.f32.mrb[135].mxu0 }
 0x20a   : > { %2986 = vst [vmem:[%s4928_s20 + $0x48] sm:$0xff] %v2931_v15   ;;  %v3364_v59 = vadd.f32 %v3363_v54, %v3362_v43  ;;  %v3650_v2 = vadd.f32 %v4826_v37, %v3361_v40 }
 0x20b   : > { %2985 = vst [vmem:[%s4928_s20 + $0x40] sm:$0xff] %v2926_v55   ;;  %v2394_v30 = vadd.f32 %v3627_v34, %v2393_v3  ;;  %v2463_v22 = vadd.f32 %v2462_v21, %v2432_v50  ;;  %v3535_v32 = vpop.f32.mrb[4].mxu1 }
 0x20c   : > { %v3639_v1 = vadd.f32 %v3638_v45, %v3535_v32  ;;  %v2138_v60 = vpop.f32.mrb[5].mxu1  ;;  %v3656_v57 = vadd.f32 %v4830_v23, %v3364_v59 }
 0x20d   : > { %v2464_v14 = vadd.f32 %v2463_v22, %v2433_v41  ;;  %v3642_v44 = vadd.f32 %v4947_v19, %v2138_v60  ;;  %v2395_v25 = vadd.f32 %v3633_v7, %v2394_v30  ;;  %v3536_v56 = vpop.f32.mrb[6].mxu1 }
 0x20e   : > { %v3645_v13 = vadd.f32 %v4961_v38, %v3536_v56  ;;  %v2141_v5 = vpop.f32.mrb[7].mxu1  ;;  %v3365_v12 = vpop.f32.mrb[136].mxu0  ;;  %v2437_v49 = vmul.f32 %v3639_v1, %v3639_v1 }
 0x20f   : > { %v2396_v18 = vadd.f32 %v3642_v44, %v2395_v25  ;;  %v2435_v27 = vmul.f32 %v3642_v44, %v3642_v44  ;;  %v2465_v36 = vadd.f32 %v2464_v14, %v2434_v39  ;;  %v3648_v45 = vadd.f32 %v4951_v42, %v2141_v5  ;;  %v3366_v37 = vpop.f32.mrb[137].mxu0 }
 0x210   : > { %v2941_v53 = vpack.c.bf16 %v3645_v13, %v3639_v1  ;;  %v3368_v20 = vpop.f32.mrb[138].mxu0  ;;  %v3367_v48 = vadd.f32 %v3366_v37, %v3365_v12  ;;  %v2438_v34 = vmul.f32 %v3645_v13, %v3645_v13 }
 0x211   : > { %v2466_v62 = vadd.f32 %v2465_v36, %v2435_v27  ;;  %v2936_v8 = vpack.c.bf16 %v3648_v45, %v3642_v44  ;;  %v2397_v19 = vadd.f32 %v3648_v45, %v2396_v18  ;;  %v2436_v29 = vmul.f32 %v3648_v45, %v3648_v45  ;;  %v3369_v23 = vpop.f32.mrb[139].mxu0 }
 0x212   : > { %2988 = vst [vmem:[%s4928_s20 + $0x58] sm:$0xff] %v2941_v53   ;;  %v3370_v35 = vadd.f32 %v3369_v23, %v3368_v20  ;;  %v3665_v58 = vadd.f32 %v4848_v31, %v3367_v48 }
 0x213   : > { %2987 = vst [vmem:[%s4928_s20 + $0x50] sm:$0xff] %v2936_v8   ;;  %v2398_v38 = vadd.f32 %v3639_v1, %v2397_v19  ;;  %v2467_v28 = vadd.f32 %v2466_v62, %v2436_v29  ;;  %v3539_v33 = vpop.f32.mrb[8].mxu1 }
 0x214   : > { %v3651_v0 = vadd.f32 %v3650_v2, %v3539_v33  ;;  %v2154_v42 = vpop.f32.mrb[9].mxu1  ;;  %v3671_v24 = vadd.f32 %v4852_v26, %v3370_v35 }
 0x215   : > { %v2468_v6 = vadd.f32 %v2467_v28, %v2437_v49  ;;  %v3654_v11 = vadd.f32 %v4969_v63, %v2154_v42  ;;  %v2399_v9 = vadd.f32 %v3645_v13, %v2398_v38  ;;  %v3540_v7 = vpop.f32.mrb[10].mxu1 }
 0x216   : > { %v3657_v52 = vadd.f32 %v3656_v57, %v3540_v7  ;;  %v2157_v46 = vpop.f32.mrb[11].mxu1  ;;  %v3371_v17 = vpop.f32.mrb[140].mxu0  ;;  %v2441_v26 = vmul.f32 %v3651_v0, %v3651_v0 }
 0x217   : > { %v2400_v47 = vadd.f32 %v3654_v11, %v2399_v9  ;;  %v2439_v10 = vmul.f32 %v3654_v11, %v3654_v11  ;;  %v2469_v61 = vadd.f32 %v2468_v6, %v2438_v34  ;;  %v3660_v15 = vadd.f32 %v4973_v51, %v2157_v46  ;;  %v3372_v55 = vpop.f32.mrb[141].mxu0 }
 0x218   : > { %v2951_v21 = vpack.c.bf16 %v3657_v52, %v3651_v0  ;;  %v3374_v43 = vpop.f32.mrb[142].mxu0  ;;  %v3373_v40 = vadd.f32 %v3372_v55, %v3371_v17  ;;  %v2442_v59 = vmul.f32 %v3657_v52, %v3657_v52 }
 0x219   : > { %v2470_v31 = vadd.f32 %v2469_v61, %v2439_v10  ;;  %v2946_v3 = vpack.c.bf16 %v3660_v15, %v3654_v11  ;;  %v2401_v50 = vadd.f32 %v3660_v15, %v2400_v47  ;;  %v2440_v63 = vmul.f32 %v3660_v15, %v3660_v15  ;;  %v3375_v54 = vpop.f32.mrb[143].mxu0 }
 0x21a   : > { %2990 = vst [vmem:[%s4928_s20 + $0x68] sm:$0xff] %v2951_v21   ;;  %v3376_v32 = vadd.f32 %v3375_v54, %v3374_v43  ;;  %v3662_v51 = vadd.f32 %v4868_v4, %v3373_v40 }
 0x21b   : > { %2989 = vst [vmem:[%s4928_s20 + $0x60] sm:$0xff] %v2946_v3   ;;  %v2402_v41 = vadd.f32 %v3651_v0, %v2401_v50  ;;  %v2471_v30 = vadd.f32 %v2470_v31, %v2440_v63  ;;  %v3543_v22 = vpop.f32.mrb[12].mxu1 }
 0x21c   : > { %v2170_v39 = vpop.f32.mrb[13].mxu1  ;;  %v3668_v44 = vadd.f32 %v4871_v16, %v3376_v32  ;;  %v3663_v25 = vadd.f32 %v3662_v51, %v3543_v22 }
 0x21d   : > { %v2472_v1 = vadd.f32 %v2471_v30, %v2441_v26  ;;  %v3666_v60 = vadd.f32 %v3665_v58, %v2170_v39  ;;  %v2403_v2 = vadd.f32 %v3657_v52, %v2402_v41  ;;  %v3544_v14 = vpop.f32.mrb[14].mxu1 }
 0x21e   : > { %v2173_v56 = vpop.f32.mrb[15].mxu1  ;;  %v3669_v18 = vadd.f32 %v3668_v44, %v3544_v14  ;;  %v2445_v12 = vmul.f32 %v3663_v25, %v3663_v25 }
 0x21f   : > { %v2404_v57 = vadd.f32 %v3666_v60, %v2403_v2  ;;  %v2443_v13 = vmul.f32 %v3666_v60, %v3666_v60  ;;  %v2473_v5 = vadd.f32 %v2472_v1, %v2442_v59  ;;  %v3672_v27 = vadd.f32 %v3671_v24, %v2173_v56 }
 0x220   : > { %v2961_v45 = vpack.c.bf16 %v3669_v18, %v3663_v25  ;;  %v2446_v62 = vmul.f32 %v3669_v18, %v3669_v18 }
 0x221   : > { %v2474_v36 = vadd.f32 %v2473_v5, %v2443_v13  ;;  %v2956_v4 = vpack.c.bf16 %v3672_v27, %v3666_v60  ;;  %v2405_v53 = vadd.f32 %v3672_v27, %v2404_v57  ;;  %v2444_v37 = vmul.f32 %v3672_v27, %v3672_v27 }
 0x222   : > { %2992 = vst [vmem:[%s4928_s20 + $0x78] sm:$0xff] %v2961_v45  }
 0x223   : > { %2991 = vst [vmem:[%s4928_s20 + $0x70] sm:$0xff] %v2956_v4   ;;  %v2406_v8 = vadd.f32 %v3663_v25, %v2405_v53  ;;  %v2475_v16 = vadd.f32 %v2474_v36, %v2444_v37 }
 0x225   : > { %v2407_v19 = vadd.f32 %v3669_v18, %v2406_v8  ;;  %v2476_v29 = vadd.f32 %v2475_v16, %v2445_v12 }
 0x227   : > { %v2408_v20 = vrot.slane %v2407_v19, 4  ;;  %v2477_v48 = vadd.f32 %v2476_v29, %v2446_v62 }
 0x229   : > { %v2409_v23 = vadd.f32 %v2408_v20, %v2407_v19  ;;  %v2478_v49 = vrot.slane %v2477_v48, 4 }
 0x22b   : > { %v2410_v38 = vrot.slane %v2409_v23, 2  ;;  %v2479_v28 = vadd.f32 %v2478_v49, %v2477_v48 }
 0x22d   : > { %v2411_v33 = vadd.f32 %v2410_v38, %v2409_v23  ;;  %v2480_v35 = vrot.slane %v2479_v28, 2 }
 0x22f   : > { %v2412_v34 = vrot.slane %v2411_v33, 1  ;;  %v2481_v0 = vadd.f32 %v2480_v35, %v2479_v28 }
 0x231   : > { %v2413_v42 = vadd.f32 %v2412_v34, %v2411_v33  ;;  %v2482_v58 = vrot.slane %v2481_v0, 1 }
 0x233   : > { %2414 = vst [vmem:[%s235_s22] sm:$0x1] %v2413_v42  ;;  %v2483_v6 = vadd.f32 %v2482_v58, %v2481_v0 }
 0x235   : > { %2484 = vst [vmem:[%s235_s22 + $0x1] sm:$0x1] %v2483_v6 }
 0x236 PF: > { %s16_s18 = sadd.s32 1, %s3808_s18  }
 0x237   : > { %p13_p4 = scmp.ge.s32.totalorder %s16_s18, 4  }
 0x239   :  { %15 = sbr.rel (!%p13_p4) target bundleno = 1 (0x1), region = 80 }

// kernel: basic_block_forward.3
= control target key start
LH: loop header
LB: loop body
LE: loop exit
PB: predicated region body
PF: predicated region fallthrough
CT: control target
= control target key end

     0   :  { %s3554_s12 = smov 0   ;;  %s4546_s0 = inlined_call_operand.vmem [shape: f32[2,16,16,128], index: 0, kind: input, shape index: {}]   ;;  %s4547_s1 = inlined_call_operand.vmem [shape: bf16[3,384,128], index: 1, kind: input, shape index: {}]   ;;  %s4548_s2 = inlined_call_operand.vmem [shape: bf16[2,16,16,128], index: 2, kind: output, shape index: {0}]   ;;  %s4549_s3 = inlined_call_operand.vmem [shape: f32[2,2,128], index: 3, kind: output, shape index: {1}]  }
   0x1 LB: > { %s2375_s13 = sadd.s32 4294967295, %s3531_s12   ;;  %p2379_p0 = scmp.ge.s32.totalorder %s3531_s12, 1  ;;  %s3531_s12 = sphi %s3554_s12, %s14_s12  }
   0x2   : > { %p140_p1 = scmp.lt.s32.totalorder %s3531_s12, 3 }
   0x4   : > { %p141_p2 = pnand %p2379_p0, %p140_p1 }
   0x6   : > { %144 = sbr.rel (%p141_p2) target bundleno = 566 (0x236), region = 28 }
   0xd   : > { %v3453_v0 = vld [vmem:[%s4547_s1 + $0x100] sm:$0xff]   ;;  %v3456_v3 = vld [vmem:[%s4547_s1 + $0x108] sm:$0xff]   ;;  %v3459_v6 = vld [vmem:[%s4547_s1 + $0x110] sm:$0xff]   ;;  %p168_p3 = scmp.lt.s32.totalorder %s2375_s13, 1  ;;  %vm426_vm0 = vcmask 1047552   ;;  %vm359_vm1 = vcmask 1040384  }
   0xe   : > { %v3568_v1 = vld [vmem:[%s4547_s1 + $0x140] sm:$0xff]   ;;  %2716 = vmatprep.subr.bf16.mxu0 %v3453_v0  ;;  %v3581_v4 = vld [vmem:[%s4547_s1 + $0x148] sm:$0xff]   ;;  %v3593_v7 = vld [vmem:[%s4547_s1 + $0x150] sm:$0xff]   ;;  %vm427_vm2 = vsmask.f32 7424 }
   0xf   : > { %v3455_v2 = vld [vmem:[%s4547_s1 + $0xc0] sm:$0xff]   ;;  %3268 = vmatprep.subr.bf16.mxu1 %v3568_v1  ;;  %v3458_v5 = vld [vmem:[%s4547_s1 + $0xc8] sm:$0xff]   ;;  %v3461_v8 = vld [vmem:[%s4547_s1 + $0xd0] sm:$0xff]   ;;  %s4557_s13 = smov (!%p168_p3, %s2375_s13), 1  ;;  %vm360_vm3 = vsmask.f32 256 }
  0x10   : > { %2717 = vmatpush3.bf16.msra.mxu0 %v3455_v2  ;;  %3276 = vmatpush3.bf16.msra.mxu1 %v3568_v1  ;;  %v3462_v9 = vld [vmem:[%s4547_s1 + $0x118] sm:$0xff]   ;;  %v3465_v12 = vld [vmem:[%s4547_s1 + $0x120] sm:$0xff]   ;;  %v3468_v15 = vld [vmem:[%s4547_s1 + $0x128] sm:$0xff]   ;;  %s2587_s23 = sshll.u32 %s4557_s13, 8  ;;  %s2588_s11 = sshll.u32 %s4557_s13, 7 }
  0x11   : > { %2718 = vmatprep.subr.bf16.mxu0 %v3456_v3  ;;  %3269 = vmatprep.subr.bf16.mxu1 %v3581_v4  ;;  %v3606_v10 = vld [vmem:[%s4547_s1 + $0x158] sm:$0xff]   ;;  %v3621_v13 = vld [vmem:[%s4547_s1 + $0x160] sm:$0xff]   ;;  %v3638_v16 = vld [vmem:[%s4547_s1 + $0x168] sm:$0xff]   ;;  %s3657_s5 = scalar_lea.vmem %s4546_s0, %s2587_s23  ;;  %s4477_s16 = scalar_lea.vmem %s4548_s2, %s2588_s11 }
  0x12   : > { %v3464_v11 = vld [vmem:[%s4547_s1 + $0xd8] sm:$0xff]   ;;  %v3467_v14 = vld [vmem:[%s4547_s1 + $0xe0] sm:$0xff]   ;;  %v3470_v17 = vld [vmem:[%s4547_s1 + $0xe8] sm:$0xff]   ;;  %s2384_s17 = sshll.u32 %s4557_s13, 1 }
  0x13   : > { %v3471_v18 = vld [vmem:[%s4547_s1 + $0x130] sm:$0xff]   ;;  %v3474_v21 = vld [vmem:[%s4547_s1 + $0x138] sm:$0xff]   ;;  %v183_v22 = vld [vmem:[%s3657_s5] sm:$0xff]  ;;  %s181_s20 = scalar_lea.vmem %s4549_s3, %s2384_s17 }
  0x14   : > { %2719 = vmatpush3.bf16.msra.mxu0 %v3458_v5  ;;  %3277 = vmatpush3.bf16.msra.mxu1 %v3581_v4  ;;  %v3652_v19 = vld [vmem:[%s4547_s1 + $0x170] sm:$0xff]   ;;  %v184_v23 = vld [vmem:[%s3657_s5 + $0x8] sm:$0xff]  ;;  %v199_v24 = vld [vmem:[%s3657_s5 + $0x80] sm:$0xff] }
  0x15   : > { %2720 = vmatprep.subr.bf16.mxu0 %v3459_v6  ;;  %3270 = vmatprep.subr.bf16.mxu1 %v3593_v7  ;;  %v3473_v20 = vld [vmem:[%s4547_s1 + $0xf0] sm:$0xff]   ;;  %v3673_v25 = vld [vmem:[%s4547_s1 + $0x178] sm:$0xff]   ;;  %v3675_v26 = vpack.c.bf16 %v184_v23, %v183_v22  ;;  %v200_v27 = vld [vmem:[%s3657_s5 + $0x88] sm:$0xff] }
  0x16   : > { %v201_v28 = vld [vmem:[%s3657_s5 + $0x90] sm:$0xff]  ;;  %v3476_v29 = vld [vmem:[%s4547_s1 + $0xf8] sm:$0xff]   ;;  %v3682_v30 = vpack.c.bf16 %v200_v27, %v199_v24  ;;  %vm3695_vm4 = vmand %vm426_vm0, %vm427_vm2 }
  0x17   : > { %v202_v31 = vld [vmem:[%s3657_s5 + $0x98] sm:$0xff]  ;;  %718 = vmatprep.mubr.bf16.mxu0 %v3675_v26  ;;  %v232_v32 = vshrl.u32 %v3675_v26, 16  ;;  %v235_v33 = vshll.u32 %v3675_v26, 16  ;;  %v3477_v41 = vld [vmem:[%s4547_s1 + $0x40] sm:$0xff]   ;;  %vm3705_vm5 = vmand %vm359_vm1, %vm360_vm3 }
  0x18   : > { %2721 = vmatpush3.bf16.msra.mxu0 %v3461_v8  ;;  %3278 = vmatpush3.bf16.msra.mxu1 %v3593_v7  ;;  %v3688_v34 = vpack.c.bf16 %v202_v31, %v201_v28  ;;  %v288_v35 = vshrl.u32 %v3682_v30, 16  ;;  %v291_v36 = vshll.u32 %v3682_v30, 16  ;;  %v3478_v46 = vld [vmem:[%s4547_s1] sm:$0xff]   ;;  %v185_v47 = vld [vmem:[%s3657_s5 + $0x10] sm:$0xff]  ;;  %v186_v48 = vld [vmem:[%s3657_s5 + $0x18] sm:$0xff] }
  0x19   : > { %2722 = vmatprep.subr.bf16.mxu0 %v3462_v9  ;;  %3271 = vmatprep.subr.bf16.mxu1 %v3606_v10  ;;  %v234_v38 = vrot.slane %v232_v32, 7  ;;  %v3715_v51 = vpack.c.bf16 %v186_v48, %v185_v47  ;;  %v203_v52 = vld [vmem:[%s3657_s5 + $0xa0] sm:$0xff]  ;;  %v204_v53 = vld [vmem:[%s3657_s5 + $0xa8] sm:$0xff]  ;;  %v205_v54 = vld [vmem:[%s3657_s5 + $0xb0] sm:$0xff]  ;;  %v378_v56 = vrot.slane %v235_v33, 1 }
  0x1a   : > { %v295_v39 = vshrl.u32 %v3688_v34, 16  ;;  %v298_v40 = vshll.u32 %v3688_v34, 16  ;;  %v394_v42 = vrot.slane %v291_v36, 1  ;;  %v290_v49 = vrot.slane %v288_v35, 7  ;;  %v206_v60 = vld [vmem:[%s3657_s5 + $0xb8] sm:$0xff]  ;;  %v3479_v63 = vld [vmem:[%s4547_s1 + $0x48] sm:$0xff]  }
  0x1b   : > { %v237_v44 = vor.u32 %v235_v33, %v234_v38  ;;  %v3725_v59 = vpack.c.bf16 %v204_v53, %v203_v52  ;;  %v239_v0 = vshrl.u32 %v3715_v51, 16  ;;  %v242_v2 = vshll.u32 %v3715_v51, 16  ;;  %v3481_v22 = vld [vmem:[%s4547_s1 + $0x50] sm:$0xff]   ;;  %v187_v23 = vld [vmem:[%s3657_s5 + $0x20] sm:$0xff]  ;;  %v188_v31 = vld [vmem:[%s3657_s5 + $0x28] sm:$0xff] }
  0x1c   : > { %2723 = vmatpush3.bf16.msra.mxu0 %v3464_v11  ;;  %3279 = vmatpush3.bf16.msra.mxu1 %v3606_v10  ;;  %v396_v45 = vrot.slane %v298_v40, 1  ;;  %v395_v50 = vor.u32 %v394_v42, %v288_v35  ;;  %v297_v55 = vrot.slane %v295_v39, 7  ;;  %v293_v61 = vor.u32 %v291_v36, %v290_v49  ;;  %v208_v33 = vld [vmem:[%s3657_s5 + $0xc8] sm:$0xff]  ;;  %v3483_v47 = vld [vmem:[%s4547_s1 + $0x58] sm:$0xff]   ;;  %v4070_v43 = vld [vmem:[%s4547_s1 + $0x200] sm:$0xff]  }
  0x1d   : > { %2724 = vmatprep.subr.bf16.mxu0 %v3465_v12  ;;  %3272 = vmatprep.subr.bf16.mxu1 %v3621_v13  ;;  %v3722_v57 = vsel %vm3705_vm5, 0, %v237_v44  ;;  %v3737_v3 = vpack.c.bf16 %v206_v60, %v205_v54  ;;  %v302_v6 = vshrl.u32 %v3725_v59, 16  ;;  %v305_v8 = vshll.u32 %v3725_v59, 16  ;;  %v209_v44 = vld [vmem:[%s3657_s5 + $0xd0] sm:$0xff]  ;;  %v3484_v60 = vld [vmem:[%s4547_s1 + $0x18] sm:$0xff]  }
  0x1e   : > { %v397_v58 = vor.u32 %v396_v45, %v295_v39  ;;  %v3730_v62 = vsel %vm3695_vm4, %v395_v50, 0  ;;  %v300_v9 = vor.u32 %v298_v40, %v297_v55  ;;  %v241_v11 = vrot.slane %v239_v0, 7  ;;  %v210_v45 = vld [vmem:[%s3657_s5 + $0xd8] sm:$0xff] }
  0x1f   : > { %3156 = vmatprep.mubr.bf16.mxu1 %v3730_v62  ;;  %v380_v12 = vrot.slane %v242_v2, 1  ;;  %v3764_v24 = vsel %vm3705_vm5, 0, %v293_v61  ;;  %v304_v36 = vrot.slane %v302_v6, 7  ;;  %v3796_v48 = vpack.c.bf16 %v210_v45, %v209_v44  ;;  %v3487_v44 = vld [vmem:[%s4547_s1 + $0x68] sm:$0xff]  }
  0x20   : > { %2725 = vmatpush3.bf16.msra.mxu0 %v3467_v14  ;;  %3280 = vmatpush3.bf16.msra.mxu1 %v3621_v13  ;;  %v3743_v5 = vsel %vm3695_vm4, %v397_v58, 0  ;;  %v309_v14 = vshrl.u32 %v3737_v3, 16  ;;  %v3776_v35 = vsel %vm3705_vm5, 0, %v300_v9 }
  0x21   : > { %2726 = vmatprep.subr.bf16.mxu0 %v3468_v15  ;;  %3273 = vmatprep.subr.bf16.mxu1 %v3638_v16  ;;  %v312_v15 = vshll.u32 %v3737_v3, 16  ;;  %v3766_v27 = vor.u32 %v380_v12, %v239_v0  ;;  %v307_v49 = vor.u32 %v305_v8, %v304_v36  ;;  %v326_v58 = vshll.u32 %v3796_v48, 16  ;;  %v3485_v0 = vld [vmem:[%s4547_s1 + $0x60] sm:$0xff]  }
  0x22   : > { %v311_v38 = vrot.slane %v309_v14, 7  ;;  %v211_v12 = vld [vmem:[%s3657_s5 + $0xe0] sm:$0xff] }
  0x24   : > { %2727 = vmatpush3.bf16.msra.mxu0 %v3470_v17  ;;  %3281 = vmatpush3.bf16.msra.mxu1 %v3638_v16  ;;  %v3480_v17 = vld [vmem:[%s4547_s1 + $0x8] sm:$0xff]   ;;  %v314_v50 = vor.u32 %v312_v15, %v311_v38 }
  0x25   : > { %2728 = vmatprep.subr.bf16.mxu0 %v3471_v18  ;;  %3274 = vmatprep.subr.bf16.mxu1 %v3652_v19  ;;  %v398_v18 = vrot.slane %v305_v8, 1 }
  0x27   : > { %v399_v28 = vor.u32 %v398_v18, %v302_v6  ;;  %v189_v6 = vld [vmem:[%s3657_s5 + $0x30] sm:$0xff] }
  0x28   : > { %2729 = vmatpush3.bf16.msra.mxu0 %v3473_v20  ;;  %3282 = vmatpush3.bf16.msra.mxu1 %v3652_v19  ;;  %v3755_v20 = vor.u32 %v378_v56, %v232_v32  ;;  %v207_v32 = vld [vmem:[%s3657_s5 + $0xc0] sm:$0xff]  ;;  %v323_v56 = vshrl.u32 %v3796_v48, 16 }
  0x29   : > { %2730 = vmatprep.subr.bf16.mxu0 %v3474_v21  ;;  %3275 = vmatprep.subr.bf16.mxu1 %v3673_v25  ;;  %v400_v21 = vrot.slane %v312_v15, 1  ;;  %v3784_v42 = vpack.c.bf16 %v208_v33, %v207_v32  ;;  %v3833_v15 = vsel %vm3705_vm5, 0, %v307_v49 }
  0x2b   : > { %v401_v40 = vor.u32 %v400_v21, %v309_v14  ;;  %v316_v52 = vshrl.u32 %v3784_v42, 16  ;;  %v319_v53 = vshll.u32 %v3784_v42, 16  ;;  %v212_v14 = vld [vmem:[%s3657_s5 + $0xe8] sm:$0xff]  ;;  %v213_v21 = vld [vmem:[%s3657_s5 + $0xf0] sm:$0xff] }
  0x2c   : > { %2731 = vmatpush3.bf16.msra.mxu0 %v3476_v29  ;;  %3283 = vmatpush3.bf16.msra.mxu1 %v3673_v25  ;;  %v3482_v29 = vld [vmem:[%s4547_s1 + $0x10] sm:$0xff]  }
  0x2d   : > { %3124 = vmatprep.subr.bf16.mxu0 %v3568_v1  ;;  %2852 = vmatprep.subr.bf16.mxu1 %v3477_v41  ;;  %v3782_v41 = vpack.c.bf16 %v188_v31, %v187_v23  ;;  %v402_v61 = vrot.slane %v319_v53, 1  ;;  %v318_v23 = vrot.slane %v316_v52, 7  ;;  %v3486_v31 = vld [vmem:[%s4547_s1 + $0x20] sm:$0xff]  }
  0x2f   : > { %719 = vmatmul.mubr.bf16.vlgmr.msra.gmra.mrb[0].mxu0 %v3722_v57  ;;  %3157 = vmatmul.mubr.bf16.vlgmr.msra.gmra.mrb[0].mxu1 %v3743_v5  ;;  %v246_v54 = vshrl.u32 %v3782_v41, 16  ;;  %v249_v55 = vshll.u32 %v3782_v41, 16  ;;  %v403_v8 = vor.u32 %v402_v61, %v316_v52  ;;  %v3488_v61 = vld [vmem:[%s4547_s1 + $0x28] sm:$0xff]  }
  0x30   : > { %3125 = vmatpush3.bf16.msra.mxu0 %v3568_v1  ;;  %2853 = vmatpush3.bf16.msra.mxu1 %v3478_v46  ;;  %v244_v1 = vor.u32 %v242_v2, %v241_v11  ;;  %v3791_v46 = vsel %vm3695_vm4, %v399_v28, 0  ;;  %v404_v2 = vrot.slane %v326_v58, 1  ;;  %v190_v11 = vld [vmem:[%s3657_s5 + $0x38] sm:$0xff] }
  0x31   : > { %726 = vmatprep.mubr.bf16.mxu0 %v3715_v51  ;;  %2854 = vmatprep.subr.bf16.mxu1 %v3479_v63  ;;  %v248_v63 = vrot.slane %v246_v54, 7  ;;  %v3847_v28 = vsel %vm3695_vm4, %v403_v8, 0  ;;  %v325_v8 = vrot.slane %v323_v56, 7 }
  0x32   : > { %3126 = vmatprep.subr.bf16.mxu0 %v3581_v4  ;;  %v3780_v39 = vsel %vm3705_vm5, 0, %v244_v1  ;;  %3160 = vmatprep.mubr.bf16.mxu1 %v3791_v46  ;;  %v405_v18 = vor.u32 %v404_v2, %v323_v56  ;;  %v3841_v1 = vpack.c.bf16 %v212_v14, %v211_v12  ;;  %v192_v2 = vld [vmem:[%s3657_s5 + $0x48] sm:$0xff]  ;;  %v193_v14 = vld [vmem:[%s3657_s5 + $0x50] sm:$0xff] }
  0x33   : > { %v251_v9 = vor.u32 %v249_v55, %v248_v63  ;;  %v328_v56 = vor.u32 %v326_v58, %v325_v8 }
  0x34   : > { %3127 = vmatpush3.bf16.msra.mxu0 %v3581_v4  ;;  %2855 = vmatpush3.bf16.msra.mxu1 %v3480_v17  ;;  %v3802_v4 = vsel %vm3695_vm4, %v401_v40, 0  ;;  %v3837_v17 = vsel %vm3705_vm5, 0, %v314_v50  ;;  %v3861_v33 = vsel %vm3695_vm4, %v405_v18, 0  ;;  %v330_v36 = vshrl.u32 %v3841_v1, 16 }
  0x35   : > { %3128 = vmatprep.subr.bf16.mxu0 %v3593_v7  ;;  %2856 = vmatprep.subr.bf16.mxu1 %v3481_v22  ;;  %v214_v22 = vld [vmem:[%s3657_s5 + $0xf8] sm:$0xff]  ;;  %v333_v38 = vshll.u32 %v3841_v1, 16  ;;  %v321_v50 = vor.u32 %v319_v53, %v318_v23 }
  0x36   : > { %v3856_v32 = vpack.c.bf16 %v214_v22, %v213_v21  ;;  %v332_v18 = vrot.slane %v330_v36, 7  ;;  %v194_v23 = vld [vmem:[%s3657_s5 + $0x58] sm:$0xff] }
  0x37   : > { %727 = vmatmul.mubr.bf16.gmra.mrb[4].mxu0 %v3780_v39  ;;  %3161 = vmatmul.mubr.bf16.gmra.mrb[4].mxu1 %v3802_v4  ;;  %v406_v52 = vrot.slane %v333_v38, 1 }
  0x38   : > { %734 = vmatprep.mubr.bf16.mxu0 %v3782_v41  ;;  %2857 = vmatpush3.bf16.msra.mxu1 %v3482_v29  ;;  %v3851_v29 = vsel %vm3705_vm5, 0, %v251_v9  ;;  %v340_v49 = vshll.u32 %v3856_v32, 16 }
  0x39   : > { %3129 = vmatpush3.bf16.msra.mxu0 %v3593_v7  ;;  %2858 = vmatprep.subr.bf16.mxu1 %v3483_v47  ;;  %v3839_v7 = vpack.c.bf16 %v190_v11, %v189_v6  ;;  %v337_v47 = vshrl.u32 %v3856_v32, 16  ;;  %v3888_v6 = vsel %vm3705_vm5, 0, %v321_v50  ;;  %v3489_v11 = vld [vmem:[%s4547_s1 + $0x70] sm:$0xff]   ;;  %v3928_v50 = vsel %vm3705_vm5, 0, %v328_v56  ;;  %v3500_v56 = vld [vmem:[%s4547_s1 + $0x1c0] sm:$0xff]  }
  0x3a   : > { %3130 = vmatprep.subr.bf16.mxu0 %v3606_v10  ;;  %3164 = vmatprep.mubr.bf16.mxu1 %v3847_v28  ;;  %v408_v63 = vrot.slane %v340_v49, 1 }
  0x3b   : > { %v253_v40 = vshrl.u32 %v3839_v7, 16  ;;  %v256_v45 = vshll.u32 %v3839_v7, 16  ;;  %v339_v21 = vrot.slane %v337_v47, 7 }
  0x3c   : > { %2859 = vmatpush3.bf16.msra.mxu1 %v3484_v60  ;;  %v409_v9 = vor.u32 %v408_v63, %v337_v47  ;;  %v3917_v47 = vpack.c.bf16 %v194_v23, %v193_v14  ;;  %v3494_v23 = vld [vmem:[%s4547_s1 + $0x88] sm:$0xff]  }
  0x3d   : > { %2860 = vmatprep.subr.bf16.mxu1 %v3485_v0  ;;  %3131 = vmatpush3.bf16.msra.mxu0 %v3606_v10  ;;  %v255_v60 = vrot.slane %v253_v40, 7  ;;  %v407_v10 = vor.u32 %v406_v52, %v330_v36  ;;  %v191_v0 = vld [vmem:[%s3657_s5 + $0x40] sm:$0xff]  ;;  %v335_v52 = vor.u32 %v333_v38, %v332_v18  ;;  %v3966_v18 = vsel %vm3695_vm4, %v3766_v27, 0 }
  0x3e   : > { %3132 = vmatprep.subr.bf16.mxu0 %v3621_v13  ;;  %v3893_v12 = vpack.c.bf16 %v192_v2, %v191_v0  ;;  %v3921_v58 = vsel %vm3695_vm4, %v409_v9, 0  ;;  %v3492_v0 = vld [vmem:[%s4547_s1 + $0x38] sm:$0xff]   ;;  %v3533_v2 = vmov 0   ;;  %v270_v8 = vshll.u32 %v3917_v47, 16 }
  0x3f   : > { %735 = vmatmul.mubr.bf16.gmra.mrb[8].mxu0 %v3851_v29  ;;  %3165 = vmatmul.mubr.bf16.gmra.mrb[8].mxu1 %v3861_v33  ;;  %v258_v53 = vor.u32 %v256_v45, %v255_v60  ;;  %v3899_v22 = vsel %vm3695_vm4, %v407_v10, 0  ;;  %v342_v60 = vor.u32 %v340_v49, %v339_v21  ;;  %v267_v49 = vshrl.u32 %v3917_v47, 16  ;;  %v195_v10 = vld [vmem:[%s3657_s5 + $0x60] sm:$0xff] }
  0x40   : > { %742 = vmatprep.mubr.bf16.mxu0 %v3839_v7  ;;  %2861 = vmatpush3.bf16.msra.mxu1 %v3486_v31  ;;  %v3908_v31 = vsel %vm3695_vm4, %v3755_v20, 0  ;;  %v260_v36 = vshrl.u32 %v3893_v12, 16  ;;  %v3490_v20 = vld [vmem:[%s4547_s1 + $0x30] sm:$0xff]   ;;  %v3954_v9 = vsel %vm3705_vm5, 0, %v335_v52  ;;  %v382_v52 = vrot.slane %v249_v55, 1 }
  0x41   : > { %2862 = vmatprep.subr.bf16.mxu1 %v3487_v44  ;;  %3133 = vmatpush3.bf16.msra.mxu0 %v3621_v13  ;;  %v3913_v13 = vsel %vm3705_vm5, 0, %v258_v53  ;;  %v263_v44 = vshll.u32 %v3893_v12, 16  ;;  %v196_v53 = vld [vmem:[%s3657_s5 + $0x68] sm:$0xff]  ;;  %v3961_v14 = vsel %vm3705_vm5, 0, %v342_v60  ;;  %v269_v21 = vrot.slane %v267_v49, 7 }
  0x42   : > { %3134 = vmatprep.subr.bf16.mxu0 %v3638_v16  ;;  %3168 = vmatprep.mubr.bf16.mxu1 %v3899_v22  ;;  %v262_v63 = vrot.slane %v260_v36, 7 }
  0x43   : > { %v272_v60 = vor.u32 %v270_v8, %v269_v21  ;;  %v386_v55 = vrot.slane %v263_v44, 1 }
  0x44   : > { %2863 = vmatpush3.bf16.msra.mxu1 %v3488_v61  ;;  %v3491_v61 = vld [vmem:[%s4547_s1 + $0x78] sm:$0xff]   ;;  %v265_v38 = vor.u32 %v263_v44, %v262_v63  ;;  %v384_v63 = vrot.slane %v256_v45, 1 }
  0x45   : > { %2864 = vmatprep.subr.bf16.mxu1 %v3489_v11  ;;  %3135 = vmatpush3.bf16.msra.mxu0 %v3638_v16  ;;  %v3493_v16 = vld [vmem:[%s4547_s1 + $0x80] sm:$0xff]   ;;  %v3956_v11 = vpack.c.bf16 %v196_v53, %v195_v10 }
  0x46   : > { %3136 = vmatprep.subr.bf16.mxu0 %v3652_v19  ;;  %v385_v53 = vor.u32 %v384_v63, %v253_v40  ;;  %v3497_v63 = vld [vmem:[%s4547_s1 + $0xa0] sm:$0xff]  }
  0x47   : > { %743 = vmatmul.mubr.bf16.gmra.mrb[12].mxu0 %v3913_v13  ;;  %3169 = vmatmul.mubr.bf16.gmra.mrb[12].mxu1 %v3921_v58  ;;  %v274_v27 = vshrl.u32 %v3956_v11, 16  ;;  %v277_v10 = vshll.u32 %v3956_v11, 16 }
  0x48   : > { %750 = vmatprep.mubr.bf16.mxu0 %v3893_v12  ;;  %2865 = vmatpush3.bf16.msra.mxu1 %v3490_v20  ;;  %v197_v20 = vld [vmem:[%s3657_s5 + $0x70] sm:$0xff]  ;;  %v4012_v44 = vsel %vm3695_vm4, %v385_v53, 0 }
  0x49   : > { %1184 = vmatprep.mubr.bf16.mxu1 %v3533_v2  ;;  %2866 = vmatprep.subr.bf16.mxu1 %v3491_v61  ;;  %v198_v61 = vld [vmem:[%s3657_s5 + $0x78] sm:$0xff]  ;;  %v276_v21 = vrot.slane %v274_v27, 7 }
  0x4a   : > { %3137 = vmatpush3.bf16.msra.mxu0 %v3652_v19  ;;  %v3970_v19 = vsel %vm3705_vm5, 0, %v265_v38  ;;  %v383_v38 = vor.u32 %v382_v52, %v246_v54  ;;  %v3998_v45 = vpack.c.bf16 %v198_v61, %v197_v20  ;;  %v4008_v54 = vsel %vm3705_vm5, 0, %v272_v60 }
  0x4b   : > { %3138 = vmatprep.subr.bf16.mxu0 %v3673_v25  ;;  %v279_v52 = vor.u32 %v277_v10, %v276_v21  ;;  %v3508_v21 = vld [vmem:[%s4547_s1 + $0xb8] sm:$0xff]  }
  0x4c   : > { %2867 = vmatpush3.bf16.msra.mxu1 %v3492_v0  ;;  %v388_v0 = vrot.slane %v270_v8, 1  ;;  %v284_v8 = vshll.u32 %v3998_v45, 16 }
  0x4d   : > { %3172 = vmatprep.subr.bf16.mxu1 %v3493_v16 }
  0x4e   : > { %3139 = vmatpush3.bf16.msra.mxu0 %v3673_v25  ;;  %v3495_v25 = vld [vmem:[%s4547_s1 + $0x90] sm:$0xff]   ;;  %v389_v40 = vor.u32 %v388_v0, %v267_v49  ;;  %v281_v49 = vshrl.u32 %v3998_v45, 16  ;;  %v392_v60 = vrot.slane %v284_v8, 1 }
  0x4f   : > { %751 = vmatmul.mubr.bf16.gmra.mrb[16].mxu0 %v3970_v19  ;;  %2988 = vmatprep.subr.bf16.mxu0 %v3500_v56  ;;  %v3499_v0 = vld [vmem:[%s4547_s1 + $0xb0] sm:$0xff]  }
  0x50   : > { %1185 = vmatmul.mubr.bf16.vlgmr.msra.gmra.mrb[16].mxu1 %v3533_v2  ;;  %758 = vmatprep.mubr.bf16.mxu0 %v3917_v47  ;;  %v4024_v20 = vsel %vm3695_vm4, %v389_v40, 0  ;;  %v3502_v40 = vld [vmem:[%s4547_s1 + $0x1c8] sm:$0xff]  }
  0x51   : > { %3173 = vmatpush3.bf16.msra.mxu1 %v3493_v16  ;;  %1192 = vmatprep.mubr.bf16.mxu1 %v3675_v26  ;;  %v4002_v26 = vsel %vm3695_vm4, %v383_v38, 0  ;;  %v387_v16 = vor.u32 %v386_v55, %v260_v36  ;;  %v3496_v36 = vld [vmem:[%s4547_s1 + $0x98] sm:$0xff]   ;;  %v393_v38 = vor.u32 %v392_v60, %v281_v49  ;;  %v283_v55 = vrot.slane %v281_v49, 7  ;;  %v3505_v49 = vld [vmem:[%s4547_s1 + $0x190] sm:$0xff]   ;;  %v3509_v60 = vld [vmem:[%s4547_s1 + $0x1e0] sm:$0xff]  }
  0x52   : > { %3174 = vmatprep.subr.bf16.mxu1 %v3494_v23 }
  0x53   : > { %v4017_v56 = vsel %vm3695_vm4, %v387_v16, 0  ;;  %v3501_v16 = vld [vmem:[%s4547_s1 + $0x180] sm:$0xff]  }
  0x55   : > { %3175 = vmatpush3.bf16.msra.mxu1 %v3494_v23  ;;  %v390_v23 = vrot.slane %v277_v10, 1  ;;  %v4044_v10 = vsel %vm3695_vm4, %v393_v38, 0  ;;  %v3512_v38 = vld [vmem:[%s4547_s1 + $0x1a8] sm:$0xff]  }
  0x56   : > { %3176 = vmatprep.subr.bf16.mxu1 %v3495_v25 }
  0x57   : > { %759 = vmatmul.mubr.bf16.gmra.mrb[20].mxu0 %v4008_v54  ;;  %v391_v61 = vor.u32 %v390_v23, %v274_v27  ;;  %v3498_v27 = vld [vmem:[%s4547_s1 + $0xa8] sm:$0xff]   ;;  %v3506_v23 = vld [vmem:[%s4547_s1 + $0x1d8] sm:$0xff]  }
  0x58   : > { %1193 = vmatmul.mubr.bf16.gmra.mrb[20].mxu1 %v3722_v57  ;;  %766 = vmatprep.mubr.bf16.mxu0 %v3956_v11  ;;  %v4040_v57 = vsel %vm3705_vm5, 0, %v279_v52  ;;  %v3507_v52 = vld [vmem:[%s4547_s1 + $0x198] sm:$0xff]  }
  0x59   : > { %1200 = vmatprep.mubr.bf16.mxu1 %v3715_v51  ;;  %3177 = vmatpush3.bf16.msra.mxu1 %v3495_v25  ;;  %v4036_v53 = vsel %vm3695_vm4, %v391_v61, 0  ;;  %v286_v25 = vor.u32 %v284_v8, %v283_v55  ;;  %v3503_v8 = vld [vmem:[%s4547_s1 + $0x188] sm:$0xff]   ;;  %v3510_v61 = vld [vmem:[%s4547_s1 + $0x1a0] sm:$0xff]   ;;  %v3513_v55 = vld [vmem:[%s4547_s1 + $0x1f0] sm:$0xff]  }
  0x5a   : > { %3178 = vmatprep.subr.bf16.mxu1 %v3496_v36 }
  0x5b   : > { %v4058_v37 = vsel %vm3705_vm5, 0, %v286_v25  ;;  %v3515_v25 = vld [vmem:[%s4547_s1 + $0x1f8] sm:$0xff]  }
  0x5d   : > { %3179 = vmatpush3.bf16.msra.mxu1 %v3496_v36  ;;  %v3504_v36 = vld [vmem:[%s4547_s1 + $0x1d0] sm:$0xff]  }
  0x5e   : > { %3180 = vmatprep.subr.bf16.mxu1 %v3497_v63 }
  0x5f   : > { %767 = vmatmul.mubr.bf16.gmra.mrb[24].mxu0 %v4040_v57 }
  0x60   : > { %1201 = vmatmul.mubr.bf16.gmra.mrb[24].mxu1 %v3780_v39  ;;  %774 = vmatprep.mubr.bf16.mxu0 %v3998_v45 }
  0x61   : > { %1208 = vmatprep.mubr.bf16.mxu1 %v3782_v41  ;;  %3181 = vmatpush3.bf16.msra.mxu1 %v3497_v63  ;;  %v3511_v63 = vld [vmem:[%s4547_s1 + $0x1e8] sm:$0xff]  }
  0x62   : > { %3182 = vmatprep.subr.bf16.mxu1 %v3498_v27 }
  0x65   : > { %3183 = vmatpush3.bf16.msra.mxu1 %v3498_v27  ;;  %v3514_v27 = vld [vmem:[%s4547_s1 + $0x1b0] sm:$0xff]  }
  0x66   : > { %3184 = vmatprep.subr.bf16.mxu1 %v3499_v0 }
  0x67   : > { %775 = vmatmul.mubr.bf16.gmra.mrb[28].mxu0 %v4058_v37 }
  0x68   : > { %1209 = vmatmul.mubr.bf16.gmra.mrb[28].mxu1 %v3851_v29  ;;  %782 = vmatprep.mubr.bf16.mxu0 %v3682_v30 }
  0x69   : > { %1216 = vmatprep.mubr.bf16.mxu1 %v3839_v7  ;;  %3185 = vmatpush3.bf16.msra.mxu1 %v3499_v0  ;;  %v3516_v0 = vld [vmem:[%s4547_s1 + $0x1b8] sm:$0xff]  }
  0x6a   : > { %3186 = vmatprep.subr.bf16.mxu1 %v3508_v21 }
  0x6d   : > { %3187 = vmatpush3.bf16.msra.mxu1 %v3508_v21  ;;  %v3518_v21 = vld [vmem:[%s4547_s1 + $0x208] sm:$0xff]  }
  0x6e   : > { %3220 = vmatprep.subr.bf16.mxu1 %v4070_v43 }
  0x6f   : > { %783 = vmatmul.mubr.bf16.gmra.mrb[32].mxu0 %v3764_v24 }
  0x70   : > { %1217 = vmatmul.mubr.bf16.gmra.mrb[32].mxu1 %v3913_v13  ;;  %790 = vmatprep.mubr.bf16.mxu0 %v3688_v34 }
  0x71   : > { %1224 = vmatprep.mubr.bf16.mxu1 %v3893_v12 }
  0x77   : > { %791 = vmatmul.mubr.bf16.gmra.mrb[36].mxu0 %v3776_v35 }
  0x78   : > { %1225 = vmatmul.mubr.bf16.gmra.mrb[36].mxu1 %v3970_v19  ;;  %798 = vmatprep.mubr.bf16.mxu0 %v3725_v59 }
  0x79   : > { %1232 = vmatprep.mubr.bf16.mxu1 %v3917_v47 }
  0x7f   : > { %799 = vmatmul.mubr.bf16.gmra.mrb[40].mxu0 %v3833_v15 }
  0x80   : > { %1233 = vmatmul.mubr.bf16.gmra.mrb[40].mxu1 %v4008_v54  ;;  %806 = vmatprep.mubr.bf16.mxu0 %v3737_v3 }
  0x81   : > { %1240 = vmatprep.mubr.bf16.mxu1 %v3956_v11 }
  0x87   : > { %807 = vmatmul.mubr.bf16.gmra.mrb[44].mxu0 %v3837_v17 }
  0x88   : > { %1241 = vmatmul.mubr.bf16.gmra.mrb[44].mxu1 %v4040_v57  ;;  %814 = vmatprep.mubr.bf16.mxu0 %v3784_v42 }
  0x89   : > { %1248 = vmatprep.mubr.bf16.mxu1 %v3998_v45 }
  0x8f   : > { %815 = vmatmul.mubr.bf16.gmra.mrb[48].mxu0 %v3888_v6 }
  0x90   : > { %1249 = vmatmul.mubr.bf16.gmra.mrb[48].mxu1 %v4058_v37  ;;  %822 = vmatprep.mubr.bf16.mxu0 %v3796_v48 }
  0x91   : > { %1256 = vmatprep.mubr.bf16.mxu1 %v3682_v30 }
  0x97   : > { %823 = vmatmul.mubr.bf16.gmra.mrb[52].mxu0 %v3928_v50 }
  0x98   : > { %1257 = vmatmul.mubr.bf16.gmra.mrb[52].mxu1 %v3764_v24  ;;  %830 = vmatprep.mubr.bf16.mxu0 %v3841_v1 }
  0x99   : > { %1264 = vmatprep.mubr.bf16.mxu1 %v3688_v34 }
  0x9f   : > { %831 = vmatmul.mubr.bf16.gmra.mrb[56].mxu0 %v3954_v9 }
  0xa0   : > { %1265 = vmatmul.mubr.bf16.gmra.mrb[56].mxu1 %v3776_v35  ;;  %838 = vmatprep.mubr.bf16.mxu0 %v3856_v32 }
  0xa1   : > { %1272 = vmatprep.mubr.bf16.mxu1 %v3725_v59 }
  0xa7   : > { %839 = vmatmul.mubr.bf16.gmra.mrb[60].mxu0 %v3961_v14 }
  0xa8   : > { %1273 = vmatmul.mubr.bf16.gmra.mrb[60].mxu1 %v3833_v15  ;;  %3140 = vmatprep.mubr.bf16.mxu0 %v3908_v31 }
  0xa9   : > { %1280 = vmatprep.mubr.bf16.mxu1 %v3737_v3 }
  0xaf   : > { %3141 = vmatmul.mubr.bf16.vlgmr.msra.gmra.mrb[64].mxu0 %v3966_v18 }
  0xb0   : > { %1281 = vmatmul.mubr.bf16.gmra.mrb[64].mxu1 %v3837_v17  ;;  %2989 = vmatpush3.bf16.msra.mxu0 %v3501_v16  ;;  %v3520_v16 = vld [vmem:[%s4547_s1 + $0x218] sm:$0xff]  }
  0xb1   : > { %2990 = vmatprep.subr.bf16.mxu0 %v3502_v40  ;;  %3144 = vmatprep.mubr.bf16.mxu0 %v4002_v26 }
  0xb2   : > { %1288 = vmatprep.mubr.bf16.mxu1 %v3784_v42 }
  0xb4   : > { %2991 = vmatpush3.bf16.msra.mxu0 %v3503_v8 }
  0xb5   : > { %2992 = vmatprep.subr.bf16.mxu0 %v3504_v36 }
  0xb7   : > { %3145 = vmatmul.mubr.bf16.gmra.mrb[68].mxu0 %v4012_v44 }
  0xb8   : > { %1289 = vmatmul.mubr.bf16.gmra.mrb[68].mxu1 %v3888_v6  ;;  %2993 = vmatpush3.bf16.msra.mxu0 %v3505_v49 }
  0xb9   : > { %2994 = vmatprep.subr.bf16.mxu0 %v3506_v23  ;;  %3148 = vmatprep.mubr.bf16.mxu0 %v4017_v56 }
  0xba   : > { %1296 = vmatprep.mubr.bf16.mxu1 %v3796_v48 }
  0xbc   : > { %2995 = vmatpush3.bf16.msra.mxu0 %v3507_v52 }
  0xbd   : > { %2996 = vmatprep.subr.bf16.mxu0 %v3509_v60 }
  0xbf   : > { %3149 = vmatmul.mubr.bf16.gmra.mrb[72].mxu0 %v4024_v20 }
  0xc0   : > { %1297 = vmatmul.mubr.bf16.gmra.mrb[72].mxu1 %v3928_v50  ;;  %2997 = vmatpush3.bf16.msra.mxu0 %v3510_v61 }
  0xc1   : > { %2998 = vmatprep.subr.bf16.mxu0 %v3511_v63  ;;  %3152 = vmatprep.mubr.bf16.mxu0 %v4036_v53 }
  0xc2   : > { %1304 = vmatprep.mubr.bf16.mxu1 %v3841_v1 }
  0xc4   : > { %2999 = vmatpush3.bf16.msra.mxu0 %v3512_v38 }
  0xc5   : > { %3000 = vmatprep.subr.bf16.mxu0 %v3513_v55 }
  0xc7   : > { %3153 = vmatmul.mubr.bf16.gmra.mrb[76].mxu0 %v4044_v10 }
  0xc8   : > { %1305 = vmatmul.mubr.bf16.gmra.mrb[76].mxu1 %v3954_v9  ;;  %3001 = vmatpush3.bf16.msra.mxu0 %v3514_v27 }
  0xc9   : > { %3002 = vmatprep.subr.bf16.mxu0 %v3515_v25  ;;  %3188 = vmatprep.mubr.bf16.mxu1 %v3533_v2 }
  0xca   : > { %1699 = vmatprep.mubr.bf16.mxu0 %v3715_v51  ;;  %v3519_v51 = vld [vmem:[%s4547_s1 + $0x210] sm:$0xff]  }
  0xcc   : > { %3003 = vmatpush3.bf16.msra.mxu0 %v3516_v0 }
  0xcf   : > { %1700 = vmatmul.mubr.bf16.vlgmr.msra.gmra.mrb[80].mxu0 %v3780_v39  ;;  %v3521_v39 = vld [vmem:[%s4547_s1 + $0x220] sm:$0xff]  }
  0xd0   : > { %3189 = vmatmul.mubr.bf16.vlgmr.msra.gmra.mrb[80].mxu1 %v3908_v31  ;;  %1707 = vmatprep.mubr.bf16.mxu0 %v3782_v41  ;;  %v3522_v41 = vld [vmem:[%s4547_s1 + $0x228] sm:$0xff]  }
  0xd1   : > { %3221 = vmatpush3.bf16.msra.mxu1 %v4070_v43  ;;  %3192 = vmatprep.mubr.bf16.mxu1 %v3966_v18 }
  0xd2   : > { %3222 = vmatprep.subr.bf16.mxu1 %v3518_v21 }
  0xd5   : > { %3223 = vmatpush3.bf16.msra.mxu1 %v3518_v21 }
  0xd6   : > { %3224 = vmatprep.subr.bf16.mxu1 %v3519_v51 }
  0xd7   : > { %1708 = vmatmul.mubr.bf16.gmra.mrb[84].mxu0 %v3851_v29  ;;  %v3524_v29 = vld [vmem:[%s4547_s1 + $0x238] sm:$0xff]  }
  0xd8   : > { %3193 = vmatmul.mubr.bf16.gmra.mrb[84].mxu1 %v4002_v26  ;;  %1715 = vmatprep.mubr.bf16.mxu0 %v3839_v7  ;;  %v3523_v7 = vld [vmem:[%s4547_s1 + $0x230] sm:$0xff]  }
  0xd9   : > { %3196 = vmatprep.mubr.bf16.mxu1 %v4012_v44  ;;  %3225 = vmatpush3.bf16.msra.mxu1 %v3519_v51 }
  0xda   : > { %3226 = vmatprep.subr.bf16.mxu1 %v3520_v16 }
  0xdd   : > { %3227 = vmatpush3.bf16.msra.mxu1 %v3520_v16 }
  0xde   : > { %3228 = vmatprep.subr.bf16.mxu1 %v3521_v39 }
  0xdf   : > { %1716 = vmatmul.mubr.bf16.gmra.mrb[88].mxu0 %v3913_v13 }
  0xe0   : > { %3197 = vmatmul.mubr.bf16.gmra.mrb[88].mxu1 %v4017_v56  ;;  %1723 = vmatprep.mubr.bf16.mxu0 %v3893_v12 }
  0xe1   : > { %3200 = vmatprep.mubr.bf16.mxu1 %v4024_v20  ;;  %3229 = vmatpush3.bf16.msra.mxu1 %v3521_v39 }
  0xe2   : > { %3230 = vmatprep.subr.bf16.mxu1 %v3522_v41 }
  0xe5   : > { %3231 = vmatpush3.bf16.msra.mxu1 %v3522_v41 }
  0xe6   : > { %3232 = vmatprep.subr.bf16.mxu1 %v3523_v7 }
  0xe7   : > { %1724 = vmatmul.mubr.bf16.gmra.mrb[92].mxu0 %v3970_v19 }
  0xe8   : > { %3201 = vmatmul.mubr.bf16.gmra.mrb[92].mxu1 %v4036_v53  ;;  %1731 = vmatprep.mubr.bf16.mxu0 %v3917_v47 }
  0xe9   : > { %3204 = vmatprep.mubr.bf16.mxu1 %v4044_v10  ;;  %3233 = vmatpush3.bf16.msra.mxu1 %v3523_v7 }
  0xea   : > { %3234 = vmatprep.subr.bf16.mxu1 %v3524_v29 }
  0xed   : > { %3235 = vmatpush3.bf16.msra.mxu1 %v3524_v29 }
  0xef   : > { %1732 = vmatmul.mubr.bf16.gmra.mrb[96].mxu0 %v4008_v54 }
  0xf0   : > { %3205 = vmatmul.mubr.bf16.gmra.mrb[0].mxu1 %v3730_v62  ;;  %1739 = vmatprep.mubr.bf16.mxu0 %v3956_v11 }
  0xf1   : > { %3208 = vmatprep.mubr.bf16.mxu1 %v3743_v5 }
  0xf7   : > { %1740 = vmatmul.mubr.bf16.gmra.mrb[100].mxu0 %v4040_v57 }
  0xf8   : > { %3209 = vmatmul.mubr.bf16.gmra.mrb[4].mxu1 %v3791_v46  ;;  %1747 = vmatprep.mubr.bf16.mxu0 %v3998_v45 }
  0xf9   : > { %3212 = vmatprep.mubr.bf16.mxu1 %v3802_v4 }
  0xff   : > { %1748 = vmatmul.mubr.bf16.gmra.mrb[104].mxu0 %v4058_v37 }
 0x100   : > { %3213 = vmatmul.mubr.bf16.gmra.mrb[8].mxu1 %v3847_v28  ;;  %1755 = vmatprep.mubr.bf16.mxu0 %v3682_v30 }
 0x101   : > { %3216 = vmatprep.mubr.bf16.mxu1 %v3861_v33 }
 0x102   : > { %v2732_v12 = vpop.f32.mrb[0].mxu0 }
 0x103   : > { %v2733_v31 = vpop.f32.mrb[1].mxu0 }
 0x104   : > { %v4216_v13 = vadd.f32 %v2733_v31, %v2732_v12  ;;  %v2735_v47 = vpop.f32.mrb[2].mxu0 }
 0x105   : > { %v2736_v11 = vpop.f32.mrb[3].mxu0 }
 0x106   : > { %v4218_v19 = vadd.f32 %v2736_v11, %v2735_v47 }
 0x107   : > { %1756 = vmatmul.mubr.bf16.gmra.mrb[108].mxu0 %v3764_v24 }
 0x108   : > { %3217 = vmatmul.mubr.bf16.gmra.mrb[12].mxu1 %v3899_v22  ;;  %1763 = vmatprep.mubr.bf16.mxu0 %v3688_v34 }
 0x109   : > { %3236 = vmatprep.mubr.bf16.mxu1 %v3966_v18 }
 0x10a   : > { %v2738_v45 = vpop.f32.mrb[4].mxu0 }
 0x10b   : > { %v2739_v30 = vpop.f32.mrb[5].mxu0 }
 0x10c   : > { %v4224_v54 = vadd.f32 %v2739_v30, %v2738_v45  ;;  %v2741_v57 = vpop.f32.mrb[6].mxu0 }
 0x10d   : > { %v2742_v37 = vpop.f32.mrb[7].mxu0 }
 0x10e   : > { %v4226_v43 = vadd.f32 %v2742_v37, %v2741_v57 }
 0x10f   : > { %1764 = vmatmul.mubr.bf16.gmra.mrb[112].mxu0 %v3776_v35 }
 0x110   : > { %3237 = vmatmul.mubr.bf16.vlgmr.msra.gmra.mrb[80].mxu1 %v4002_v26  ;;  %1771 = vmatprep.mubr.bf16.mxu0 %v3725_v59 }
 0x111   : > { %3240 = vmatprep.mubr.bf16.mxu1 %v4012_v44 }
 0x112   : > { %v2744_v24 = vpop.f32.mrb[8].mxu0 }
 0x113   : > { %v2745_v34 = vpop.f32.mrb[9].mxu0 }
 0x114   : > { %v4232_v40 = vadd.f32 %v2745_v34, %v2744_v24  ;;  %v2747_v18 = vpop.f32.mrb[10].mxu0 }
 0x115   : > { %v2748_v8 = vpop.f32.mrb[11].mxu0 }
 0x116   : > { %v4234_v36 = vadd.f32 %v2748_v8, %v2747_v18 }
 0x117   : > { %1772 = vmatmul.mubr.bf16.gmra.mrb[116].mxu0 %v3833_v15 }
 0x118   : > { %3241 = vmatmul.mubr.bf16.gmra.mrb[84].mxu1 %v4017_v56  ;;  %1779 = vmatprep.mubr.bf16.mxu0 %v3737_v3 }
 0x119   : > { %3244 = vmatprep.mubr.bf16.mxu1 %v4024_v20 }
 0x11a   : > { %v2750_v35 = vpop.f32.mrb[12].mxu0 }
 0x11b   : > { %v2751_v59 = vpop.f32.mrb[13].mxu0 }
 0x11c   : > { %v4240_v26 = vadd.f32 %v2751_v59, %v2750_v35  ;;  %v2753_v44 = vpop.f32.mrb[14].mxu0 }
 0x11d   : > { %v2754_v49 = vpop.f32.mrb[15].mxu0 }
 0x11e   : > { %v4242_v23 = vadd.f32 %v2754_v49, %v2753_v44 }
 0x11f   : > { %1780 = vmatmul.mubr.bf16.gmra.mrb[120].mxu0 %v3837_v17 }
 0x120   : > { %3245 = vmatmul.mubr.bf16.gmra.mrb[88].mxu1 %v4036_v53  ;;  %1787 = vmatprep.mubr.bf16.mxu0 %v3784_v42 }
 0x121   : > { %3248 = vmatprep.mubr.bf16.mxu1 %v4044_v10 }
 0x122   : > { %v2756_v15 = vpop.f32.mrb[16].mxu0 }
 0x123   : > { %v2868_v3 = vpop.f32.mrb[16].mxu1  ;;  %v2757_v56 = vpop.f32.mrb[17].mxu0 }
 0x124   : > { %v4248_v20 = vadd.f32 %v2757_v56, %v2756_v15  ;;  %v2869_v52 = vpop.f32.mrb[17].mxu1  ;;  %v2759_v60 = vpop.f32.mrb[18].mxu0 }
 0x125   : > { %v4250_v61 = vadd.f32 %v2869_v52, %v2868_v3  ;;  %v2871_v63 = vpop.f32.mrb[18].mxu1  ;;  %v2760_v38 = vpop.f32.mrb[19].mxu0 }
 0x126   : > { %v4252_v55 = vadd.f32 %v2760_v38, %v2759_v60  ;;  %v2872_v17 = vpop.f32.mrb[19].mxu1 }
 0x127   : > { %v4254_v27 = vadd.f32 %v2872_v17, %v2871_v63  ;;  %1788 = vmatmul.mubr.bf16.gmra.mrb[124].mxu0 %v3888_v6 }
 0x128   : > { %3249 = vmatmul.mubr.bf16.gmra.mrb[92].mxu1 %v3730_v62  ;;  %1795 = vmatprep.mubr.bf16.mxu0 %v3796_v48 }
 0x129   : > { %3252 = vmatprep.mubr.bf16.mxu1 %v3743_v5 }
 0x12a   : > { %v2762_v42 = vpop.f32.mrb[20].mxu0 }
 0x12b   : > { %v2874_v53 = vpop.f32.mrb[20].mxu1  ;;  %v2763_v10 = vpop.f32.mrb[21].mxu0 }
 0x12c   : > { %v4260_v25 = vadd.f32 %v2763_v10, %v2762_v42  ;;  %v2875_v0 = vpop.f32.mrb[21].mxu1  ;;  %v2765_v21 = vpop.f32.mrb[22].mxu0 }
 0x12d   : > { %v4262_v51 = vadd.f32 %v2875_v0, %v2874_v53  ;;  %v2877_v16 = vpop.f32.mrb[22].mxu1  ;;  %v2766_v39 = vpop.f32.mrb[23].mxu0 }
 0x12e   : > { %v4264_v41 = vadd.f32 %v2766_v39, %v2765_v21  ;;  %v2878_v6 = vpop.f32.mrb[23].mxu1 }
 0x12f   : > { %v4266_v7 = vadd.f32 %v2878_v6, %v2877_v16  ;;  %1796 = vmatmul.mubr.bf16.gmra.mrb[128].mxu0 %v3928_v50 }
 0x130   : > { %3253 = vmatmul.mubr.bf16.gmra.mrb[0].mxu1 %v3791_v46  ;;  %1803 = vmatprep.mubr.bf16.mxu0 %v3841_v1 }
 0x131   : > { %3256 = vmatprep.mubr.bf16.mxu1 %v3802_v4 }
 0x132   : > { %v2768_v62 = vpop.f32.mrb[24].mxu0 }
 0x133   : > { %v2880_v5 = vpop.f32.mrb[24].mxu1  ;;  %v2769_v48 = vpop.f32.mrb[25].mxu0 }
 0x134   : > { %v4272_v29 = vadd.f32 %v2769_v48, %v2768_v62  ;;  %v2881_v12 = vpop.f32.mrb[25].mxu1  ;;  %v2771_v31 = vpop.f32.mrb[26].mxu0 }
 0x135   : > { %v4274_v47 = vadd.f32 %v2881_v12, %v2880_v5  ;;  %v2883_v11 = vpop.f32.mrb[26].mxu1  ;;  %v2772_v45 = vpop.f32.mrb[27].mxu0 }
 0x136   : > { %v4276_v30 = vadd.f32 %v2772_v45, %v2771_v31  ;;  %v2884_v50 = vpop.f32.mrb[27].mxu1 }
 0x137   : > { %v4278_v57 = vadd.f32 %v2884_v50, %v2883_v11  ;;  %1804 = vmatmul.mubr.bf16.gmra.mrb[132].mxu0 %v3954_v9 }
 0x138   : > { %3257 = vmatmul.mubr.bf16.gmra.mrb[4].mxu1 %v3847_v28  ;;  %1811 = vmatprep.mubr.bf16.mxu0 %v3856_v32 }
 0x139   : > { %3260 = vmatprep.mubr.bf16.mxu1 %v3861_v33 }
 0x13a   : > { %v2774_v46 = vpop.f32.mrb[28].mxu0 }
 0x13b   : > { %v2886_v4 = vpop.f32.mrb[28].mxu1  ;;  %v2775_v1 = vpop.f32.mrb[29].mxu0 }
 0x13c   : > { %v4284_v37 = vadd.f32 %v2775_v1, %v2774_v46  ;;  %v2887_v24 = vpop.f32.mrb[29].mxu1  ;;  %v2777_v34 = vpop.f32.mrb[30].mxu0 }
 0x13d   : > { %v4286_v18 = vadd.f32 %v2887_v24, %v2886_v4  ;;  %v2889_v8 = vpop.f32.mrb[30].mxu1  ;;  %v2778_v35 = vpop.f32.mrb[31].mxu0 }
 0x13e   : > { %v4288_v59 = vadd.f32 %v2778_v35, %v2777_v34  ;;  %v2890_v9 = vpop.f32.mrb[31].mxu1 }
 0x13f   : > { %v4290_v44 = vadd.f32 %v2890_v9, %v2889_v8  ;;  %1812 = vmatmul.mubr.bf16.gmra.mrb[136].mxu0 %v3961_v14 }
 0x140   : > { %3261 = vmatmul.mubr.bf16.gmra.mrb[8].mxu1 %v3899_v22  ;;  %1819 = vmatprep.mubr.bf16.mxu0 %v3533_v2 }
 0x141   : > { %3264 = vmatprep.mubr.bf16.mxu1 %v3921_v58 }
 0x142   : > { %v2780_v28 = vpop.f32.mrb[32].mxu0 }
 0x143   : > { %v2892_v32 = vpop.f32.mrb[32].mxu1  ;;  %v2781_v33 = vpop.f32.mrb[33].mxu0 }
 0x144   : > { %v2782_v49 = vadd.f32 %v2781_v33, %v2780_v28  ;;  %v2893_v15 = vpop.f32.mrb[33].mxu1  ;;  %v2783_v3 = vpop.f32.mrb[34].mxu0 }
 0x145   : > { %v4296_v56 = vadd.f32 %v2893_v15, %v2892_v32  ;;  %v2895_v52 = vpop.f32.mrb[34].mxu1  ;;  %v2784_v60 = vpop.f32.mrb[35].mxu0 }
 0x146   : > { %v2785_v63 = vadd.f32 %v2784_v60, %v2783_v3  ;;  %v2896_v38 = vpop.f32.mrb[35].mxu1 }
 0x147   : > { %v4298_v17 = vadd.f32 %v2896_v38, %v2895_v52  ;;  %1820 = vmatmul.mubr.bf16.gmra.mrb[140].mxu0 %v3533_v2 }
 0x148   : > { %3265 = vmatmul.mubr.bf16.gmra.mrb[12].mxu1 %v3533_v2 }
 0x14a   : > { %v2786_v22 = vpop.f32.mrb[36].mxu0 }
 0x14b   : > { %v2898_v58 = vpop.f32.mrb[36].mxu1  ;;  %v2787_v14 = vpop.f32.mrb[37].mxu0 }
 0x14c   : > { %v2788_v42 = vadd.f32 %v2787_v14, %v2786_v22  ;;  %v2899_v53 = vpop.f32.mrb[37].mxu1  ;;  %v2789_v10 = vpop.f32.mrb[38].mxu0 }
 0x14d   : > { %v4302_v0 = vadd.f32 %v2899_v53, %v2898_v58  ;;  %v2901_v21 = vpop.f32.mrb[38].mxu1  ;;  %v2790_v16 = vpop.f32.mrb[39].mxu0 }
 0x14e   : > { %v2791_v39 = vadd.f32 %v2790_v16, %v2789_v10  ;;  %v2902_v6 = vpop.f32.mrb[39].mxu1 }
 0x14f   : > { %v4304_v62 = vadd.f32 %v2902_v6, %v2901_v21 }
 0x152   : > { %v2792_v5 = vpop.f32.mrb[40].mxu0 }
 0x153   : > { %v2904_v48 = vpop.f32.mrb[40].mxu1  ;;  %v2793_v12 = vpop.f32.mrb[41].mxu0 }
 0x154   : > { %v2794_v31 = vadd.f32 %v2793_v12, %v2792_v5  ;;  %v2905_v11 = vpop.f32.mrb[41].mxu1  ;;  %v2795_v2 = vpop.f32.mrb[42].mxu0 }
 0x155   : > { %v4306_v45 = vadd.f32 %v2905_v11, %v2904_v48  ;;  %v2907_v50 = vpop.f32.mrb[42].mxu1  ;;  %v2796_v46 = vpop.f32.mrb[43].mxu0 }
 0x156   : > { %v2797_v4 = vadd.f32 %v2796_v46, %v2795_v2  ;;  %v2908_v1 = vpop.f32.mrb[43].mxu1 }
 0x157   : > { %v4308_v24 = vadd.f32 %v2908_v1, %v2907_v50 }
 0x15a   : > { %v2798_v34 = vpop.f32.mrb[44].mxu0 }
 0x15b   : > { %v2910_v8 = vpop.f32.mrb[44].mxu1  ;;  %v2799_v35 = vpop.f32.mrb[45].mxu0 }
 0x15c   : > { %v2800_v9 = vadd.f32 %v2799_v35, %v2798_v34  ;;  %v2911_v28 = vpop.f32.mrb[45].mxu1  ;;  %v2801_v32 = vpop.f32.mrb[46].mxu0 }
 0x15d   : > { %v4310_v33 = vadd.f32 %v2911_v28, %v2910_v8  ;;  %v2913_v15 = vpop.f32.mrb[46].mxu1  ;;  %v2802_v3 = vpop.f32.mrb[47].mxu0 }
 0x15e   : > { %v2803_v52 = vadd.f32 %v2802_v3, %v2801_v32  ;;  %v2914_v60 = vpop.f32.mrb[47].mxu1 }
 0x15f   : > { %v4312_v38 = vadd.f32 %v2914_v60, %v2913_v15 }
 0x162   : > { %v2804_v22 = vpop.f32.mrb[48].mxu0 }
 0x163   : > { %v2916_v58 = vpop.f32.mrb[48].mxu1  ;;  %v2805_v14 = vpop.f32.mrb[49].mxu0 }
 0x164   : > { %v4314_v53 = vadd.f32 %v2805_v14, %v2804_v22  ;;  %v2917_v10 = vpop.f32.mrb[49].mxu1  ;;  %v2807_v21 = vpop.f32.mrb[50].mxu0 }
 0x165   : > { %v2918_v16 = vadd.f32 %v2917_v10, %v2916_v58  ;;  %v2919_v6 = vpop.f32.mrb[50].mxu1  ;;  %v2808_v5 = vpop.f32.mrb[51].mxu0 }
 0x166   : > { %v4316_v48 = vadd.f32 %v2808_v5, %v2807_v21  ;;  %v2920_v12 = vpop.f32.mrb[51].mxu1 }
 0x167   : > { %v4318_v11 = vadd.f32 %v2918_v16, %v2782_v49  ;;  %v2921_v2 = vadd.f32 %v2920_v12, %v2919_v6 }
 0x169   : > { %v4320_v50 = vadd.f32 %v2921_v2, %v2785_v63 }
 0x16a   : > { %v2810_v46 = vpop.f32.mrb[52].mxu0 }
 0x16b   : > { %v2922_v1 = vpop.f32.mrb[52].mxu1  ;;  %v2811_v34 = vpop.f32.mrb[53].mxu0 }
 0x16c   : > { %v4322_v8 = vadd.f32 %v2811_v34, %v2810_v46  ;;  %v2923_v35 = vpop.f32.mrb[53].mxu1  ;;  %v2813_v28 = vpop.f32.mrb[54].mxu0 }
 0x16d   : > { %v2924_v32 = vadd.f32 %v2923_v35, %v2922_v1  ;;  %v2925_v15 = vpop.f32.mrb[54].mxu1  ;;  %v2814_v3 = vpop.f32.mrb[55].mxu0 }
 0x16e   : > { %v4324_v60 = vadd.f32 %v2814_v3, %v2813_v28  ;;  %v2926_v22 = vpop.f32.mrb[55].mxu1 }
 0x16f   : > { %v4326_v58 = vadd.f32 %v2924_v32, %v2788_v42  ;;  %v2927_v49 = vadd.f32 %v2926_v22, %v2925_v15 }
 0x171   : > { %v4328_v14 = vadd.f32 %v2927_v49, %v2791_v39 }
 0x172   : > { %v2816_v63 = vpop.f32.mrb[56].mxu0 }
 0x173   : > { %v2928_v10 = vpop.f32.mrb[56].mxu1  ;;  %v2817_v21 = vpop.f32.mrb[57].mxu0 }
 0x174   : > { %v4330_v16 = vadd.f32 %v2817_v21, %v2816_v63  ;;  %v2929_v6 = vpop.f32.mrb[57].mxu1  ;;  %v2819_v5 = vpop.f32.mrb[58].mxu0 }
 0x175   : > { %v2930_v12 = vadd.f32 %v2929_v6, %v2928_v10  ;;  %v2931_v2 = vpop.f32.mrb[58].mxu1  ;;  %v2820_v46 = vpop.f32.mrb[59].mxu0 }
 0x176   : > { %v4332_v1 = vadd.f32 %v2820_v46, %v2819_v5  ;;  %v2932_v34 = vpop.f32.mrb[59].mxu1 }
 0x177   : > { %v4334_v35 = vadd.f32 %v2930_v12, %v2794_v31  ;;  %v2933_v42 = vadd.f32 %v2932_v34, %v2931_v2 }
 0x179   : > { %v4336_v28 = vadd.f32 %v2933_v42, %v2797_v4 }
 0x17a   : > { %v2822_v39 = vpop.f32.mrb[60].mxu0 }
 0x17b   : > { %4554 = vst [vmem:[#allocation2_spill] sm:$0xff] %v4336_v28  ;;  %v2934_v32 = vpop.f32.mrb[60].mxu1  ;;  %v2823_v15 = vpop.f32.mrb[61].mxu0 }
 0x17c   : > { %v4338_v3 = vadd.f32 %v2823_v15, %v2822_v39  ;;  %v2935_v22 = vpop.f32.mrb[61].mxu1  ;;  %v2825_v49 = vpop.f32.mrb[62].mxu0 }
 0x17d   : > { %v2936_v63 = vadd.f32 %v2935_v22, %v2934_v32  ;;  %v2937_v21 = vpop.f32.mrb[62].mxu1  ;;  %v2826_v10 = vpop.f32.mrb[63].mxu0 }
 0x17e   : > { %v4340_v6 = vadd.f32 %v2826_v10, %v2825_v49  ;;  %v2938_v5 = vpop.f32.mrb[63].mxu1 }
 0x17f   : > { %v4342_v46 = vadd.f32 %v2936_v63, %v2800_v9  ;;  %v2939_v31 = vadd.f32 %v2938_v5, %v2937_v21 }
 0x181   : > { %v4344_v12 = vadd.f32 %v2939_v31, %v2803_v52 }
 0x182   : > { %v3142_v4 = vpop.f32.mrb[64].mxu0 }
 0x183   : > { %v890_v2 = vadd.f32 %v3142_v4, %v4224_v54  ;;  %v2940_v34 = vpop.f32.mrb[64].mxu1  ;;  %v881_v42 = vpop.f32.mrb[65].mxu0 }
 0x184   : > { %v882_v39 = vadd.f32 %v4216_v13, %v881_v42  ;;  %v2941_v15 = vpop.f32.mrb[65].mxu1  ;;  %v3143_v28 = vpop.f32.mrb[66].mxu0 }
 0x185   : > { %v4349_v32 = vadd.f32 %v4262_v51, %v890_v2  ;;  %v2942_v22 = vadd.f32 %v2941_v15, %v2940_v34  ;;  %v893_v49 = vadd.f32 %v3143_v28, %v4226_v43  ;;  %v2943_v9 = vpop.f32.mrb[66].mxu1  ;;  %v884_v63 = vpop.f32.mrb[67].mxu0 }
 0x186   : > { %v4353_v52 = vadd.f32 %v4250_v61, %v882_v39  ;;  %v885_v21 = vadd.f32 %v4218_v19, %v884_v63  ;;  %v2944_v54 = vpop.f32.mrb[67].mxu1 }
 0x187   : > { %v4357_v10 = vadd.f32 %v2942_v22, %v4314_v53  ;;  %v4360_v13 = vadd.f32 %v4266_v7, %v893_v49  ;;  %v2945_v5 = vadd.f32 %v2944_v54, %v2943_v9 }
 0x188   : > { %v4363_v51 = vadd.f32 %v4254_v27, %v885_v21 }
 0x189   : > { %v4366_v43 = vadd.f32 %v2945_v5, %v4316_v48 }
 0x18a   : > { %v3146_v28 = vpop.f32.mrb[68].mxu0 }
 0x18b   : > { %v906_v61 = vadd.f32 %v3146_v28, %v4240_v26  ;;  %v2946_v31 = vpop.f32.mrb[68].mxu1  ;;  %v897_v4 = vpop.f32.mrb[69].mxu0 }
 0x18c   : > { %v898_v19 = vadd.f32 %v4232_v40, %v897_v4  ;;  %v2947_v2 = vpop.f32.mrb[69].mxu1  ;;  %v3147_v53 = vpop.f32.mrb[70].mxu0 }
 0x18d   : > { %v4371_v34 = vadd.f32 %v4286_v18, %v906_v61  ;;  %v2948_v7 = vadd.f32 %v2947_v2, %v2946_v31  ;;  %v909_v42 = vadd.f32 %v3147_v53, %v4242_v23  ;;  %v2949_v27 = vpop.f32.mrb[70].mxu1  ;;  %v900_v39 = vpop.f32.mrb[71].mxu0 }
 0x18e   : > { %v4375_v48 = vadd.f32 %v4274_v47, %v898_v19  ;;  %v901_v15 = vadd.f32 %v4234_v36, %v900_v39  ;;  %v2950_v26 = vpop.f32.mrb[71].mxu1 }
 0x18f   : > { %v4379_v22 = vadd.f32 %v2948_v7, %v4322_v8  ;;  %v4382_v40 = vadd.f32 %v4290_v44, %v909_v42  ;;  %v2951_v49 = vadd.f32 %v2950_v26, %v2949_v27 }
 0x190   : > { %v4385_v18 = vadd.f32 %v4278_v57, %v901_v15 }
 0x191   : > { %v4388_v23 = vadd.f32 %v2951_v49, %v4324_v60 }
 0x192   : > { %v3150_v9 = vpop.f32.mrb[72].mxu0 }
 0x193   : > { %v922_v47 = vadd.f32 %v3150_v9, %v4260_v25  ;;  %v2952_v63 = vpop.f32.mrb[72].mxu1  ;;  %v913_v21 = vpop.f32.mrb[73].mxu0 }
 0x194   : > { %v914_v36 = vadd.f32 %v4248_v20, %v913_v21  ;;  %v2953_v54 = vpop.f32.mrb[73].mxu1  ;;  %v3151_v8 = vpop.f32.mrb[74].mxu0 }
 0x195   : > { %v4393_v5 = vadd.f32 %v4302_v0, %v922_v47  ;;  %v2954_v44 = vadd.f32 %v2953_v54, %v2952_v63  ;;  %v925_v28 = vadd.f32 %v3151_v8, %v4264_v41  ;;  %v2955_v57 = vpop.f32.mrb[74].mxu1  ;;  %v916_v61 = vpop.f32.mrb[75].mxu0 }
 0x196   : > { %v4397_v60 = vadd.f32 %v4296_v56, %v914_v36  ;;  %v917_v31 = vadd.f32 %v4252_v55, %v916_v61  ;;  %v2956_v25 = vpop.f32.mrb[75].mxu1 }
 0x197   : > { %v4401_v4 = vadd.f32 %v2954_v44, %v4330_v16  ;;  %v4404_v20 = vadd.f32 %v4304_v62, %v925_v28  ;;  %v2957_v19 = vadd.f32 %v2956_v25, %v2955_v57 }
 0x198   : > { %v1222_v0 = vadd.f32 %v4298_v17, %v917_v31 }
 0x199   : > { %v4408_v2 = vadd.f32 %v2957_v19, %v4332_v1 }
 0x19a   : > { %v3154_v41 = vpop.f32.mrb[76].mxu0 }
 0x19b   : > { %v938_v53 = vadd.f32 %v3154_v41, %v4284_v37  ;;  %v2958_v56 = vpop.f32.mrb[76].mxu1  ;;  %v929_v7 = vpop.f32.mrb[77].mxu0 }
 0x19c   : > { %v930_v55 = vadd.f32 %v4272_v29, %v929_v7  ;;  %v2959_v42 = vpop.f32.mrb[77].mxu1  ;;  %v3155_v27 = vpop.f32.mrb[78].mxu0 }
 0x19d   : > { %v4413_v16 = vadd.f32 %v4310_v33, %v938_v53  ;;  %v2960_v62 = vadd.f32 %v2959_v42, %v2958_v56  ;;  %v941_v39 = vadd.f32 %v3155_v27, %v4288_v59  ;;  %v2961_v15 = vpop.f32.mrb[78].mxu1  ;;  %v932_v17 = vpop.f32.mrb[79].mxu0 }
 0x19e   : > { %v1235_v1 = vadd.f32 %v4306_v45, %v930_v55  ;;  %v933_v26 = vadd.f32 %v4276_v30, %v932_v17  ;;  %v2962_v49 = vpop.f32.mrb[79].mxu1 }
 0x19f   : > { %v4419_v37 = vadd.f32 %v2960_v62, %v4338_v3  ;;  %v4422_v29 = vadd.f32 %v4312_v38, %v941_v39  ;;  %v2963_v9 = vadd.f32 %v2962_v49, %v2961_v15 }
 0x1a0   : > { %v1238_v33 = vadd.f32 %v4308_v24, %v933_v26 }
 0x1a1   : > { %v4426_v47 = vadd.f32 %v2963_v9, %v4340_v6 }
 0x1a2   : > { %v3004_v59 = vpop.f32.mrb[80].mxu0 }
 0x1a3   : > { %v3005_v63 = vpop.f32.mrb[81].mxu0 }
 0x1a4   : > { %v3006_v21 = vadd.f32 %v3005_v63, %v3004_v59  ;;  %v3007_v36 = vpop.f32.mrb[82].mxu0 }
 0x1a5   : > { %v3008_v45 = vpop.f32.mrb[83].mxu0 }
 0x1a6   : > { %v3009_v54 = vadd.f32 %v3008_v45, %v3007_v36  ;;  %v4429_v30 = vadd.f32 %v3006_v21, %v4353_v52 }
 0x1a8   : > { %v4432_v3 = vadd.f32 %v3009_v54, %v4363_v51 }
 0x1aa   : > { %v3010_v38 = vpop.f32.mrb[84].mxu0 }
 0x1ab   : > { %v3011_v8 = vpop.f32.mrb[85].mxu0 }
 0x1ac   : > { %v3012_v44 = vadd.f32 %v3011_v8, %v3010_v38  ;;  %v3013_v28 = vpop.f32.mrb[86].mxu0 }
 0x1ad   : > { %v3014_v24 = vpop.f32.mrb[87].mxu0 }
 0x1ae   : > { %v3015_v57 = vadd.f32 %v3014_v24, %v3013_v28  ;;  %v3286_v6 = vadd.f32 %v3012_v44, %v4349_v32 }
 0x1b0   : > { %v3294_v61 = vadd.f32 %v3015_v57, %v4360_v13 }
 0x1b2   : > { %v3016_v31 = vpop.f32.mrb[88].mxu0 }
 0x1b3   : > { %v3017_v25 = vpop.f32.mrb[89].mxu0 }
 0x1b4   : > { %v3018_v19 = vadd.f32 %v3017_v25, %v3016_v31  ;;  %v3019_v41 = vpop.f32.mrb[90].mxu0 }
 0x1b5   : > { %v3020_v53 = vpop.f32.mrb[91].mxu0 }
 0x1b6   : > { %v3021_v52 = vadd.f32 %v3020_v53, %v3019_v41  ;;  %v4437_v56 = vadd.f32 %v3018_v19, %v4375_v48 }
 0x1b8   : > { %v4440_v51 = vadd.f32 %v3021_v52, %v4385_v18 }
 0x1ba   : > { %v3022_v7 = vpop.f32.mrb[92].mxu0 }
 0x1bb   : > { %v3023_v55 = vpop.f32.mrb[93].mxu0 }
 0x1bc   : > { %v3024_v42 = vadd.f32 %v3023_v55, %v3022_v7  ;;  %v3025_v27 = vpop.f32.mrb[94].mxu0 }
 0x1bd   : > { %v3026_v62 = vpop.f32.mrb[95].mxu0 }
 0x1be   : > { %v3027_v32 = vadd.f32 %v3026_v62, %v3025_v27  ;;  %v4443_v13 = vadd.f32 %v3024_v42, %v4371_v34 }
 0x1c0   : > { %v4446_v39 = vadd.f32 %v3027_v32, %v4382_v40 }
 0x1c2   : > { %v3028_v15 = vpop.f32.mrb[96].mxu0 }
 0x1c3   : > { %v3029_v17 = vpop.f32.mrb[97].mxu0 }
 0x1c4   : > { %v3030_v26 = vadd.f32 %v3029_v17, %v3028_v15  ;;  %v3031_v48 = vpop.f32.mrb[98].mxu0 }
 0x1c5   : > { %v3032_v49 = vpop.f32.mrb[99].mxu0 }
 0x1c6   : > { %v3033_v9 = vadd.f32 %v3032_v49, %v3031_v48  ;;  %v4449_v18 = vadd.f32 %v3030_v26, %v4397_v60 }
 0x1c8   : > { %v4451_v59 = vadd.f32 %v3033_v9, %v1222_v0 }
 0x1ca   : > { %v3034_v63 = vpop.f32.mrb[100].mxu0 }
 0x1cb   : > { %v3035_v21 = vpop.f32.mrb[101].mxu0 }
 0x1cc   : > { %v3036_v36 = vadd.f32 %v3035_v21, %v3034_v63  ;;  %v3037_v45 = vpop.f32.mrb[102].mxu0 }
 0x1cd   : > { %v3038_v34 = vpop.f32.mrb[103].mxu0 }
 0x1ce   : > { %v3039_v54 = vadd.f32 %v3038_v34, %v3037_v45  ;;  %v4454_v40 = vadd.f32 %v3036_v36, %v4393_v5 }
 0x1d0   : > { %v4457_v38 = vadd.f32 %v3039_v54, %v4404_v20 }
 0x1d2   : > { %v3040_v8 = vpop.f32.mrb[104].mxu0 }
 0x1d3   : > { %v3041_v44 = vpop.f32.mrb[105].mxu0 }
 0x1d4   : > { %v3042_v28 = vadd.f32 %v3041_v44, %v3040_v8  ;;  %v3043_v24 = vpop.f32.mrb[106].mxu0 }
 0x1d5   : > { %v3044_v60 = vpop.f32.mrb[107].mxu0 }
 0x1d6   : > { %v3045_v57 = vadd.f32 %v3044_v60, %v3043_v24  ;;  %v4459_v0 = vadd.f32 %v3042_v28, %v1235_v1 }
 0x1d8   : > { %v4461_v31 = vadd.f32 %v3045_v57, %v1238_v33 }
 0x1da   : > { %v3046_v25 = vpop.f32.mrb[108].mxu0 }
 0x1db   : > { %v3047_v19 = vpop.f32.mrb[109].mxu0 }
 0x1dc   : > { %v3048_v41 = vadd.f32 %v3047_v19, %v3046_v25  ;;  %v3049_v53 = vpop.f32.mrb[110].mxu0 }
 0x1dd   : > { %v3050_v5 = vpop.f32.mrb[111].mxu0 }
 0x1de   : > { %v3051_v52 = vadd.f32 %v3050_v5, %v3049_v53  ;;  %v4464_v20 = vadd.f32 %v3048_v41, %v4413_v16 }
 0x1e0   : > { %v4467_v7 = vadd.f32 %v3051_v52, %v4422_v29 }
 0x1e2   : > { %v3052_v55 = vpop.f32.mrb[112].mxu0 }
 0x1e3   : > { %v3238_v42 = vpop.f32.mrb[80].mxu1  ;;  %v3053_v27 = vpop.f32.mrb[113].mxu0 }
 0x1e4   : > { %v3287_v1 = vadd.f32 %v3286_v6, %v3238_v42  ;;  %v3054_v62 = vadd.f32 %v3053_v27, %v3052_v55  ;;  %v1862_v33 = vpop.f32.mrb[81].mxu1  ;;  %v3055_v32 = vpop.f32.mrb[114].mxu0 }
 0x1e5   : > { %v3291_v15 = vadd.f32 %v4429_v30, %v1862_v33  ;;  %v3239_v17 = vpop.f32.mrb[82].mxu1  ;;  %v3056_v26 = vpop.f32.mrb[115].mxu0 }
 0x1e6   : > { %v3295_v48 = vadd.f32 %v3294_v61, %v3239_v17  ;;  %v3057_v49 = vadd.f32 %v3056_v26, %v3055_v32  ;;  %v1865_v9 = vpop.f32.mrb[83].mxu1  ;;  %v4472_v16 = vadd.f32 %v4318_v11, %v3054_v62  ;;  %v2221_v45 = vmul.f32 %v3287_v1, %v3287_v1 }
 0x1e7   : > { %v3299_v29 = vadd.f32 %v4432_v3, %v1865_v9  ;;  %v2219_v63 = vmul.f32 %v3291_v15, %v3291_v15 }
 0x1e8   : > { %v2629_v6 = vpack.c.bf16 %v3295_v48, %v3287_v1  ;;  %v4481_v30 = vadd.f32 %v4320_v50, %v3057_v49  ;;  %v2222_v57 = vmul.f32 %v3295_v48, %v3295_v48 }
 0x1e9   : > { %v2624_v61 = vpack.c.bf16 %v3299_v29, %v3291_v15  ;;  %v2181_v21 = vadd.f32 %v3299_v29, %v3291_v15  ;;  %v2220_v36 = vmul.f32 %v3299_v29, %v3299_v29 }
 0x1ea   : > { %2701 = vst [vmem:[%s4477_s16 + $0x8] sm:$0xff] %v2629_v6   ;;  %v3058_v11 = vpop.f32.mrb[116].mxu0 }
 0x1eb   : > { %2625 = vst [vmem:[%s4477_s16] sm:$0xff] %v2624_v61   ;;  %v2182_v34 = vadd.f32 %v3287_v1, %v2181_v21  ;;  %v2251_v54 = vadd.f32 %v2220_v36, %v2219_v63  ;;  %v3242_v8 = vpop.f32.mrb[84].mxu1  ;;  %v3059_v44 = vpop.f32.mrb[117].mxu0 }
 0x1ec   : > { %v3303_v28 = vadd.f32 %v4443_v13, %v3242_v8  ;;  %v3060_v24 = vadd.f32 %v3059_v44, %v3058_v11  ;;  %v1878_v3 = vpop.f32.mrb[85].mxu1  ;;  %v3061_v60 = vpop.f32.mrb[118].mxu0 }
 0x1ed   : > { %v2252_v50 = vadd.f32 %v2251_v54, %v2221_v45  ;;  %v3307_v25 = vadd.f32 %v4437_v56, %v1878_v3  ;;  %v2183_v19 = vadd.f32 %v3295_v48, %v2182_v34  ;;  %v3243_v41 = vpop.f32.mrb[86].mxu1  ;;  %v3062_v53 = vpop.f32.mrb[119].mxu0 }
 0x1ee   : > { %v3311_v5 = vadd.f32 %v4446_v39, %v3243_v41  ;;  %v3063_v52 = vadd.f32 %v3062_v53, %v3061_v60  ;;  %v1881_v55 = vpop.f32.mrb[87].mxu1  ;;  %v4489_v42 = vadd.f32 %v4326_v58, %v3060_v24  ;;  %v2225_v48 = vmul.f32 %v3303_v28, %v3303_v28 }
 0x1ef   : > { %v2184_v13 = vadd.f32 %v3307_v25, %v2183_v19  ;;  %v2223_v27 = vmul.f32 %v3307_v25, %v3307_v25  ;;  %v2253_v1 = vadd.f32 %v2252_v50, %v2222_v57  ;;  %v3315_v62 = vadd.f32 %v4440_v51, %v1881_v55  ;;  %v4555_v50 = vld [vmem:[#allocation2_spill] sm:$0xff] }
 0x1f0   : > { %v2639_v33 = vpack.c.bf16 %v3311_v5, %v3303_v28  ;;  %v4493_v56 = vadd.f32 %v4328_v14, %v3063_v52  ;;  %v2226_v21 = vmul.f32 %v3311_v5, %v3311_v5 }
 0x1f1   : > { %v2254_v32 = vadd.f32 %v2253_v1, %v2223_v27  ;;  %v2634_v15 = vpack.c.bf16 %v3315_v62, %v3307_v25  ;;  %v2185_v17 = vadd.f32 %v3315_v62, %v2184_v13  ;;  %v2224_v26 = vmul.f32 %v3315_v62, %v3315_v62 }
 0x1f2   : > { %2703 = vst [vmem:[%s4477_s16 + $0x18] sm:$0xff] %v2639_v33   ;;  %v3064_v39 = vpop.f32.mrb[120].mxu0 }
 0x1f3   : > { %2702 = vst [vmem:[%s4477_s16 + $0x10] sm:$0xff] %v2634_v15   ;;  %v2186_v49 = vadd.f32 %v3303_v28, %v2185_v17  ;;  %v2255_v58 = vadd.f32 %v2254_v32, %v2224_v26  ;;  %v3246_v9 = vpop.f32.mrb[88].mxu1  ;;  %v3065_v29 = vpop.f32.mrb[121].mxu0 }
 0x1f4   : > { %v3319_v6 = vadd.f32 %v4454_v40, %v3246_v9  ;;  %v3066_v63 = vadd.f32 %v3065_v29, %v3064_v39  ;;  %v1894_v51 = vpop.f32.mrb[89].mxu1  ;;  %v3067_v61 = vpop.f32.mrb[122].mxu0 }
 0x1f5   : > { %v2256_v14 = vadd.f32 %v2255_v58, %v2225_v48  ;;  %v3323_v36 = vadd.f32 %v4449_v18, %v1894_v51  ;;  %v2187_v11 = vadd.f32 %v3311_v5, %v2186_v49  ;;  %v3247_v45 = vpop.f32.mrb[90].mxu1  ;;  %v3068_v34 = vpop.f32.mrb[123].mxu0 }
 0x1f6   : > { %v3327_v54 = vadd.f32 %v4457_v38, %v3247_v45  ;;  %v3069_v8 = vadd.f32 %v3068_v34, %v3067_v61  ;;  %v1897_v44 = vpop.f32.mrb[91].mxu1  ;;  %v4501_v28 = vadd.f32 %v4334_v35, %v3066_v63  ;;  %v2229_v5 = vmul.f32 %v3319_v6, %v3319_v6 }
 0x1f7   : > { %v2188_v40 = vadd.f32 %v3323_v36, %v2187_v11  ;;  %v2227_v24 = vmul.f32 %v3323_v36, %v3323_v36  ;;  %v2257_v3 = vadd.f32 %v2256_v14, %v2226_v21  ;;  %v3331_v60 = vadd.f32 %v4451_v59, %v1897_v44 }
 0x1f8   : > { %v2649_v57 = vpack.c.bf16 %v3327_v54, %v3319_v6  ;;  %v4505_v18 = vadd.f32 %v4555_v50, %v3069_v8  ;;  %v2230_v33 = vmul.f32 %v3327_v54, %v3327_v54 }
 0x1f9   : > { %v2258_v25 = vadd.f32 %v2257_v3, %v2227_v24  ;;  %v2644_v19 = vpack.c.bf16 %v3331_v60, %v3323_v36  ;;  %v2189_v41 = vadd.f32 %v3331_v60, %v2188_v40  ;;  %v2228_v53 = vmul.f32 %v3331_v60, %v3331_v60 }
 0x1fa   : > { %2705 = vst [vmem:[%s4477_s16 + $0x28] sm:$0xff] %v2649_v57   ;;  %v3070_v38 = vpop.f32.mrb[124].mxu0 }
 0x1fb   : > { %2704 = vst [vmem:[%s4477_s16 + $0x20] sm:$0xff] %v2644_v19   ;;  %v2190_v52 = vadd.f32 %v3319_v6, %v2189_v41  ;;  %v2259_v35 = vadd.f32 %v2258_v25, %v2228_v53  ;;  %v3250_v55 = vpop.f32.mrb[92].mxu1  ;;  %v3071_v13 = vpop.f32.mrb[125].mxu0 }
 0x1fc   : > { %v3335_v27 = vadd.f32 %v4464_v20, %v3250_v55  ;;  %v3072_v1 = vadd.f32 %v3071_v13, %v3070_v38  ;;  %v1910_v59 = vpop.f32.mrb[93].mxu1  ;;  %v3073_v62 = vpop.f32.mrb[126].mxu0 }
 0x1fd   : > { %v2260_v32 = vadd.f32 %v2259_v35, %v2229_v5  ;;  %v3339_v15 = vadd.f32 %v4459_v0, %v1910_v59  ;;  %v2191_v17 = vadd.f32 %v3327_v54, %v2190_v52  ;;  %v3251_v26 = vpop.f32.mrb[94].mxu1  ;;  %v3074_v39 = vpop.f32.mrb[127].mxu0 }
 0x1fe   : > { %v3343_v48 = vadd.f32 %v4467_v7, %v3251_v26  ;;  %v3075_v49 = vadd.f32 %v3074_v39, %v3073_v62  ;;  %v1913_v58 = vpop.f32.mrb[95].mxu1  ;;  %v3361_v9 = vadd.f32 %v4342_v46, %v3072_v1  ;;  %v2233_v7 = vmul.f32 %v3335_v27, %v3335_v27 }
 0x1ff   : > { %v2192_v29 = vadd.f32 %v3339_v15, %v2191_v17  ;;  %v2231_v20 = vmul.f32 %v3339_v15, %v3339_v15  ;;  %v2261_v6 = vadd.f32 %v2260_v32, %v2230_v33  ;;  %v3347_v63 = vadd.f32 %v4461_v31, %v1913_v58 }
 0x200   : > { %v2659_v51 = vpack.c.bf16 %v3343_v48, %v3335_v27  ;;  %v3367_v61 = vadd.f32 %v4344_v12, %v3075_v49  ;;  %v2234_v24 = vmul.f32 %v3343_v48, %v3343_v48 }
 0x201   : > { %v2262_v0 = vadd.f32 %v2261_v6, %v2231_v20  ;;  %v2654_v21 = vpack.c.bf16 %v3347_v63, %v3339_v15  ;;  %v2193_v14 = vadd.f32 %v3347_v63, %v2192_v29  ;;  %v2232_v36 = vmul.f32 %v3347_v63, %v3347_v63 }
 0x202   : > { %2707 = vst [vmem:[%s4477_s16 + $0x38] sm:$0xff] %v2659_v51   ;;  %v3076_v11 = vpop.f32.mrb[128].mxu0 }
 0x203   : > { %2706 = vst [vmem:[%s4477_s16 + $0x30] sm:$0xff] %v2654_v21   ;;  %v2194_v45 = vadd.f32 %v3335_v27, %v2193_v14  ;;  %v2263_v34 = vadd.f32 %v2262_v0, %v2232_v36  ;;  %v3254_v54 = vpop.f32.mrb[0].mxu1  ;;  %v3077_v46 = vpop.f32.mrb[129].mxu0 }
 0x204   : > { %v3350_v8 = vadd.f32 %v4489_v42, %v3254_v54  ;;  %v3078_v44 = vadd.f32 %v3077_v46, %v3076_v11  ;;  %v1926_v40 = vpop.f32.mrb[1].mxu1  ;;  %v3079_v31 = vpop.f32.mrb[130].mxu0 }
 0x205   : > { %v2264_v3 = vadd.f32 %v2263_v34, %v2233_v7  ;;  %v3353_v12 = vadd.f32 %v4472_v16, %v1926_v40  ;;  %v2195_v60 = vadd.f32 %v3343_v48, %v2194_v45  ;;  %v3255_v57 = vpop.f32.mrb[2].mxu1  ;;  %v3080_v50 = vpop.f32.mrb[131].mxu0 }
 0x206   : > { %v3356_v25 = vadd.f32 %v4493_v56, %v3255_v57  ;;  %v3081_v19 = vadd.f32 %v3080_v50, %v3079_v31  ;;  %v1929_v41 = vpop.f32.mrb[3].mxu1  ;;  %v3376_v53 = vadd.f32 %v4357_v10, %v3078_v44  ;;  %v2237_v56 = vmul.f32 %v3350_v8, %v3350_v8 }
 0x207   : > { %v2196_v38 = vadd.f32 %v3353_v12, %v2195_v60  ;;  %v2235_v42 = vmul.f32 %v3353_v12, %v3353_v12  ;;  %v2265_v5 = vadd.f32 %v2264_v3, %v2234_v24  ;;  %v3359_v52 = vadd.f32 %v4481_v30, %v1929_v41 }
 0x208   : > { %v2669_v35 = vpack.c.bf16 %v3356_v25, %v3350_v8  ;;  %v3382_v55 = vadd.f32 %v4366_v43, %v3081_v19  ;;  %v2238_v30 = vmul.f32 %v3356_v25, %v3356_v25 }
 0x209   : > { %v2266_v16 = vadd.f32 %v2265_v5, %v2235_v42  ;;  %v2664_v13 = vpack.c.bf16 %v3359_v52, %v3353_v12  ;;  %v2197_v27 = vadd.f32 %v3359_v52, %v2196_v38  ;;  %v2236_v1 = vmul.f32 %v3359_v52, %v3359_v52 }
 0x20a   : > { %2709 = vst [vmem:[%s4477_s16 + $0x48] sm:$0xff] %v2669_v35   ;;  %v3082_v59 = vpop.f32.mrb[132].mxu0 }
 0x20b   : > { %2708 = vst [vmem:[%s4477_s16 + $0x40] sm:$0xff] %v2664_v13   ;;  %v2198_v62 = vadd.f32 %v3350_v8, %v2197_v27  ;;  %v2267_v33 = vadd.f32 %v2266_v16, %v2236_v1  ;;  %v3258_v32 = vpop.f32.mrb[4].mxu1  ;;  %v3083_v10 = vpop.f32.mrb[133].mxu0 }
 0x20c   : > { %v3362_v15 = vadd.f32 %v3361_v9, %v3258_v32  ;;  %v3084_v17 = vadd.f32 %v3083_v10, %v3082_v59  ;;  %v1942_v26 = vpop.f32.mrb[5].mxu1  ;;  %v3085_v39 = vpop.f32.mrb[134].mxu0 }
 0x20d   : > { %v2268_v48 = vadd.f32 %v2267_v33, %v2237_v56  ;;  %v3365_v43 = vadd.f32 %v4501_v28, %v1942_v26  ;;  %v2199_v49 = vadd.f32 %v3356_v25, %v2198_v62  ;;  %v3259_v58 = vpop.f32.mrb[6].mxu1  ;;  %v3086_v29 = vpop.f32.mrb[135].mxu0 }
 0x20e   : > { %v3368_v20 = vadd.f32 %v3367_v61, %v3259_v58  ;;  %v3087_v6 = vadd.f32 %v3086_v29, %v3085_v39  ;;  %v1945_v63 = vpop.f32.mrb[7].mxu1  ;;  %v3373_v51 = vadd.f32 %v4379_v22, %v3084_v17  ;;  %v2241_v61 = vmul.f32 %v3362_v15, %v3362_v15 }
 0x20f   : > { %v2200_v0 = vadd.f32 %v3365_v43, %v2199_v49  ;;  %v2239_v21 = vmul.f32 %v3365_v43, %v3365_v43  ;;  %v2269_v9 = vadd.f32 %v2268_v48, %v2238_v30  ;;  %v3371_v14 = vadd.f32 %v4505_v18, %v1945_v63 }
 0x210   : > { %v2679_v36 = vpack.c.bf16 %v3368_v20, %v3362_v15  ;;  %v3379_v11 = vadd.f32 %v4388_v23, %v3087_v6  ;;  %v2242_v18 = vmul.f32 %v3368_v20, %v3368_v20 }
 0x211   : > { %v2270_v7 = vadd.f32 %v2269_v9, %v2239_v21  ;;  %v2674_v28 = vpack.c.bf16 %v3371_v14, %v3365_v43  ;;  %v2201_v45 = vadd.f32 %v3371_v14, %v2200_v0  ;;  %v2240_v34 = vmul.f32 %v3371_v14, %v3371_v14 }
 0x212   : > { %2711 = vst [vmem:[%s4477_s16 + $0x58] sm:$0xff] %v2679_v36   ;;  %v3088_v54 = vpop.f32.mrb[136].mxu0 }
 0x213   : > { %2710 = vst [vmem:[%s4477_s16 + $0x50] sm:$0xff] %v2674_v28   ;;  %v2202_v46 = vadd.f32 %v3362_v15, %v2201_v45  ;;  %v2271_v8 = vadd.f32 %v2270_v7, %v2240_v34  ;;  %v3262_v44 = vpop.f32.mrb[8].mxu1  ;;  %v3089_v22 = vpop.f32.mrb[137].mxu0 }
 0x214   : > { %v3374_v40 = vadd.f32 %v3373_v51, %v3262_v44  ;;  %v3090_v31 = vadd.f32 %v3089_v22, %v3088_v54  ;;  %v1958_v24 = vpop.f32.mrb[9].mxu1  ;;  %v3091_v3 = vpop.f32.mrb[138].mxu0 }
 0x215   : > { %v2272_v12 = vadd.f32 %v2271_v8, %v2241_v61  ;;  %v3377_v60 = vadd.f32 %v3376_v53, %v1958_v24  ;;  %v2203_v23 = vadd.f32 %v3368_v20, %v2202_v46  ;;  %v3263_v57 = vpop.f32.mrb[10].mxu1  ;;  %v3092_v50 = vpop.f32.mrb[139].mxu0 }
 0x216   : > { %v3380_v25 = vadd.f32 %v3379_v11, %v3263_v57  ;;  %v3093_v19 = vadd.f32 %v3092_v50, %v3091_v3  ;;  %v1961_v41 = vpop.f32.mrb[11].mxu1  ;;  %v3388_v38 = vadd.f32 %v4401_v4, %v3090_v31  ;;  %v2245_v62 = vmul.f32 %v3374_v40, %v3374_v40 }
 0x217   : > { %v2204_v42 = vadd.f32 %v3377_v60, %v2203_v23  ;;  %v2243_v5 = vmul.f32 %v3377_v60, %v3377_v60  ;;  %v2273_v52 = vadd.f32 %v2272_v12, %v2242_v18  ;;  %v3383_v35 = vadd.f32 %v3382_v55, %v1961_v41 }
 0x218   : > { %v2689_v16 = vpack.c.bf16 %v3380_v25, %v3374_v40  ;;  %v3394_v13 = vadd.f32 %v4408_v2, %v3093_v19  ;;  %v2246_v39 = vmul.f32 %v3380_v25, %v3380_v25 }
 0x219   : > { %v2274_v27 = vadd.f32 %v2273_v52, %v2243_v5  ;;  %v2684_v1 = vpack.c.bf16 %v3383_v35, %v3377_v60  ;;  %v2205_v53 = vadd.f32 %v3383_v35, %v2204_v42  ;;  %v2244_v59 = vmul.f32 %v3383_v35, %v3383_v35 }
 0x21a   : > { %2713 = vst [vmem:[%s4477_s16 + $0x68] sm:$0xff] %v2689_v16   ;;  %v3094_v56 = vpop.f32.mrb[140].mxu0 }
 0x21b   : > { %2712 = vst [vmem:[%s4477_s16 + $0x60] sm:$0xff] %v2684_v1   ;;  %v2206_v33 = vadd.f32 %v3374_v40, %v2205_v53  ;;  %v2275_v32 = vadd.f32 %v2274_v27, %v2244_v59  ;;  %v3266_v10 = vpop.f32.mrb[12].mxu1  ;;  %v3095_v15 = vpop.f32.mrb[141].mxu0 }
 0x21c   : > { %v3096_v4 = vadd.f32 %v3095_v15, %v3094_v56  ;;  %v1974_v17 = vpop.f32.mrb[13].mxu1  ;;  %v3097_v26 = vpop.f32.mrb[142].mxu0 }
 0x21d   : > { %v2276_v55 = vadd.f32 %v2275_v32, %v2245_v62  ;;  %v3389_v30 = vadd.f32 %v3388_v38, %v1974_v17  ;;  %v2207_v48 = vadd.f32 %v3380_v25, %v2206_v33  ;;  %v3267_v2 = vpop.f32.mrb[14].mxu1  ;;  %v3098_v43 = vpop.f32.mrb[143].mxu0 }
 0x21e   : > { %v3385_v49 = vadd.f32 %v4419_v37, %v3096_v4  ;;  %v3099_v58 = vadd.f32 %v3098_v43, %v3097_v26  ;;  %v1977_v29 = vpop.f32.mrb[15].mxu1 }
 0x21f   : > { %v2208_v20 = vadd.f32 %v3389_v30, %v2207_v48  ;;  %v2247_v6 = vmul.f32 %v3389_v30, %v3389_v30  ;;  %v2277_v63 = vadd.f32 %v2276_v55, %v2246_v39  ;;  %v3395_v51 = vadd.f32 %v3394_v13, %v1977_v29 }
 0x220   : > { %v3386_v0 = vadd.f32 %v3385_v49, %v3266_v10  ;;  %v3391_v21 = vadd.f32 %v4426_v47, %v3099_v58 }
 0x221   : > { %v2278_v9 = vadd.f32 %v2277_v63, %v2247_v6  ;;  %v2694_v14 = vpack.c.bf16 %v3395_v51, %v3389_v30  ;;  %v2209_v36 = vadd.f32 %v3395_v51, %v2208_v20  ;;  %v2248_v11 = vmul.f32 %v3395_v51, %v3395_v51 }
 0x222   : > { %v2249_v7 = vmul.f32 %v3386_v0, %v3386_v0  ;;  %v3392_v28 = vadd.f32 %v3391_v21, %v3267_v2 }
 0x223   : > { %2714 = vst [vmem:[%s4477_s16 + $0x70] sm:$0xff] %v2694_v14   ;;  %v2210_v45 = vadd.f32 %v3386_v0, %v2209_v36  ;;  %v2279_v37 = vadd.f32 %v2278_v9, %v2248_v11 }
 0x224   : > { %v2699_v34 = vpack.c.bf16 %v3392_v28, %v3386_v0  ;;  %v2250_v54 = vmul.f32 %v3392_v28, %v3392_v28 }
 0x225   : > { %v2211_v61 = vadd.f32 %v3392_v28, %v2210_v45  ;;  %v2280_v46 = vadd.f32 %v2279_v37, %v2249_v7 }
 0x226   : > { %2715 = vst [vmem:[%s4477_s16 + $0x78] sm:$0xff] %v2699_v34  }
 0x227   : > { %v2212_v8 = vrot.slane %v2211_v61, 4  ;;  %v2281_v44 = vadd.f32 %v2280_v46, %v2250_v54 }
 0x229   : > { %v2213_v22 = vadd.f32 %v2212_v8, %v2211_v61  ;;  %v2282_v40 = vrot.slane %v2281_v44, 4 }
 0x22b   : > { %v2214_v47 = vrot.slane %v2213_v22, 2  ;;  %v2283_v31 = vadd.f32 %v2282_v40, %v2281_v44 }
 0x22d   : > { %v2215_v24 = vadd.f32 %v2214_v47, %v2213_v22  ;;  %v2284_v3 = vrot.slane %v2283_v31, 2 }
 0x22f   : > { %v2216_v18 = vrot.slane %v2215_v24, 1  ;;  %v2285_v12 = vadd.f32 %v2284_v3, %v2283_v31 }
 0x231   : > { %v2217_v60 = vadd.f32 %v2216_v18, %v2215_v24  ;;  %v2286_v23 = vrot.slane %v2285_v12, 1 }
 0x233   : > { %2218 = vst [vmem:[%s181_s20] sm:$0x1] %v2217_v60  ;;  %v2287_v57 = vadd.f32 %v2286_v23, %v2285_v12 }
 0x235   : > { %2288 = vst [vmem:[%s181_s20 + $0x1] sm:$0x1] %v2287_v57 }
 0x236 PF: > { %s14_s12 = sadd.s32 1, %s3531_s12  }
 0x237   : > { %p11_p4 = scmp.ge.s32.totalorder %s14_s12, 4  }
 0x239   :  { %13 = sbr.rel (!%p11_p4) target bundleno = 1 (0x1), region = 72 }

</bundles_post_ra>
